<compile_context>
chip_gen: v6e
topology: v6e:2x2x1
jax: 0.10.0
libtpu: 0.0.40
codegen_flags: <defaults>
</compile_context>

<pallas_src>
import functools
import math

import jax
import jax.numpy as jnp
import numpy as np
from jax import lax
from jax.experimental import pallas as pl
from jax.experimental.pallas import tpu as pltpu

BN_EPS = 1e-5
K_DIRECT = 15                    # direct-path conv kernel size
STRIDE = 2
PAD = (K_DIRECT - 1) // 2        # 7  (PyTorch padding=(K-1)//2)
K2 = (K_DIRECT + 1) // 2         # 8  taps after the even/odd phase split
HALO = K2 - 1                    # 7-sample halo on the phase-split axis
RES_OFFSET = (PAD - 1) // 2      # 3: x[2j] == odd-phase[j + 3]


# ----------------------------------------------------------------------------
# Fully fused network kernel: all EncBlocks + AdaptiveAvgPool1d(1) + MLP
# ----------------------------------------------------------------------------
def _fused_kernel(x_ref, *refs, n_layers):
    """One grid step = one batch element; everything stays in VMEM/vregs.

    x_ref : (2*c0, M0) bf16   even/odd phase-split, padded input
    per layer l (5 refs): wstk (c_out, K2*2*c_in) bf16, wr (c_out, c_in) bf16,
                          bd (c_out,1) f32, br (c_out,1) f32, alpha (1,1) f32
    per layer l < last:   deint matrix (L_out_l, 2*M_{l+1}) bf16
    head: w1,b1,w2,b2,w3,b3
    out  : (l_len, 1) f32
    """
    o_ref = refs[-1]
    lrefs = refs[:5 * n_layers]
    drefs = refs[5 * n_layers:6 * n_layers - 1]
    mw1, mb1, mw2, mb2, mw3, mb3 = refs[6 * n_layers - 1:-1]

    x2v = x_ref[...]                                  # (2*c_in, M) bf16
    out = None
    for l in range(n_layers):
        wstk = lrefs[5 * l][...]
        wr = lrefs[5 * l + 1][...]
        bd = lrefs[5 * l + 2][...]
        br = lrefs[5 * l + 3][...]
        alpha = lrefs[5 * l + 4][...]                 # (1, 1) f32
        c_in = x2v.shape[0] // 2
        lo = x2v.shape[1] - HALO                      # this layer's L_out

        # Stacked-K operand: 8 shifted (2c_in, lo) slices -> (K2*2c_in, lo).
        stk = jnp.concatenate([x2v[:, t:t + lo] for t in range(K2)], axis=0)
        d = jnp.dot(wstk, stk, preferred_element_type=jnp.float32) + bd
        y = jnp.where(d >= 0.0, d, alpha * d)          # PReLU (f32)
        # Residual 1x1 stride-2 conv: matmul against the odd phase (kept as a
        # separate dot because PReLU applies only to the direct path).
        r = jnp.dot(wr, x2v[c_in:, RES_OFFSET:RES_OFFSET + lo],
                    preferred_element_type=jnp.float32)
        out = y + r + br                               # (c_out, lo) f32

        if l < n_layers - 1:
            # Deinterleave + re-pad for the next layer via an exact 0/1
            # selection matmul: columns [0,M') = even phase, [M',2M') = odd.
            dm = drefs[l][...]
            mn = dm.shape[1] // 2
            ph = jnp.dot(out.astype(jnp.bfloat16), dm,
                         preferred_element_type=jnp.float32)
            x2v = jnp.concatenate(
                [ph[:, :mn].astype(jnp.bfloat16),
                 ph[:, mn:].astype(jnp.bfloat16)], axis=0)

    # ---- head: AdaptiveAvgPool1d(1) + 3 Linear layers --------------------
    lo = out.shape[1]
    pooled = (jnp.sum(out, axis=1, keepdims=True) * (1.0 / lo)
              ).astype(jnp.bfloat16)                   # (c_last, 1)
    h = jnp.dot(mw1[...], pooled, preferred_element_type=jnp.float32) + mb1[...]
    h = jnp.dot(mw2[...], h.astype(jnp.bfloat16),
                preferred_element_type=jnp.float32) + mb2[...]
    h = jnp.dot(mw3[...], h.astype(jnp.bfloat16),
                preferred_element_type=jnp.float32) + mb3[...]
    o_ref[...] = h                                     # (l_len, 1) f32


def _const_index_map(ndim):
    return lambda i: (0,) * ndim


def _fused_pallas(x2, prep):
    layers, dmats, mlp = prep["layers"], prep["dmats"], prep["mlp"]
    n_layers = len(layers)
    n = x2.shape[0]
    l_len = mlp["w3"].shape[0]

    operands = [x2]
    for lp in layers:
        operands += [lp["wstk"], lp["wr"], lp["bd"], lp["br"], lp["alpha"]]
    operands += list(dmats)
    operands += [mlp["w1"], mlp["b1"], mlp["w2"], mlp["b2"],
                 mlp["w3"], mlp["b3"]]

    in_specs = [pl.BlockSpec((pl.Squeezed(),) + x2.shape[1:],
                             lambda i: (i, 0, 0))]
    for arr in operands[1:]:
        in_specs.append(pl.BlockSpec(arr.shape, _const_index_map(arr.ndim)))

    # Advisory cost estimate.
    flops = 0
    m = x2.shape[2]
    for l, lp in enumerate(layers):
        c_out, kk = lp["wstk"].shape
        lo = m - HALO
        flops += 2 * c_out * kk * lo + 2 * c_out * (kk // (2 * K2)) * lo
        if l < n_layers - 1:
            dm = dmats[l]
            flops += 2 * c_out * dm.shape[0] * dm.shape[1]
            m = dm.shape[1] // 2
    flops += 2 * sum(int(w.shape[0]) * int(w.shape[1])
                     for w in (mlp["w1"], mlp["w2"], mlp["w3"]))
    flops *= n
    bytes_accessed = sum(int(a.size) * a.dtype.itemsize for a in operands)
    bytes_accessed += n * l_len * 4

    return pl.pallas_call(
        functools.partial(_fused_kernel, n_layers=n_layers),
        out_shape=jax.ShapeDtypeStruct((n, l_len, 1), jnp.float32),
        grid=(n,),
        in_specs=in_specs,
        out_specs=pl.BlockSpec((pl.Squeezed(), l_len, 1), lambda i: (i, 0, 0)),
        compiler_params=pltpu.CompilerParams(
            dimension_semantics=("parallel",)),
        cost_estimate=pl.CostEstimate(flops=int(flops), transcendentals=0,
                                      bytes_accessed=int(bytes_accessed)),
    )(*operands)


def sig2ir_forward(x, prep):
    """Full forward pass; `prep` comes from prepare_params (one-time)."""
    n, c0, length = x.shape
    m0 = length // 2 + HALO
    xb = x.astype(jnp.bfloat16)
    xp = jnp.pad(xb, ((0, 0), (0, 0), (PAD, 2 * m0 - PAD - length)))
    xph = xp.reshape(n, c0, m0, 2)
    x2 = jnp.concatenate([xph[..., 0], xph[..., 1]], axis=1)   # (n, 2c0, m0)
    out = _fused_pallas(x2, prep)                              # (n, l_len, 1)
    return out.reshape(n, 1, out.shape[1])


# ----------------------------------------------------------------------------
# One-time parameter preparation (BN fold, phase-split weight repack,
# deinterleave selection matrices, MLP casts).
# ----------------------------------------------------------------------------
def _deint_matrix(lo):
    """0/1 matrix mapping layer output (len lo) -> next layer's padded
    even/odd phase-split input, laid out as [even (M cols) | odd (M cols)]."""
    m = lo // 2 + HALO
    d = np.zeros((lo, 2 * m), np.float32)
    i = np.arange(m)
    r_even = 2 * i - PAD                    # even phase: out[2i - 7]
    ok = (r_even >= 0) & (r_even < lo)
    d[r_even[ok], i[ok]] = 1.0
    r_odd = 2 * i - (PAD - 1)               # odd phase:  out[2i - 6]
    ok = (r_odd >= 0) & (r_odd < lo)
    d[r_odd[ok], m + i[ok]] = 1.0
    return jnp.asarray(d, dtype=jnp.bfloat16)


def prepare_params(conv_params, mlp_params, x_len):
    # TODO(synk): BatchNorm1d training-mode batch statistics are not computed;
    #             inference-mode running stats are folded into the convs.
    layers = []
    out_lens = []
    length = x_len
    for p in conv_params:
        # TODO(synk): odd intermediate lengths (long 9-layer config) would need
        #             per-layer halo bookkeeping; demo config keeps them even.
        assert length % 2 == 0
        c_out, c_in, _ = p["w_d"].shape
        a_d = p["gamma_d"] * lax.rsqrt(p["var_d"] + BN_EPS)
        a_r = p["gamma_r"] * lax.rsqrt(p["var_r"] + BN_EPS)
        w_ds = p["w_d"] * a_d[:, None, None]                  # (c_out,c_in,15)
        w_e = jnp.transpose(w_ds[:, :, 0::2], (0, 2, 1))      # (c_out,8,c_in)
        w_o = jnp.transpose(w_ds[:, :, 1::2], (0, 2, 1))      # (c_out,7,c_in)
        w_o = jnp.pad(w_o, ((0, 0), (0, 1), (0, 0)))
        wstk = jnp.stack([w_e, w_o], axis=2).reshape(c_out, K2 * 2 * c_in)
        wr = p["w_r"][:, :, 0] * a_r[:, None]
        bd = (a_d * p["b_d"] + p["beta_d"] - a_d * p["mu_d"])[:, None]
        br = (a_r * p["b_r"] + p["beta_r"] - a_r * p["mu_r"])[:, None]
        layers.append(dict(
            wstk=wstk.astype(jnp.bfloat16),
            wr=wr.astype(jnp.bfloat16),
            bd=bd.astype(jnp.float32),
            br=br.astype(jnp.float32),
            alpha=jnp.reshape(p["alpha"], (1, 1)).astype(jnp.float32)))
        length = length // 2
        out_lens.append(length)

    dmats = [_deint_matrix(out_lens[l]) for l in range(len(conv_params) - 1)]

    mlp = dict(
        w1=mlp_params["w1"].astype(jnp.bfloat16),
        b1=jnp.reshape(mlp_params["b1"], (-1, 1)).astype(jnp.float32),
        w2=mlp_params["w2"].astype(jnp.bfloat16),
        b2=jnp.reshape(mlp_params["b2"], (-1, 1)).astype(jnp.float32),
        w3=mlp_params["w3"].astype(jnp.bfloat16),
        b3=jnp.reshape(mlp_params["b3"], (-1, 1)).astype(jnp.float32))
    return dict(layers=layers, dmats=dmats, mlp=mlp)


# ----------------------------------------------------------------------------
# Parameter init (PyTorch-default-style) and pure-JAX reference
# ----------------------------------------------------------------------------
def init_params(key, n_layers, l_len):
    conv_params = []
    c = 1
    keys = jax.random.split(key, n_layers + 1)
    for i in range(n_layers):
        c_out = 2 * c
        ks = jax.random.split(keys[i], 4)
        bound_d = 1.0 / math.sqrt(c * K_DIRECT)
        bound_r = 1.0 / math.sqrt(c)
        conv_params.append(dict(
            w_d=jax.random.uniform(ks[0], (c_out, c, K_DIRECT), jnp.float32,
                                   -bound_d, bound_d),
            b_d=jax.random.uniform(ks[1], (c_out,), jnp.float32,
                                   -bound_d, bound_d),
            w_r=jax.random.uniform(ks[2], (c_out, c, 1), jnp.float32,
                                   -bound_r, bound_r),
            b_r=jax.random.uniform(ks[3], (c_out,), jnp.float32,
                                   -bound_r, bound_r),
            gamma_d=jnp.ones((c_out,), jnp.float32),
            beta_d=jnp.zeros((c_out,), jnp.float32),
            mu_d=jnp.zeros((c_out,), jnp.float32),
            var_d=jnp.ones((c_out,), jnp.float32),
            gamma_r=jnp.ones((c_out,), jnp.float32),
            beta_r=jnp.zeros((c_out,), jnp.float32),
            mu_r=jnp.zeros((c_out,), jnp.float32),
            var_r=jnp.ones((c_out,), jnp.float32),
            alpha=jnp.array(0.25, jnp.float32),      # nn.PReLU() default
        ))
        c = c_out

    km = jax.random.split(keys[-1], 6)

    def _linear(kw, kb, din, dout):
        b = 1.0 / math.sqrt(din)
        return (jax.random.uniform(kw, (dout, din), jnp.float32, -b, b),
                jax.random.uniform(kb, (dout,), jnp.float32, -b, b))

    w1, b1 = _linear(km[0], km[1], c, c)
    w2, b2 = _linear(km[2], km[3], c, c // 2)
    w3, b3 = _linear(km[4], km[5], c // 2, l_len)
    return conv_params, dict(w1=w1, b1=b1, w2=w2, b2=b2, w3=w3, b3=b3)


def _encblock_ref(x, p):
    a_d = p["gamma_d"] * lax.rsqrt(p["var_d"] + BN_EPS)
    a_r = p["gamma_r"] * lax.rsqrt(p["var_r"] + BN_EPS)
    w_d = (p["w_d"] * a_d[:, None, None]).astype(jnp.bfloat16).astype(jnp.float32)
    w_r = (p["w_r"] * a_r[:, None, None]).astype(jnp.bfloat16).astype(jnp.float32)
    bd = a_d * p["b_d"] + p["beta_d"] - a_d * p["mu_d"]
    br = a_r * p["b_r"] + p["beta_r"] - a_r * p["mu_r"]
    xb = x.astype(jnp.bfloat16).astype(jnp.float32)
    y = lax.conv_general_dilated(xb, w_d, (STRIDE,), [(PAD, PAD)],
                                 dimension_numbers=("NCH", "OIH", "NCH"))
    y = y + bd[None, :, None]
    y = jnp.where(y >= 0.0, y, p["alpha"] * y)
    r = lax.conv_general_dilated(xb, w_r, (STRIDE,), [(0, 0)],
                                 dimension_numbers=("NCH", "OIH", "NCH"))
    return y + r + br[None, :, None]


def _head_ref(x, mlp):
    h = jnp.mean(x, axis=-1)
    for wn, bn in (("w1", "b1"), ("w2", "b2"), ("w3", "b3")):
        w = mlp[wn].astype(jnp.bfloat16).astype(jnp.float32)
        h = h.astype(jnp.bfloat16).astype(jnp.float32) @ w.T + mlp[bn]
    return h[:, None, :]


def sig2ir_reference(x, conv_params, mlp_params):
    for p in conv_params:
        x = _encblock_ref(x, p)
    return _head_ref(x, mlp_params)


# ----------------------------------------------------------------------------
# Main
# ----------------------------------------------------------------------------
if __name__ == "__main__":
    key = jax.random.PRNGKey(0)
    k_param, k_x = jax.random.split(key)

    # Small config consistent with sig2ir_encoder: 4 EncBlocks (channels
    # 1 -> 16), input length 2048, MLP output l_len = 32, batch = 2.
    n_layers, x_len, l_len, batch = 4, 2048, 32, 2

    conv_params, mlp_params = init_params(k_param, n_layers, l_len)
    x = jax.random.normal(k_x, (batch, 1, x_len), dtype=jnp.float32)

    prep = prepare_params(conv_params, mlp_params, x_len)   # one-time prep
    fwd = jax.jit(sig2ir_forward)
    out = jax.block_until_ready(fwd(x, prep))

    ref = sig2ir_reference(x, conv_params, mlp_params)
    assert out.shape == (batch, 1, l_len), out.shape
    assert bool(jnp.all(jnp.isfinite(out)))
    assert jnp.allclose(out, ref, atol=3e-2, rtol=3e-2), float(
        jnp.max(jnp.abs(out - ref)))
    print("KERNEL_OK")
</pallas_src>

<mosaic_0001>
module attributes {stable_mosaic.version = 11 : i64} {
  func.func @_fused_kernel(%arg0: i32, %arg1: memref<1x2x1031xbf16, #tpu.memory_space<vmem>>, %arg2: memref<2x16xbf16, #tpu.memory_space<vmem>>, %arg3: memref<2x1xbf16, #tpu.memory_space<vmem>>, %arg4: memref<2x1xf32, #tpu.memory_space<vmem>>, %arg5: memref<2x1xf32, #tpu.memory_space<vmem>>, %arg6: memref<1x1xf32, #tpu.memory_space<vmem>>, %arg7: memref<4x32xbf16, #tpu.memory_space<vmem>>, %arg8: memref<4x2xbf16, #tpu.memory_space<vmem>>, %arg9: memref<4x1xf32, #tpu.memory_space<vmem>>, %arg10: memref<4x1xf32, #tpu.memory_space<vmem>>, %arg11: memref<1x1xf32, #tpu.memory_space<vmem>>, %arg12: memref<8x64xbf16, #tpu.memory_space<vmem>>, %arg13: memref<8x4xbf16, #tpu.memory_space<vmem>>, %arg14: memref<8x1xf32, #tpu.memory_space<vmem>>, %arg15: memref<8x1xf32, #tpu.memory_space<vmem>>, %arg16: memref<1x1xf32, #tpu.memory_space<vmem>>, %arg17: memref<16x128xbf16, #tpu.memory_space<vmem>>, %arg18: memref<16x8xbf16, #tpu.memory_space<vmem>>, %arg19: memref<16x1xf32, #tpu.memory_space<vmem>>, %arg20: memref<16x1xf32, #tpu.memory_space<vmem>>, %arg21: memref<1x1xf32, #tpu.memory_space<vmem>>, %arg22: memref<1024x1038xbf16, #tpu.memory_space<vmem>>, %arg23: memref<512x526xbf16, #tpu.memory_space<vmem>>, %arg24: memref<256x270xbf16, #tpu.memory_space<vmem>>, %arg25: memref<16x16xbf16, #tpu.memory_space<vmem>>, %arg26: memref<16x1xf32, #tpu.memory_space<vmem>>, %arg27: memref<8x16xbf16, #tpu.memory_space<vmem>>, %arg28: memref<8x1xf32, #tpu.memory_space<vmem>>, %arg29: memref<32x8xbf16, #tpu.memory_space<vmem>>, %arg30: memref<32x1xf32, #tpu.memory_space<vmem>>, %arg31: memref<1x32x1xf32, #tpu.memory_space<vmem>>) attributes {dimension_semantics = [#tpu.dimension_semantics<parallel>], iteration_bounds = array<i64: 2>, scalar_prefetch = 0 : i64, scratch_operands = 0 : i64, tpu.core_type = #tpu.core_type<tc>, window_params = [{transform_indices = @transform_0, window_bounds = array<i64: 1, 2, 1031>}, {pipeline_mode = #tpu.pipeline_mode<synchronous>, transform_indices = @transform_1, window_bounds = array<i64: 2, 16>}, {pipeline_mode = #tpu.pipeline_mode<synchronous>, transform_indices = @transform_2, window_bounds = array<i64: 2, 1>}, {pipeline_mode = #tpu.pipeline_mode<synchronous>, transform_indices = @transform_3, window_bounds = array<i64: 2, 1>}, {pipeline_mode = #tpu.pipeline_mode<synchronous>, transform_indices = @transform_4, window_bounds = array<i64: 2, 1>}, {pipeline_mode = #tpu.pipeline_mode<synchronous>, transform_indices = @transform_5, window_bounds = array<i64: 1, 1>}, {pipeline_mode = #tpu.pipeline_mode<synchronous>, transform_indices = @transform_6, window_bounds = array<i64: 4, 32>}, {pipeline_mode = #tpu.pipeline_mode<synchronous>, transform_indices = @transform_7, window_bounds = array<i64: 4, 2>}, {pipeline_mode = #tpu.pipeline_mode<synchronous>, transform_indices = @transform_8, window_bounds = array<i64: 4, 1>}, {pipeline_mode = #tpu.pipeline_mode<synchronous>, transform_indices = @transform_9, window_bounds = array<i64: 4, 1>}, {pipeline_mode = #tpu.pipeline_mode<synchronous>, transform_indices = @transform_10, window_bounds = array<i64: 1, 1>}, {pipeline_mode = #tpu.pipeline_mode<synchronous>, transform_indices = @transform_11, window_bounds = array<i64: 8, 64>}, {pipeline_mode = #tpu.pipeline_mode<synchronous>, transform_indices = @transform_12, window_bounds = array<i64: 8, 4>}, {pipeline_mode = #tpu.pipeline_mode<synchronous>, transform_indices = @transform_13, window_bounds = array<i64: 8, 1>}, {pipeline_mode = #tpu.pipeline_mode<synchronous>, transform_indices = @transform_14, window_bounds = array<i64: 8, 1>}, {pipeline_mode = #tpu.pipeline_mode<synchronous>, transform_indices = @transform_15, window_bounds = array<i64: 1, 1>}, {pipeline_mode = #tpu.pipeline_mode<synchronous>, transform_indices = @transform_16, window_bounds = array<i64: 16, 128>}, {pipeline_mode = #tpu.pipeline_mode<synchronous>, transform_indices = @transform_17, window_bounds = array<i64: 16, 8>}, {pipeline_mode = #tpu.pipeline_mode<synchronous>, transform_indices = @transform_18, window_bounds = array<i64: 16, 1>}, {pipeline_mode = #tpu.pipeline_mode<synchronous>, transform_indices = @transform_19, window_bounds = array<i64: 16, 1>}, {pipeline_mode = #tpu.pipeline_mode<synchronous>, transform_indices = @transform_20, window_bounds = array<i64: 1, 1>}, {pipeline_mode = #tpu.pipeline_mode<synchronous>, transform_indices = @transform_21, window_bounds = array<i64: 1024, 1038>}, {pipeline_mode = #tpu.pipeline_mode<synchronous>, transform_indices = @transform_22, window_bounds = array<i64: 512, 526>}, {pipeline_mode = #tpu.pipeline_mode<synchronous>, transform_indices = @transform_23, window_bounds = array<i64: 256, 270>}, {pipeline_mode = #tpu.pipeline_mode<synchronous>, transform_indices = @transform_24, window_bounds = array<i64: 16, 16>}, {pipeline_mode = #tpu.pipeline_mode<synchronous>, transform_indices = @transform_25, window_bounds = array<i64: 16, 1>}, {pipeline_mode = #tpu.pipeline_mode<synchronous>, transform_indices = @transform_26, window_bounds = array<i64: 8, 16>}, {pipeline_mode = #tpu.pipeline_mode<synchronous>, transform_indices = @transform_27, window_bounds = array<i64: 8, 1>}, {pipeline_mode = #tpu.pipeline_mode<synchronous>, transform_indices = @transform_28, window_bounds = array<i64: 32, 8>}, {pipeline_mode = #tpu.pipeline_mode<synchronous>, transform_indices = @transform_29, window_bounds = array<i64: 32, 1>}, {transform_indices = @transform_30, window_bounds = array<i64: 1, 32, 1>}]} {
    %c0 = arith.constant 0 : index
    %c0_0 = arith.constant 0 : index
    %c0_1 = arith.constant 0 : index
    %0 = vector.load %arg1[%c0, %c0_0, %c0_1] : memref<1x2x1031xbf16, #tpu.memory_space<vmem>>, vector<1x2x1031xbf16>
    %1 = vector.shape_cast %0 : vector<1x2x1031xbf16> to vector<2x1031xbf16>
    %c0_2 = arith.constant 0 : index
    %c0_3 = arith.constant 0 : index
    %2 = vector.load %arg2[%c0_2, %c0_3] : memref<2x16xbf16, #tpu.memory_space<vmem>>, vector<2x16xbf16>
    %c0_4 = arith.constant 0 : index
    %c0_5 = arith.constant 0 : index
    %3 = vector.load %arg3[%c0_4, %c0_5] : memref<2x1xbf16, #tpu.memory_space<vmem>>, vector<2x1xbf16>
    %c0_6 = arith.constant 0 : index
    %c0_7 = arith.constant 0 : index
    %4 = vector.load %arg4[%c0_6, %c0_7] : memref<2x1xf32, #tpu.memory_space<vmem>>, vector<2x1xf32>
    %c0_8 = arith.constant 0 : index
    %c0_9 = arith.constant 0 : index
    %5 = vector.load %arg5[%c0_8, %c0_9] : memref<2x1xf32, #tpu.memory_space<vmem>>, vector<2x1xf32>
    %c0_10 = arith.constant 0 : index
    %c0_11 = arith.constant 0 : index
    %6 = vector.load %arg6[%c0_10, %c0_11] : memref<1x1xf32, #tpu.memory_space<vmem>>, vector<1x1xf32>
    %7 = vector.extract_strided_slice %1 {offsets = [0, 0], sizes = [2, 1024], strides = [1, 1]} : vector<2x1031xbf16> to vector<2x1024xbf16>
    %8 = vector.extract_strided_slice %1 {offsets = [0, 1], sizes = [2, 1024], strides = [1, 1]} : vector<2x1031xbf16> to vector<2x1024xbf16>
    %9 = vector.extract_strided_slice %1 {offsets = [0, 2], sizes = [2, 1024], strides = [1, 1]} : vector<2x1031xbf16> to vector<2x1024xbf16>
    %10 = vector.extract_strided_slice %1 {offsets = [0, 3], sizes = [2, 1024], strides = [1, 1]} : vector<2x1031xbf16> to vector<2x1024xbf16>
    %11 = vector.extract_strided_slice %1 {offsets = [0, 4], sizes = [2, 1024], strides = [1, 1]} : vector<2x1031xbf16> to vector<2x1024xbf16>
    %12 = vector.extract_strided_slice %1 {offsets = [0, 5], sizes = [2, 1024], strides = [1, 1]} : vector<2x1031xbf16> to vector<2x1024xbf16>
    %13 = vector.extract_strided_slice %1 {offsets = [0, 6], sizes = [2, 1024], strides = [1, 1]} : vector<2x1031xbf16> to vector<2x1024xbf16>
    %14 = vector.extract_strided_slice %1 {offsets = [0, 7], sizes = [2, 1024], strides = [1, 1]} : vector<2x1031xbf16> to vector<2x1024xbf16>
    %15 = tpu.concatenate %7, %8, %9, %10, %11, %12, %13, %14 in 0 : vector<2x1024xbf16>, vector<2x1024xbf16>, vector<2x1024xbf16>, vector<2x1024xbf16>, vector<2x1024xbf16>, vector<2x1024xbf16>, vector<2x1024xbf16>, vector<2x1024xbf16> -> vector<16x1024xbf16>
    %cst = arith.constant dense<0.000000e+00> : vector<2x1024xf32>
    %16 = tpu.matmul %2, %15, %cst {dimension_numbers = #tpu.dot_dimension_numbers<[1], [0], [0], [1], [0, 0, 1, 1], [], []>} : vector<2x16xbf16>, vector<16x1024xbf16>, vector<2x1024xf32> -> vector<2x1024xf32>
    %17 = vector.broadcast %4 : vector<2x1xf32> to vector<2x1024xf32>
    %18 = arith.addf %16, %17 : vector<2x1024xf32>
    %cst_12 = arith.constant 0.000000e+00 : f32
    %19 = vector.broadcast %cst_12 : f32 to vector<2x1024xf32>
    %20 = arith.cmpf oge, %18, %19 : vector<2x1024xf32>
    %21 = vector.broadcast %6 : vector<1x1xf32> to vector<2x1024xf32>
    %22 = arith.mulf %21, %18 : vector<2x1024xf32>
    %23 = arith.select %20, %18, %22 : vector<2x1024xi1>, vector<2x1024xf32>
    %24 = vector.extract_strided_slice %1 {offsets = [1, 3], sizes = [1, 1024], strides = [1, 1]} : vector<2x1031xbf16> to vector<1x1024xbf16>
    %cst_13 = arith.constant dense<0.000000e+00> : vector<2x1024xf32>
    %25 = tpu.matmul %3, %24, %cst_13 {dimension_numbers = #tpu.dot_dimension_numbers<[1], [0], [0], [1], [0, 0, 1, 1], [], []>} : vector<2x1xbf16>, vector<1x1024xbf16>, vector<2x1024xf32> -> vector<2x1024xf32>
    %26 = arith.addf %23, %25 : vector<2x1024xf32>
    %27 = vector.broadcast %5 : vector<2x1xf32> to vector<2x1024xf32>
    %28 = arith.addf %26, %27 : vector<2x1024xf32>
    %c0_14 = arith.constant 0 : index
    %c0_15 = arith.constant 0 : index
    %29 = vector.load %arg22[%c0_14, %c0_15] : memref<1024x1038xbf16, #tpu.memory_space<vmem>>, vector<1024x1038xbf16>
    %30 = arith.truncf %28 : vector<2x1024xf32> to vector<2x1024xbf16>
    %cst_16 = arith.constant dense<0.000000e+00> : vector<2x1038xf32>
    %31 = tpu.matmul %30, %29, %cst_16 {dimension_numbers = #tpu.dot_dimension_numbers<[1], [0], [0], [1], [0, 0, 1, 1], [], []>} : vector<2x1024xbf16>, vector<1024x1038xbf16>, vector<2x1038xf32> -> vector<2x1038xf32>
    %32 = vector.extract_strided_slice %31 {offsets = [0, 0], sizes = [2, 519], strides = [1, 1]} : vector<2x1038xf32> to vector<2x519xf32>
    %33 = arith.truncf %32 : vector<2x519xf32> to vector<2x519xbf16>
    %34 = vector.extract_strided_slice %31 {offsets = [0, 519], sizes = [2, 519], strides = [1, 1]} : vector<2x1038xf32> to vector<2x519xf32>
    %35 = arith.truncf %34 : vector<2x519xf32> to vector<2x519xbf16>
    %36 = tpu.concatenate %33, %35 in 0 : vector<2x519xbf16>, vector<2x519xbf16> -> vector<4x519xbf16>
    %c0_17 = arith.constant 0 : index
    %c0_18 = arith.constant 0 : index
    %37 = vector.load %arg7[%c0_17, %c0_18] : memref<4x32xbf16, #tpu.memory_space<vmem>>, vector<4x32xbf16>
    %c0_19 = arith.constant 0 : index
    %c0_20 = arith.constant 0 : index
    %38 = vector.load %arg8[%c0_19, %c0_20] : memref<4x2xbf16, #tpu.memory_space<vmem>>, vector<4x2xbf16>
    %c0_21 = arith.constant 0 : index
    %c0_22 = arith.constant 0 : index
    %39 = vector.load %arg9[%c0_21, %c0_22] : memref<4x1xf32, #tpu.memory_space<vmem>>, vector<4x1xf32>
    %c0_23 = arith.constant 0 : index
    %c0_24 = arith.constant 0 : index
    %40 = vector.load %arg10[%c0_23, %c0_24] : memref<4x1xf32, #tpu.memory_space<vmem>>, vector<4x1xf32>
    %c0_25 = arith.constant 0 : index
    %c0_26 = arith.constant 0 : index
    %41 = vector.load %arg11[%c0_25, %c0_26] : memref<1x1xf32, #tpu.memory_space<vmem>>, vector<1x1xf32>
    %42 = vector.extract_strided_slice %36 {offsets = [0, 0], sizes = [4, 512], strides = [1, 1]} : vector<4x519xbf16> to vector<4x512xbf16>
    %43 = vector.extract_strided_slice %36 {offsets = [0, 1], sizes = [4, 512], strides = [1, 1]} : vector<4x519xbf16> to vector<4x512xbf16>
    %44 = vector.extract_strided_slice %36 {offsets = [0, 2], sizes = [4, 512], strides = [1, 1]} : vector<4x519xbf16> to vector<4x512xbf16>
    %45 = vector.extract_strided_slice %36 {offsets = [0, 3], sizes = [4, 512], strides = [1, 1]} : vector<4x519xbf16> to vector<4x512xbf16>
    %46 = vector.extract_strided_slice %36 {offsets = [0, 4], sizes = [4, 512], strides = [1, 1]} : vector<4x519xbf16> to vector<4x512xbf16>
    %47 = vector.extract_strided_slice %36 {offsets = [0, 5], sizes = [4, 512], strides = [1, 1]} : vector<4x519xbf16> to vector<4x512xbf16>
    %48 = vector.extract_strided_slice %36 {offsets = [0, 6], sizes = [4, 512], strides = [1, 1]} : vector<4x519xbf16> to vector<4x512xbf16>
    %49 = vector.extract_strided_slice %36 {offsets = [0, 7], sizes = [4, 512], strides = [1, 1]} : vector<4x519xbf16> to vector<4x512xbf16>
    %50 = tpu.concatenate %42, %43, %44, %45, %46, %47, %48, %49 in 0 : vector<4x512xbf16>, vector<4x512xbf16>, vector<4x512xbf16>, vector<4x512xbf16>, vector<4x512xbf16>, vector<4x512xbf16>, vector<4x512xbf16>, vector<4x512xbf16> -> vector<32x512xbf16>
    %cst_27 = arith.constant dense<0.000000e+00> : vector<4x512xf32>
    %51 = tpu.matmul %37, %50, %cst_27 {dimension_numbers = #tpu.dot_dimension_numbers<[1], [0], [0], [1], [0, 0, 1, 1], [], []>} : vector<4x32xbf16>, vector<32x512xbf16>, vector<4x512xf32> -> vector<4x512xf32>
    %52 = vector.broadcast %39 : vector<4x1xf32> to vector<4x512xf32>
    %53 = arith.addf %51, %52 : vector<4x512xf32>
    %cst_28 = arith.constant 0.000000e+00 : f32
    %54 = vector.broadcast %cst_28 : f32 to vector<4x512xf32>
    %55 = arith.cmpf oge, %53, %54 : vector<4x512xf32>
    %56 = vector.broadcast %41 : vector<1x1xf32> to vector<4x512xf32>
    %57 = arith.mulf %56, %53 : vector<4x512xf32>
    %58 = arith.select %55, %53, %57 : vector<4x512xi1>, vector<4x512xf32>
    %59 = vector.extract_strided_slice %36 {offsets = [2, 3], sizes = [2, 512], strides = [1, 1]} : vector<4x519xbf16> to vector<2x512xbf16>
    %cst_29 = arith.constant dense<0.000000e+00> : vector<4x512xf32>
    %60 = tpu.matmul %38, %59, %cst_29 {dimension_numbers = #tpu.dot_dimension_numbers<[1], [0], [0], [1], [0, 0, 1, 1], [], []>} : vector<4x2xbf16>, vector<2x512xbf16>, vector<4x512xf32> -> vector<4x512xf32>
    %61 = arith.addf %58, %60 : vector<4x512xf32>
    %62 = vector.broadcast %40 : vector<4x1xf32> to vector<4x512xf32>
    %63 = arith.addf %61, %62 : vector<4x512xf32>
    %c0_30 = arith.constant 0 : index
    %c0_31 = arith.constant 0 : index
    %64 = vector.load %arg23[%c0_30, %c0_31] : memref<512x526xbf16, #tpu.memory_space<vmem>>, vector<512x526xbf16>
    %65 = arith.truncf %63 : vector<4x512xf32> to vector<4x512xbf16>
    %cst_32 = arith.constant dense<0.000000e+00> : vector<4x526xf32>
    %66 = tpu.matmul %65, %64, %cst_32 {dimension_numbers = #tpu.dot_dimension_numbers<[1], [0], [0], [1], [0, 0, 1, 1], [], []>} : vector<4x512xbf16>, vector<512x526xbf16>, vector<4x526xf32> -> vector<4x526xf32>
    %67 = vector.extract_strided_slice %66 {offsets = [0, 0], sizes = [4, 263], strides = [1, 1]} : vector<4x526xf32> to vector<4x263xf32>
    %68 = arith.truncf %67 : vector<4x263xf32> to vector<4x263xbf16>
    %69 = vector.extract_strided_slice %66 {offsets = [0, 263], sizes = [4, 263], strides = [1, 1]} : vector<4x526xf32> to vector<4x263xf32>
    %70 = arith.truncf %69 : vector<4x263xf32> to vector<4x263xbf16>
    %71 = tpu.concatenate %68, %70 in 0 : vector<4x263xbf16>, vector<4x263xbf16> -> vector<8x263xbf16>
    %c0_33 = arith.constant 0 : index
    %c0_34 = arith.constant 0 : index
    %72 = vector.load %arg12[%c0_33, %c0_34] : memref<8x64xbf16, #tpu.memory_space<vmem>>, vector<8x64xbf16>
    %c0_35 = arith.constant 0 : index
    %c0_36 = arith.constant 0 : index
    %73 = vector.load %arg13[%c0_35, %c0_36] : memref<8x4xbf16, #tpu.memory_space<vmem>>, vector<8x4xbf16>
    %c0_37 = arith.constant 0 : index
    %c0_38 = arith.constant 0 : index
    %74 = vector.load %arg14[%c0_37, %c0_38] : memref<8x1xf32, #tpu.memory_space<vmem>>, vector<8x1xf32>
    %c0_39 = arith.constant 0 : index
    %c0_40 = arith.constant 0 : index
    %75 = vector.load %arg15[%c0_39, %c0_40] : memref<8x1xf32, #tpu.memory_space<vmem>>, vector<8x1xf32>
    %c0_41 = arith.constant 0 : index
    %c0_42 = arith.constant 0 : index
    %76 = vector.load %arg16[%c0_41, %c0_42] : memref<1x1xf32, #tpu.memory_space<vmem>>, vector<1x1xf32>
    %77 = vector.extract_strided_slice %71 {offsets = [0, 0], sizes = [8, 256], strides = [1, 1]} : vector<8x263xbf16> to vector<8x256xbf16>
    %78 = vector.extract_strided_slice %71 {offsets = [0, 1], sizes = [8, 256], strides = [1, 1]} : vector<8x263xbf16> to vector<8x256xbf16>
    %79 = vector.extract_strided_slice %71 {offsets = [0, 2], sizes = [8, 256], strides = [1, 1]} : vector<8x263xbf16> to vector<8x256xbf16>
    %80 = vector.extract_strided_slice %71 {offsets = [0, 3], sizes = [8, 256], strides = [1, 1]} : vector<8x263xbf16> to vector<8x256xbf16>
    %81 = vector.extract_strided_slice %71 {offsets = [0, 4], sizes = [8, 256], strides = [1, 1]} : vector<8x263xbf16> to vector<8x256xbf16>
    %82 = vector.extract_strided_slice %71 {offsets = [0, 5], sizes = [8, 256], strides = [1, 1]} : vector<8x263xbf16> to vector<8x256xbf16>
    %83 = vector.extract_strided_slice %71 {offsets = [0, 6], sizes = [8, 256], strides = [1, 1]} : vector<8x263xbf16> to vector<8x256xbf16>
    %84 = vector.extract_strided_slice %71 {offsets = [0, 7], sizes = [8, 256], strides = [1, 1]} : vector<8x263xbf16> to vector<8x256xbf16>
    %85 = tpu.concatenate %77, %78, %79, %80, %81, %82, %83, %84 in 0 : vector<8x256xbf16>, vector<8x256xbf16>, vector<8x256xbf16>, vector<8x256xbf16>, vector<8x256xbf16>, vector<8x256xbf16>, vector<8x256xbf16>, vector<8x256xbf16> -> vector<64x256xbf16>
    %cst_43 = arith.constant dense<0.000000e+00> : vector<8x256xf32>
    %86 = tpu.matmul %72, %85, %cst_43 {dimension_numbers = #tpu.dot_dimension_numbers<[1], [0], [0], [1], [0, 0, 1, 1], [], []>} : vector<8x64xbf16>, vector<64x256xbf16>, vector<8x256xf32> -> vector<8x256xf32>
    %87 = vector.broadcast %74 : vector<8x1xf32> to vector<8x256xf32>
    %88 = arith.addf %86, %87 : vector<8x256xf32>
    %cst_44 = arith.constant 0.000000e+00 : f32
    %89 = vector.broadcast %cst_44 : f32 to vector<8x256xf32>
    %90 = arith.cmpf oge, %88, %89 : vector<8x256xf32>
    %91 = vector.broadcast %76 : vector<1x1xf32> to vector<8x256xf32>
    %92 = arith.mulf %91, %88 : vector<8x256xf32>
    %93 = arith.select %90, %88, %92 : vector<8x256xi1>, vector<8x256xf32>
    %94 = vector.extract_strided_slice %71 {offsets = [4, 3], sizes = [4, 256], strides = [1, 1]} : vector<8x263xbf16> to vector<4x256xbf16>
    %cst_45 = arith.constant dense<0.000000e+00> : vector<8x256xf32>
    %95 = tpu.matmul %73, %94, %cst_45 {dimension_numbers = #tpu.dot_dimension_numbers<[1], [0], [0], [1], [0, 0, 1, 1], [], []>} : vector<8x4xbf16>, vector<4x256xbf16>, vector<8x256xf32> -> vector<8x256xf32>
    %96 = arith.addf %93, %95 : vector<8x256xf32>
    %97 = vector.broadcast %75 : vector<8x1xf32> to vector<8x256xf32>
    %98 = arith.addf %96, %97 : vector<8x256xf32>
    %c0_46 = arith.constant 0 : index
    %c0_47 = arith.constant 0 : index
    %99 = vector.load %arg24[%c0_46, %c0_47] : memref<256x270xbf16, #tpu.memory_space<vmem>>, vector<256x270xbf16>
    %100 = arith.truncf %98 : vector<8x256xf32> to vector<8x256xbf16>
    %cst_48 = arith.constant dense<0.000000e+00> : vector<8x270xf32>
    %101 = tpu.matmul %100, %99, %cst_48 {dimension_numbers = #tpu.dot_dimension_numbers<[1], [0], [0], [1], [0, 0, 1, 1], [], []>} : vector<8x256xbf16>, vector<256x270xbf16>, vector<8x270xf32> -> vector<8x270xf32>
    %102 = vector.extract_strided_slice %101 {offsets = [0, 0], sizes = [8, 135], strides = [1, 1]} : vector<8x270xf32> to vector<8x135xf32>
    %103 = arith.truncf %102 : vector<8x135xf32> to vector<8x135xbf16>
    %104 = vector.extract_strided_slice %101 {offsets = [0, 135], sizes = [8, 135], strides = [1, 1]} : vector<8x270xf32> to vector<8x135xf32>
    %105 = arith.truncf %104 : vector<8x135xf32> to vector<8x135xbf16>
    %106 = tpu.concatenate %103, %105 in 0 : vector<8x135xbf16>, vector<8x135xbf16> -> vector<16x135xbf16>
    %c0_49 = arith.constant 0 : index
    %c0_50 = arith.constant 0 : index
    %107 = vector.load %arg17[%c0_49, %c0_50] : memref<16x128xbf16, #tpu.memory_space<vmem>>, vector<16x128xbf16>
    %c0_51 = arith.constant 0 : index
    %c0_52 = arith.constant 0 : index
    %108 = vector.load %arg18[%c0_51, %c0_52] : memref<16x8xbf16, #tpu.memory_space<vmem>>, vector<16x8xbf16>
    %c0_53 = arith.constant 0 : index
    %c0_54 = arith.constant 0 : index
    %109 = vector.load %arg19[%c0_53, %c0_54] : memref<16x1xf32, #tpu.memory_space<vmem>>, vector<16x1xf32>
    %c0_55 = arith.constant 0 : index
    %c0_56 = arith.constant 0 : index
    %110 = vector.load %arg20[%c0_55, %c0_56] : memref<16x1xf32, #tpu.memory_space<vmem>>, vector<16x1xf32>
    %c0_57 = arith.constant 0 : index
    %c0_58 = arith.constant 0 : index
    %111 = vector.load %arg21[%c0_57, %c0_58] : memref<1x1xf32, #tpu.memory_space<vmem>>, vector<1x1xf32>
    %112 = vector.extract_strided_slice %106 {offsets = [0, 0], sizes = [16, 128], strides = [1, 1]} : vector<16x135xbf16> to vector<16x128xbf16>
    %113 = vector.extract_strided_slice %106 {offsets = [0, 1], sizes = [16, 128], strides = [1, 1]} : vector<16x135xbf16> to vector<16x128xbf16>
    %114 = vector.extract_strided_slice %106 {offsets = [0, 2], sizes = [16, 128], strides = [1, 1]} : vector<16x135xbf16> to vector<16x128xbf16>
    %115 = vector.extract_strided_slice %106 {offsets = [0, 3], sizes = [16, 128], strides = [1, 1]} : vector<16x135xbf16> to vector<16x128xbf16>
    %116 = vector.extract_strided_slice %106 {offsets = [0, 4], sizes = [16, 128], strides = [1, 1]} : vector<16x135xbf16> to vector<16x128xbf16>
    %117 = vector.extract_strided_slice %106 {offsets = [0, 5], sizes = [16, 128], strides = [1, 1]} : vector<16x135xbf16> to vector<16x128xbf16>
    %118 = vector.extract_strided_slice %106 {offsets = [0, 6], sizes = [16, 128], strides = [1, 1]} : vector<16x135xbf16> to vector<16x128xbf16>
    %119 = vector.extract_strided_slice %106 {offsets = [0, 7], sizes = [16, 128], strides = [1, 1]} : vector<16x135xbf16> to vector<16x128xbf16>
    %120 = tpu.concatenate %112, %113, %114, %115, %116, %117, %118, %119 in 0 : vector<16x128xbf16>, vector<16x128xbf16>, vector<16x128xbf16>, vector<16x128xbf16>, vector<16x128xbf16>, vector<16x128xbf16>, vector<16x128xbf16>, vector<16x128xbf16> -> vector<128x128xbf16>
    %cst_59 = arith.constant dense<0.000000e+00> : vector<16x128xf32>
    %121 = tpu.matmul %107, %120, %cst_59 {dimension_numbers = #tpu.dot_dimension_numbers<[1], [0], [0], [1], [0, 0, 1, 1], [], []>} : vector<16x128xbf16>, vector<128x128xbf16>, vector<16x128xf32> -> vector<16x128xf32>
    %122 = vector.broadcast %109 : vector<16x1xf32> to vector<16x128xf32>
    %123 = arith.addf %121, %122 : vector<16x128xf32>
    %cst_60 = arith.constant 0.000000e+00 : f32
    %124 = vector.broadcast %cst_60 : f32 to vector<16x128xf32>
    %125 = arith.cmpf oge, %123, %124 : vector<16x128xf32>
    %126 = vector.broadcast %111 : vector<1x1xf32> to vector<16x128xf32>
    %127 = arith.mulf %126, %123 : vector<16x128xf32>
    %128 = arith.select %125, %123, %127 : vector<16x128xi1>, vector<16x128xf32>
    %129 = vector.extract_strided_slice %106 {offsets = [8, 3], sizes = [8, 128], strides = [1, 1]} : vector<16x135xbf16> to vector<8x128xbf16>
    %cst_61 = arith.constant dense<0.000000e+00> : vector<16x128xf32>
    %130 = tpu.matmul %108, %129, %cst_61 {dimension_numbers = #tpu.dot_dimension_numbers<[1], [0], [0], [1], [0, 0, 1, 1], [], []>} : vector<16x8xbf16>, vector<8x128xbf16>, vector<16x128xf32> -> vector<16x128xf32>
    %131 = arith.addf %128, %130 : vector<16x128xf32>
    %132 = vector.broadcast %110 : vector<16x1xf32> to vector<16x128xf32>
    %133 = arith.addf %131, %132 : vector<16x128xf32>
    %cst_62 = arith.constant dense<0.000000e+00> : vector<16xf32>
    %134 = vector.multi_reduction <add>, %133, %cst_62 [1] : vector<16x128xf32> to vector<16xf32>
    %135 = vector.shape_cast %134 : vector<16xf32> to vector<16x1xf32>
    %cst_63 = arith.constant 7.812500e-03 : f32
    %136 = vector.broadcast %cst_63 : f32 to vector<16x1xf32>
    %137 = arith.mulf %135, %136 : vector<16x1xf32>
    %138 = arith.truncf %137 : vector<16x1xf32> to vector<16x1xbf16>
    %c0_64 = arith.constant 0 : index
    %c0_65 = arith.constant 0 : index
    %139 = vector.load %arg25[%c0_64, %c0_65] : memref<16x16xbf16, #tpu.memory_space<vmem>>, vector<16x16xbf16>
    %cst_66 = arith.constant dense<0.000000e+00> : vector<16x1xf32>
    %140 = tpu.matmul %139, %138, %cst_66 {dimension_numbers = #tpu.dot_dimension_numbers<[1], [0], [0], [1], [0, 0, 1, 1], [], []>} : vector<16x16xbf16>, vector<16x1xbf16>, vector<16x1xf32> -> vector<16x1xf32>
    %c0_67 = arith.constant 0 : index
    %c0_68 = arith.constant 0 : index
    %141 = vector.load %arg26[%c0_67, %c0_68] : memref<16x1xf32, #tpu.memory_space<vmem>>, vector<16x1xf32>
    %142 = arith.addf %140, %141 : vector<16x1xf32>
    %c0_69 = arith.constant 0 : index
    %c0_70 = arith.constant 0 : index
    %143 = vector.load %arg27[%c0_69, %c0_70] : memref<8x16xbf16, #tpu.memory_space<vmem>>, vector<8x16xbf16>
    %144 = arith.truncf %142 : vector<16x1xf32> to vector<16x1xbf16>
    %cst_71 = arith.constant dense<0.000000e+00> : vector<8x1xf32>
    %145 = tpu.matmul %143, %144, %cst_71 {dimension_numbers = #tpu.dot_dimension_numbers<[1], [0], [0], [1], [0, 0, 1, 1], [], []>} : vector<8x16xbf16>, vector<16x1xbf16>, vector<8x1xf32> -> vector<8x1xf32>
    %c0_72 = arith.constant 0 : index
    %c0_73 = arith.constant 0 : index
    %146 = vector.load %arg28[%c0_72, %c0_73] : memref<8x1xf32, #tpu.memory_space<vmem>>, vector<8x1xf32>
    %147 = arith.addf %145, %146 : vector<8x1xf32>
    %c0_74 = arith.constant 0 : index
    %c0_75 = arith.constant 0 : index
    %148 = vector.load %arg29[%c0_74, %c0_75] : memref<32x8xbf16, #tpu.memory_space<vmem>>, vector<32x8xbf16>
    %149 = arith.truncf %147 : vector<8x1xf32> to vector<8x1xbf16>
    %cst_76 = arith.constant dense<0.000000e+00> : vector<32x1xf32>
    %150 = tpu.matmul %148, %149, %cst_76 {dimension_numbers = #tpu.dot_dimension_numbers<[1], [0], [0], [1], [0, 0, 1, 1], [], []>} : vector<32x8xbf16>, vector<8x1xbf16>, vector<32x1xf32> -> vector<32x1xf32>
    %c0_77 = arith.constant 0 : index
    %c0_78 = arith.constant 0 : index
    %151 = vector.load %arg30[%c0_77, %c0_78] : memref<32x1xf32, #tpu.memory_space<vmem>>, vector<32x1xf32>
    %152 = arith.addf %150, %151 : vector<32x1xf32>
    %c0_79 = arith.constant 0 : index
    %c0_80 = arith.constant 0 : index
    %c0_81 = arith.constant 0 : index
    %153 = vector.load %arg31[%c0_79, %c0_80, %c0_81] : memref<1x32x1xf32, #tpu.memory_space<vmem>>, vector<1x32x1xf32>
    %154 = vector.shape_cast %153 : vector<1x32x1xf32> to vector<32x1xf32>
    %155 = vector.shape_cast %152 : vector<32x1xf32> to vector<1x32x1xf32>
    tpu.vector_store %arg31[%c0_79, %c0_80, %c0_81], %155 {strides = array<i32>} : memref<1x32x1xf32, #tpu.memory_space<vmem>>, vector<1x32x1xf32>,
    return
  }
  func.func @transform_0(%arg0: i32) -> (i32, i32, i32) {
    %c0_i32 = arith.constant 0 : i32
    %c0_i32_0 = arith.constant 0 : i32
    %c0_i32_1 = arith.constant 0 : i32
    return %arg0, %c0_i32, %c0_i32_0 : i32, i32, i32
  }
  func.func @transform_1(%arg0: i32) -> (i32, i32) {
    %c0_i32 = arith.constant 0 : i32
    %c0_i32_0 = arith.constant 0 : i32
    %c0_i32_1 = arith.constant 0 : i32
    return %c0_i32, %c0_i32_0 : i32, i32
  }
  func.func @transform_2(%arg0: i32) -> (i32, i32) {
    %c0_i32 = arith.constant 0 : i32
    %c0_i32_0 = arith.constant 0 : i32
    %c0_i32_1 = arith.constant 0 : i32
    return %c0_i32, %c0_i32_0 : i32, i32
  }
  func.func @transform_3(%arg0: i32) -> (i32, i32) {
    %c0_i32 = arith.constant 0 : i32
    %c0_i32_0 = arith.constant 0 : i32
    %c0_i32_1 = arith.constant 0 : i32
    return %c0_i32, %c0_i32_0 : i32, i32
  }
  func.func @transform_4(%arg0: i32) -> (i32, i32) {
    %c0_i32 = arith.constant 0 : i32
    %c0_i32_0 = arith.constant 0 : i32
    %c0_i32_1 = arith.constant 0 : i32
    return %c0_i32, %c0_i32_0 : i32, i32
  }
  func.func @transform_5(%arg0: i32) -> (i32, i32) {
    %c0_i32 = arith.constant 0 : i32
    %c0_i32_0 = arith.constant 0 : i32
    %c0_i32_1 = arith.constant 0 : i32
    return %c0_i32, %c0_i32_0 : i32, i32
  }
  func.func @transform_6(%arg0: i32) -> (i32, i32) {
    %c0_i32 = arith.constant 0 : i32
    %c0_i32_0 = arith.constant 0 : i32
    %c0_i32_1 = arith.constant 0 : i32
    return %c0_i32, %c0_i32_0 : i32, i32
  }
  func.func @transform_7(%arg0: i32) -> (i32, i32) {
    %c0_i32 = arith.constant 0 : i32
    %c0_i32_0 = arith.constant 0 : i32
    %c0_i32_1 = arith.constant 0 : i32
    return %c0_i32, %c0_i32_0 : i32, i32
  }
  func.func @transform_8(%arg0: i32) -> (i32, i32) {
    %c0_i32 = arith.constant 0 : i32
    %c0_i32_0 = arith.constant 0 : i32
    %c0_i32_1 = arith.constant 0 : i32
    return %c0_i32, %c0_i32_0 : i32, i32
  }
  func.func @transform_9(%arg0: i32) -> (i32, i32) {
    %c0_i32 = arith.constant 0 : i32
    %c0_i32_0 = arith.constant 0 : i32
    %c0_i32_1 = arith.constant 0 : i32
    return %c0_i32, %c0_i32_0 : i32, i32
  }
  func.func @transform_10(%arg0: i32) -> (i32, i32) {
    %c0_i32 = arith.constant 0 : i32
    %c0_i32_0 = arith.constant 0 : i32
    %c0_i32_1 = arith.constant 0 : i32
    return %c0_i32, %c0_i32_0 : i32, i32
  }
  func.func @transform_11(%arg0: i32) -> (i32, i32) {
    %c0_i32 = arith.constant 0 : i32
    %c0_i32_0 = arith.constant 0 : i32
    %c0_i32_1 = arith.constant 0 : i32
    return %c0_i32, %c0_i32_0 : i32, i32
  }
  func.func @transform_12(%arg0: i32) -> (i32, i32) {
    %c0_i32 = arith.constant 0 : i32
    %c0_i32_0 = arith.constant 0 : i32
    %c0_i32_1 = arith.constant 0 : i32
    return %c0_i32, %c0_i32_0 : i32, i32
  }
  func.func @transform_13(%arg0: i32) -> (i32, i32) {
    %c0_i32 = arith.constant 0 : i32
    %c0_i32_0 = arith.constant 0 : i32
    %c0_i32_1 = arith.constant 0 : i32
    return %c0_i32, %c0_i32_0 : i32, i32
  }
  func.func @transform_14(%arg0: i32) -> (i32, i32) {
    %c0_i32 = arith.constant 0 : i32
    %c0_i32_0 = arith.constant 0 : i32
    %c0_i32_1 = arith.constant 0 : i32
    return %c0_i32, %c0_i32_0 : i32, i32
  }
  func.func @transform_15(%arg0: i32) -> (i32, i32) {
    %c0_i32 = arith.constant 0 : i32
    %c0_i32_0 = arith.constant 0 : i32
    %c0_i32_1 = arith.constant 0 : i32
    return %c0_i32, %c0_i32_0 : i32, i32
  }
  func.func @transform_16(%arg0: i32) -> (i32, i32) {
    %c0_i32 = arith.constant 0 : i32
    %c0_i32_0 = arith.constant 0 : i32
    %c0_i32_1 = arith.constant 0 : i32
    return %c0_i32, %c0_i32_0 : i32, i32
  }
  func.func @transform_17(%arg0: i32) -> (i32, i32) {
    %c0_i32 = arith.constant 0 : i32
    %c0_i32_0 = arith.constant 0 : i32
    %c0_i32_1 = arith.constant 0 : i32
    return %c0_i32, %c0_i32_0 : i32, i32
  }
  func.func @transform_18(%arg0: i32) -> (i32, i32) {
    %c0_i32 = arith.constant 0 : i32
    %c0_i32_0 = arith.constant 0 : i32
    %c0_i32_1 = arith.constant 0 : i32
    return %c0_i32, %c0_i32_0 : i32, i32
  }
  func.func @transform_19(%arg0: i32) -> (i32, i32) {
    %c0_i32 = arith.constant 0 : i32
    %c0_i32_0 = arith.constant 0 : i32
    %c0_i32_1 = arith.constant 0 : i32
    return %c0_i32, %c0_i32_0 : i32, i32
  }
  func.func @transform_20(%arg0: i32) -> (i32, i32) {
    %c0_i32 = arith.constant 0 : i32
    %c0_i32_0 = arith.constant 0 : i32
    %c0_i32_1 = arith.constant 0 : i32
    return %c0_i32, %c0_i32_0 : i32, i32
  }
  func.func @transform_21(%arg0: i32) -> (i32, i32) {
    %c0_i32 = arith.constant 0 : i32
    %c0_i32_0 = arith.constant 0 : i32
    %c0_i32_1 = arith.constant 0 : i32
    return %c0_i32, %c0_i32_0 : i32, i32
  }
  func.func @transform_22(%arg0: i32) -> (i32, i32) {
    %c0_i32 = arith.constant 0 : i32
    %c0_i32_0 = arith.constant 0 : i32
    %c0_i32_1 = arith.constant 0 : i32
    return %c0_i32, %c0_i32_0 : i32, i32
  }
  func.func @transform_23(%arg0: i32) -> (i32, i32) {
    %c0_i32 = arith.constant 0 : i32
    %c0_i32_0 = arith.constant 0 : i32
    %c0_i32_1 = arith.constant 0 : i32
    return %c0_i32, %c0_i32_0 : i32, i32
  }
  func.func @transform_24(%arg0: i32) -> (i32, i32) {
    %c0_i32 = arith.constant 0 : i32
    %c0_i32_0 = arith.constant 0 : i32
    %c0_i32_1 = arith.constant 0 : i32
    return %c0_i32, %c0_i32_0 : i32, i32
  }
  func.func @transform_25(%arg0: i32) -> (i32, i32) {
    %c0_i32 = arith.constant 0 : i32
    %c0_i32_0 = arith.constant 0 : i32
    %c0_i32_1 = arith.constant 0 : i32
    return %c0_i32, %c0_i32_0 : i32, i32
  }
  func.func @transform_26(%arg0: i32) -> (i32, i32) {
    %c0_i32 = arith.constant 0 : i32
    %c0_i32_0 = arith.constant 0 : i32
    %c0_i32_1 = arith.constant 0 : i32
    return %c0_i32, %c0_i32_0 : i32, i32
  }
  func.func @transform_27(%arg0: i32) -> (i32, i32) {
    %c0_i32 = arith.constant 0 : i32
    %c0_i32_0 = arith.constant 0 : i32
    %c0_i32_1 = arith.constant 0 : i32
    return %c0_i32, %c0_i32_0 : i32, i32
  }
  func.func @transform_28(%arg0: i32) -> (i32, i32) {
    %c0_i32 = arith.constant 0 : i32
    %c0_i32_0 = arith.constant 0 : i32
    %c0_i32_1 = arith.constant 0 : i32
    return %c0_i32, %c0_i32_0 : i32, i32
  }
  func.func @transform_29(%arg0: i32) -> (i32, i32) {
    %c0_i32 = arith.constant 0 : i32
    %c0_i32_0 = arith.constant 0 : i32
    %c0_i32_1 = arith.constant 0 : i32
    return %c0_i32, %c0_i32_0 : i32, i32
  }
  func.func @transform_30(%arg0: i32) -> (i32, i32, i32) {
    %c0_i32 = arith.constant 0 : i32
    %c0_i32_0 = arith.constant 0 : i32
    %c0_i32_1 = arith.constant 0 : i32
    return %arg0, %c0_i32, %c0_i32_0 : i32, i32, i32
  }
}

</mosaic_0001>

<bundles_post_ra>
// kernel: squeeze.0
= control target key start
LH: loop header
LB: loop body
LE: loop exit
PB: predicated region body
PF: predicated region fallthrough
CT: control target
= control target key end

     0   :  { %v197_v14 = vmov 0.0   ;;  %s289_s0 = inlined_call_operand.vmem [shape: bf16[2,1031], index: 0, kind: input, shape index: {}]   ;;  %s290_s1 = inlined_call_operand.vmem [shape: bf16[2,1,1031], index: 1, kind: output, shape index: {}]  }
   0x1   :  { %v4_v0 = vld [vmem:[%s289_s0] ss:$0 sm:$0xff]  ;;  %v164_v1 = vld [vmem:[%s289_s0 + $0x1] ss:$0 sm:$0xff]  ;;  %v168_v2 = vld [vmem:[%s289_s0 + $0x2] ss:$0 sm:$0xff] }
   0x2   :  { %v5_v3 = vunpack.i.l.bf16 %v4_v0  ;;  %v14_v4 = vunpack.i.h.bf16 %v4_v0  ;;  %v21_v5 = vunpack.i.l.bf16 %v164_v1  ;;  %v32_v6 = vunpack.i.h.bf16 %v164_v1  ;;  %v172_v7 = vld [vmem:[%s289_s0 + $0x3] ss:$0 sm:$0xff]  ;;  %v176_v12 = vld [vmem:[%s289_s0 + $0x4] ss:$0 sm:$0xff]  ;;  %v180_v13 = vld [vmem:[%s289_s0 + $0x5] ss:$0 sm:$0xff] }
   0x3   :  { %v39_v8 = vunpack.i.l.bf16 %v168_v2  ;;  %v50_v9 = vunpack.i.h.bf16 %v168_v2  ;;  %v57_v10 = vunpack.i.l.bf16 %v172_v7  ;;  %v68_v11 = vunpack.i.h.bf16 %v172_v7  ;;  %v184_v19 = vld [vmem:[%s289_s0 + $0x6] ss:$0 sm:$0xff]  ;;  %v188_v20 = vld [vmem:[%s289_s0 + $0x7] ss:$0 sm:$0xff]  ;;  %v192_v33 = vld [vmem:[%s289_s0 + $0x8] ss:$0 sm:$0xff] }
   0x4   :  { %v9_v15 = vpack.c.bf16 %v197_v14, %v5_v3  ;;  %v17_v16 = vpack.c.bf16 %v197_v14, %v14_v4  ;;  %v26_v17 = vpack.c.bf16 %v197_v14, %v21_v5  ;;  %v35_v18 = vpack.c.bf16 %v197_v14, %v32_v6 }
   0x5   :  { %v44_v21 = vpack.c.bf16 %v197_v14, %v39_v8  ;;  %v53_v22 = vpack.c.bf16 %v197_v14, %v50_v9  ;;  %v62_v23 = vpack.c.bf16 %v197_v14, %v57_v10  ;;  %v71_v24 = vpack.c.bf16 %v197_v14, %v68_v11 }
   0x6   :  { %10 = vst [vmem:[%s290_s1] sm:$0x1] %v9_v15  ;;  %163 = vst [vmem:[%s290_s1 + $0x9] sm:$0x1] %v17_v16  ;;  %v75_v25 = vunpack.i.l.bf16 %v176_v12  ;;  %v86_v26 = vunpack.i.h.bf16 %v176_v12  ;;  %v93_v27 = vunpack.i.l.bf16 %v180_v13  ;;  %v104_v28 = vunpack.i.h.bf16 %v180_v13 }
   0x7   :  { %165 = vst [vmem:[%s290_s1 + $0x1] sm:$0x1] %v26_v17  ;;  %167 = vst [vmem:[%s290_s1 + $0xa] sm:$0x1] %v35_v18  ;;  %v111_v29 = vunpack.i.l.bf16 %v184_v19  ;;  %v122_v30 = vunpack.i.h.bf16 %v184_v19  ;;  %v129_v31 = vunpack.i.l.bf16 %v188_v20  ;;  %v140_v32 = vunpack.i.h.bf16 %v188_v20 }
   0x8   :  { %169 = vst [vmem:[%s290_s1 + $0x2] sm:$0x1] %v44_v21  ;;  %171 = vst [vmem:[%s290_s1 + $0xb] sm:$0x1] %v53_v22  ;;  %v80_v34 = vpack.c.bf16 %v197_v14, %v75_v25  ;;  %v89_v35 = vpack.c.bf16 %v197_v14, %v86_v26  ;;  %v98_v36 = vpack.c.bf16 %v197_v14, %v93_v27  ;;  %v147_v42 = vunpack.i.l.bf16 %v192_v33 }
   0x9   :  { %173 = vst [vmem:[%s290_s1 + $0x3] sm:$0x1] %v62_v23  ;;  %175 = vst [vmem:[%s290_s1 + $0xc] sm:$0x1] %v71_v24  ;;  %v107_v37 = vpack.c.bf16 %v197_v14, %v104_v28  ;;  %v116_v38 = vpack.c.bf16 %v197_v14, %v111_v29  ;;  %v125_v39 = vpack.c.bf16 %v197_v14, %v122_v30  ;;  %v158_v43 = vunpack.i.h.bf16 %v192_v33 }
   0xa   :  { %v134_v40 = vpack.c.bf16 %v197_v14, %v129_v31  ;;  %v143_v41 = vpack.c.bf16 %v197_v14, %v140_v32  ;;  %177 = vst [vmem:[%s290_s1 + $0x4] sm:$0x1] %v80_v34  ;;  %179 = vst [vmem:[%s290_s1 + $0xd] sm:$0x1] %v89_v35  ;;  %v152_v44 = vpack.c.bf16 %v197_v14, %v147_v42 }
   0xb   :  { %181 = vst [vmem:[%s290_s1 + $0x5] sm:$0x1] %v98_v36  ;;  %183 = vst [vmem:[%s290_s1 + $0xe] sm:$0x1] %v107_v37  ;;  %v161_v45 = vpack.c.bf16 %v197_v14, %v158_v43 }
   0xc   :  { %185 = vst [vmem:[%s290_s1 + $0x6] sm:$0x1] %v116_v38  ;;  %187 = vst [vmem:[%s290_s1 + $0xf] sm:$0x1] %v125_v39 }
   0xd   :  { %189 = vst [vmem:[%s290_s1 + $0x7] sm:$0x1] %v134_v40  ;;  %191 = vst [vmem:[%s290_s1 + $0x10] sm:$0x1] %v143_v41 }
   0xe   :  { %193 = vst [vmem:[%s290_s1 + $0x8] sm:$0x1] %v152_v44  ;;  %195 = vst [vmem:[%s290_s1 + $0x11] sm:$0x1] %v161_v45 }

// kernel: sig2ir_forward.1
= control target key start
LH: loop header
LB: loop body
LE: loop exit
PB: predicated region body
PF: predicated region fallthrough
CT: control target
= control target key end

     0   :  { %s11432_s6 = smov 1   ;;  %s11433_s10 = smov 2   ;;  %s13352_s0 = inlined_call_operand.smem [shape: u32[31], index: -1, kind: input, shape index: {}] }
   0x1   :  { %s11481_s5 = sld [smem:[%s13352_s0]]   ;;  %s11434_s14 = smov 3  }
   0x2   :  { %s11486_s9 = sld [smem:[%s13352_s0 + %s11432_s6]]   ;;  %s11435_s18 = smov 4  }
   0x3   :  { %s11491_s13 = sld [smem:[%s13352_s0 + %s11433_s10]]   ;;  %s11436_s22 = smov 5  }
   0x4   :  { %s11496_s17 = sld [smem:[%s13352_s0 + %s11434_s14]]   ;;  %s11437_s26 = smov 6  }
   0x5   :  { %s11501_s21 = sld [smem:[%s13352_s0 + %s11435_s18]]   ;;  %s11438_s30 = smov 7  }
   0x6   :  { %s9176_s25 = sld [smem:[%s13352_s0 + %s11436_s22]]   ;;  %s11439_s4 = smov 8  }
   0x7   :  { %s11509_s29 = sld [smem:[%s13352_s0 + %s11437_s26]]   ;;  %s11440_s10 = smov 9  }
   0x8   :  { %s11514_s3 = sld [smem:[%s13352_s0 + %s11438_s30]]   ;;  %s11441_s15 = smov 11  }
   0x9   :  { %s11519_s8 = sld [smem:[%s13352_s0 + %s11439_s4]]   ;;  %s11442_s20 = smov 12  }
   0xa   :  { %s11524_s14 = sld [smem:[%s13352_s0 + %s11440_s10]]   ;;  %s11443_s26 = smov 13  }
   0xb   :  { %s11529_s19 = sld [smem:[%s13352_s0 + %s11441_s15]]   ;;  %s11444_s1 = smov 14  }
   0xc   :  { %s11534_s24 = sld [smem:[%s13352_s0 + %s11442_s20]]   ;;  %v66_v0 = vstv %s9176_s25  ;;  %s11445_s7 = smov 16  }
   0xd   :  { %s11539_s30 = sld [smem:[%s13352_s0 + %s11443_s26]]   ;;  %67 = vst [vmem:[#allocation2] sm:$0x1] %v66_v0  ;;  %s11446_s25 = smov 17  }
   0xe   :  { %s11544_s6 = sld [smem:[%s13352_s0 + %s11444_s1]]   ;;  %s11447_s20 = smov 18  }
   0xf   :  { %s11549_s12 = sld [smem:[%s13352_s0 + %s11445_s7]]   ;;  %s11448_s27 = smov 19  }
  0x10   :  { %s11554_s18 = sld [smem:[%s13352_s0 + %s11446_s25]]   ;;  %s11449_s4 = smov 21  }
  0x11   :  { %13359 = sst [smem:[#allocation6_spill]] %s11529_s19  ;;  %s11450_s25 = smov 22  }
  0x12   :  { %13360 = sst [smem:[#allocation7_spill]] %s11534_s24  ;;  %s11460_s28 = smov 15  }
  0x13   :  { %s11559_s26 = sld [smem:[%s13352_s0 + %s11447_s20]]   ;;  %s11451_s20 = smov 23  }
  0x14   :  { %s11564_s2 = sld [smem:[%s13352_s0 + %s11448_s27]]   ;;  %s11452_s27 = smov 24  }
  0x15   :  { %13361 = sst [smem:[#allocation8_spill]] %s11549_s12 }
  0x16   :  { %13362 = sst [smem:[#allocation9_spill]] %s11554_s18 }
  0x17   :  { %s11569_s11 = sld [smem:[%s13352_s0 + %s11449_s4]]   ;;  %s11453_s4 = smov 25  }
  0x18   :  { %s11574_s18 = sld [smem:[%s13352_s0 + %s11450_s25]]   ;;  %s11454_s25 = smov 26  }
  0x19   :  { %13363 = sst [smem:[#allocation10_spill]] %s11559_s26 }
  0x1a   :  { %13364 = sst [smem:[#allocation11_spill]] %s11564_s2 }
  0x1b   :  { %s11579_s12 = sld [smem:[%s13352_s0 + %s11451_s20]]   ;;  %s11455_s20 = smov 27  }
  0x1c   :  { %s11584_s2 = sld [smem:[%s13352_s0 + %s11452_s27]]   ;;  %s11456_s27 = smov 28  }
  0x1d   :  { %s11589_s26 = sld [smem:[%s13352_s0 + %s11453_s4]]   ;;  %s11457_s4 = smov 29  }
  0x1e   :  { %s11594_s24 = sld [smem:[%s13352_s0 + %s11454_s25]]   ;;  %s11458_s25 = smov 30  }
  0x1f   :  { %s11599_s19 = sld [smem:[%s13352_s0 + %s11455_s20]]   ;;  %s11459_s20 = smov 10  }
  0x21   :  { %13365 = sst [smem:[#allocation12_spill]] %s11579_s12  ;;  %s11461_s12 = smov 20  }
  0x22   :  { %13366 = sst [smem:[#allocation13_spill]] %s11584_s2 }
  0x23   :  { %13367 = sst [smem:[#allocation14_spill]] %s11589_s26 }
  0x24   :  { %13368 = sst [smem:[#allocation15_spill]] %s11594_s24 }
  0x25   :  { %13369 = sst [smem:[#allocation16_spill]] %s11599_s19 }
  0x26   :  { %s11604_s2 = sld [smem:[%s13352_s0 + %s11456_s27]]  }
  0x27   :  { %s11609_s26 = sld [smem:[%s13352_s0 + %s11457_s4]]  }
  0x28   :  { %s11614_s24 = sld [smem:[%s13352_s0 + %s11458_s25]]   ;;  %s11625_s25 = smov 0  }
  0x29   :  { %s9181_s19 = sld [smem:[%s13352_s0 + %s11459_s20]]  }
  0x2a   :  { %s9191_s10 = sld [smem:[%s13352_s0 + %s11461_s12]]  }
  0x2c   :  { %13370 = sst [smem:[#allocation17_spill]] %s11604_s2 }
  0x2d   :  { %s9186_s2 = sld [smem:[%s13352_s0 + %s11460_s28]]  }
  0x2f   :  { %v68_v1 = vstv %s9181_s19 }
  0x30   :  { %69 = vst [vmem:[#allocation3] sm:$0x1] %v68_v1  ;;  %v72_v3 = vstv %s9191_s10 }
  0x31   :  { %73 = vst [vmem:[#allocation5] sm:$0x1] %v72_v3 }
  0x33   :  { %v70_v2 = vstv %s9186_s2 }
  0x34   :  { %71 = vst [vmem:[#allocation4] sm:$0x1] %v70_v2 }
  0x35 LB: > { %s9202_s15 = sadd.s32 4294967295, %s11430_s25   ;;  %p9206_p0 = scmp.ge.s32.totalorder %s11430_s25, 1  ;;  %s11430_s25 = sphi %s11625_s25, %s79_s25  }
  0x36   : > { %p850_p1 = scmp.lt.s32.totalorder %s11430_s25, 3 }
  0x38   : > { %p851_p2 = pnand %p9206_p0, %p850_p1 }
  0x39   : > { %p927_p3 = scmp.lt.s32.totalorder (!%p851_p2), %s9202_s15, 1  ;;  %s11463_s12 = smov (!%p851_p2), 127  }
  0x3a   : > { %854 = sbr.rel (%p851_p2) target bundleno = 3915 (0xf4b), region = 140  ;;  %s11464_s2 = smov (!%p851_p2), 126  }
  0x3b   : > { %s11465_s16 = smov (!%p851_p2), 125   ;;  %s11466_s20 = smov (!%p851_p2), 124  }
  0x3c   : > { %s11467_s22 = smov (!%p851_p2), 123   ;;  %s11468_s23 = smov (!%p851_p2), 122  }
  0x3d   : > { %s11469_s28 = smov (!%p851_p2), 121   ;;  %s13371_s27 = sld [smem:[#allocation12_spill]] (!%p851_p2) }
  0x3e   : > { %s13372_s1 = sld [smem:[#allocation6_spill]] (!%p851_p2) }
  0x3f   : > { %v949_v4 = vlaneseq  ;;  %v11462_v5 = vmov 1966171168   ;;  %s13388_s15 = smov (!%p927_p3, %s9202_s15), 1  ;;  %v11470_v59 = vmov 0   ;;  %vm1067_vm0 = vcmask 1039360   ;;  %s13373_s7 = sld [smem:[#allocation7_spill]] }
  0x40   : > { %v947_v6 = vunpack.c.l.s4 %v11462_v5  ;;  %s10244_s0 = smul.u32 9, %s13388_s15  ;;  %1470 = vmatprep.mubr.bf16.mxu0 %v11470_v59  ;;  %1511 = vmatprep.mubr.bf16.mxu1 %v11470_v59  ;;  %vm1120_vm1 = vcmask 1031168   ;;  %vm1164_vm2 = vcmask 1022976   ;;  %vm1294_vm3 = vcmask 1040384   ;;  %s13374_s4 = sld [smem:[#allocation10_spill]] }
  0x41   : > { %v950_v7 = vshrl.u32 %v949_v4, 7  ;;  %10294 = vset.pattern.permute.xlu0 %v11470_v59  ;;  %10295 = vset.pattern.permute.xlu1 %v11470_v59  ;;  %vm1196_vm4 = vcmask 1014784   ;;  %vm1319_vm5 = vcmask 1041408   ;;  %vm1226_vm6 = vcmask 1006592   ;;  %s13375_s10 = sld [smem:[#allocation11_spill]] }
  0x42   : > { %v948_v8 = vunpack.c.0.s8 %v947_v6  ;;  %s930_s19 = scalar_lea.vmem %s11481_s5, %s10244_s0  ;;  %vm1336_vm7 = vcmask 1042432   ;;  %vm1256_vm8 = vcmask 998400   ;;  %vm1353_vm9 = vcmask 1043456   ;;  %s13376_s0 = sld [smem:[#allocation8_spill]] }
  0x43   : > { %v937_v10 = vld [vmem:[%s930_s19] sm:$0xff]  ;;  %v938_v11 = vld [vmem:[%s930_s19 + $0x8] sm:$0x1]  ;;  %vm1370_vm10 = vcmask 1044480   ;;  %vm1285_vm11 = vcmask 990208   ;;  %vm1387_vm12 = vcmask 1045504  }
  0x44   : > { %v951_v9 = vsub.s32 %v948_v8, %v950_v7  ;;  %v995_v13 = vcombine.low %v937_v10, %v937_v10  ;;  %v1020_v14 = vcombine.low %v938_v11, %v938_v11  ;;  %v945_v23 = vcombine.high %v937_v10, %v937_v10  ;;  %s13377_s19 = sld [smem:[#allocation9_spill]] }
  0x45   : > { %vm1404_vm13 = vcmask 1046528   ;;  %vm1434_vm14 = vcmask 130048   ;;  %vm13358_vm15 = vcmask 7168  }
  0x46   : > { %v952_v12 = vrot.slane %v937_v10, %v951_v9  ;;  %v1034_v15 = vrot.slane %v938_v11, %v951_v9  ;;  %v1002_v17 = vrot.slane %v995_v13, %v951_v9  ;;  %v1027_v18 = vrot.slane %v1020_v14, %v951_v9 }
  0x47   : > { %v959_v28 = vrot.slane %v945_v23, %v951_v9 }
  0x48   : > { %v11637_v16 = vrot.slane %v952_v12, %v951_v9  ;;  %v11639_v19 = vrot.slane %v1034_v15, %v951_v9  ;;  %v11645_v20 = vrot.slane %v1002_v17, %v951_v9  ;;  %v1003_v21 = vcombine.high %v1002_v17, %v1002_v17 }
  0x49   : > { %v1076_v22 = vcombine.low %v952_v12, %v952_v12  ;;  %v1094_v24 = vcombine.low %v1034_v15, %v1034_v15  ;;  %v1129_v27 = vcombine.low %v1002_v17, %v1002_v17  ;;  %v11653_v29 = vrot.slane %v1027_v18, %v951_v9 }
  0x4a   : > { %1057 = vrot.lane.b32.xlu0 %v11637_v16, %s11463_s12  ;;  %1104 = vrot.lane.b32.xlu1 %v11637_v16, %s11464_s2  ;;  %v1017_v25 = vrot.slane %v1003_v21, %v951_v9  ;;  %v961_v31 = vcombine.high %v959_v28, %v959_v28  ;;  %v1138_v32 = vcombine.low %v1027_v18, %v1027_v18  ;;  %v1635_v7 = vshrl.u32 %v11637_v16, 16 }
  0x4b   : > { %v11651_v26 = vrot.slane %v1076_v22, %v951_v9  ;;  %v11655_v30 = vrot.slane %v1094_v24, %v951_v9  ;;  %v1018_v33 = vcombine.high %v11645_v20, %v11645_v20  ;;  %v1136_v35 = vrot.slane %v1129_v27, %v951_v9 }
  0x4c   : > { %v1019_v34 = vcombine.high %v1017_v25, %v1017_v25  ;;  %v11662_v36 = vrot.slane %v961_v31, %v951_v9  ;;  %v11664_v37 = vrot.slane %v1138_v32, %v951_v9  ;;  %v960_v38 = vcombine.high %v952_v12, %v952_v12 }
  0x4d   : > { %v1092_v39 = vcombine.high %v11651_v26, %v11651_v26  ;;  %v1137_v40 = vcombine.high %v1136_v35, %v1136_v35  ;;  %v1077_v41 = vcombine.low %v959_v28, %v959_v28  ;;  %v11674_v42 = vcombine.high %v11637_v16, %v11637_v16 }
  0x4e   : > { %1148 = vrot.lane.b32.xlu0 %v11645_v20, %s11465_s16  ;;  %1049 = vrot.lane.b32.xlu1 %v11645_v20, %s11463_s12  ;;  %v11678_v44 = vrot.slane %v960_v38, %v951_v9  ;;  %v1173_v46 = vcombine.low %v11637_v16, %v11637_v16  ;;  %v11693_v47 = vrot.slane %v959_v28, %v951_v9  ;;  %v1645_v14 = vshrl.u32 %v11662_v36, 16 }
  0x4f   : > { %v11676_v43 = vrot.slane %v1077_v41, %v951_v9  ;;  %v1206_v48 = vcombine.low %v1017_v25, %v1017_v25  ;;  %v1205_v50 = vcombine.low %v11645_v20, %v11645_v20  ;;  %v1235_v51 = vcombine.low %v11651_v26, %v11651_v26 }
  0x50   : > { %v1175_v45 = vcombine.low %v11678_v44, %v11678_v44  ;;  %v1174_v49 = vcombine.low %v11693_v47, %v11693_v47  ;;  %v1265_v53 = vcombine.low %v1136_v35, %v1136_v35  ;;  %v11738_v55 = vcombine.high %v11678_v44, %v11678_v44 }
  0x51   : > { %v1236_v52 = vcombine.low %v11676_v43, %v11676_v43  ;;  %v1093_v54 = vcombine.high %v11676_v43, %v11676_v43  ;;  %v11749_v56 = vcombine.high %v11693_v47, %v11693_v47  ;;  %v1176_v57 = vcombine.low %v11662_v36, %v11662_v36 }
  0x52   : > { %1051 = vrot.lane.b32.xlu0 %v1017_v25, %s11463_s12  ;;  %1102 = vrot.lane.b32.xlu1 %v11651_v26, %s11464_s2  ;;  %v1177_v58 = vcombine.low %v11639_v19, %v11639_v19  ;;  %v1207_v60 = vcombine.low %v11653_v29, %v11653_v29  ;;  %v1237_v63 = vcombine.low %v11655_v30, %v11655_v30  ;;  %v1637_v3 = vshrl.u32 %v11678_v44, 16 }
  0x53   : > { %v1266_v2 = vcombine.low %v11664_v37, %v11664_v37  ;;  %v1639_v6 = vshrl.u32 %v11674_v42, 16  ;;  %v1641_v10 = vshrl.u32 %v11738_v55, 16  ;;  %v1643_v11 = vshrl.u32 %v11693_v47, 16 }
  0x54   : > { %v1647_v15 = vshrl.u32 %v11749_v56, 16  ;;  %v11832_v17 = vcombine.high %v11662_v36, %v11662_v36  ;;  %v1652_v21 = vshrl.u32 %v11639_v19, 16 }
  0x56   : > { %1053 = vrot.lane.b32.xlu0 %v1018_v33, %s11463_s12  ;;  %1055 = vrot.lane.b32.xlu1 %v1019_v34, %s11463_s12  ;;  %v1649_v22 = vshrl.u32 %v11832_v17, 16 }
  0x5a   : > { %1106 = vrot.lane.b32.xlu0 %v1092_v39, %s11464_s2  ;;  %1150 = vrot.lane.b32.xlu1 %v1137_v40, %s11465_s16 }
  0x5e   : > { %1108 = vrot.lane.b32.xlu0 %v11674_v42, %s11464_s2  ;;  %1110 = vrot.lane.b32.xlu1 %v11676_v43, %s11464_s2 }
  0x62   : > { %1146 = vrot.lane.b32.xlu0 %v1136_v35, %s11465_s16  ;;  %1180 = vrot.lane.b32.xlu1 %v1175_v45, %s11466_s20 }
  0x66   : > { %1182 = vrot.lane.b32.xlu0 %v11637_v16, %s11466_s20  ;;  %1152 = vrot.lane.b32.xlu1 %v1018_v33, %s11465_s16 }
  0x6a   : > { %1154 = vrot.lane.b32.xlu0 %v11651_v26, %s11465_s16  ;;  %1178 = vrot.lane.b32.xlu1 %v1173_v46, %s11466_s20 }
  0x6e   : > { %1210 = vrot.lane.b32.xlu0 %v1206_v48, %s11467_s22  ;;  %1212 = vrot.lane.b32.xlu1 %v11645_v20, %s11467_s22 }
  0x72   : > { %1184 = vrot.lane.b32.xlu0 %v11678_v44, %s11466_s20  ;;  %1186 = vrot.lane.b32.xlu1 %v1174_v49, %s11466_s20 }
  0x76   : > { %1208 = vrot.lane.b32.xlu0 %v1205_v50, %s11467_s22  ;;  %1240 = vrot.lane.b32.xlu1 %v1173_v46, %s11468_s23 }
  0x7a   : > { %1242 = vrot.lane.b32.xlu0 %v11651_v26, %s11468_s23  ;;  %1214 = vrot.lane.b32.xlu1 %v1017_v25, %s11467_s22  ;;  %v941_v25 = vld [vmem:[%s11496_s17] sm:$0x3] }
  0x7e   : > { %1216 = vrot.lane.b32.xlu0 %v1173_v46, %s11467_s22  ;;  %1238 = vrot.lane.b32.xlu1 %v1235_v51, %s11468_s23 }
  0x82   : > { %1269 = vrot.lane.b32.xlu0 %v1205_v50, %s11469_s28  ;;  %1271 = vrot.lane.b32.xlu1 %v1136_v35, %s11469_s28 }
  0x86   : > { %1244 = vrot.lane.b32.xlu0 %v11637_v16, %s11468_s23  ;;  %1246 = vrot.lane.b32.xlu1 %v1236_v52, %s11468_s23 }
  0x8a   : > { %1267 = vrot.lane.b32.xlu0 %v1265_v53, %s11469_s28  ;;  %1059 = vrot.lane.b32.xlu1 %v11678_v44, %s11463_s12 }
  0x8e   : > { %1061 = vrot.lane.b32.xlu0 %v11674_v42, %s11463_s12  ;;  %1273 = vrot.lane.b32.xlu1 %v11645_v20, %s11469_s28 }
  0x92   : > { %1275 = vrot.lane.b32.xlu0 %v1235_v51, %s11469_s28  ;;  %1112 = vrot.lane.b32.xlu1 %v11693_v47, %s11464_s2 }
  0x96   : > { %1114 = vrot.lane.b32.xlu0 %v1093_v54, %s11464_s2  ;;  %1063 = vrot.lane.b32.xlu1 %v11738_v55, %s11463_s12 }
  0x9a   : > { %1065 = vrot.lane.b32.xlu0 %v11653_v29, %s11463_s12  ;;  %1156 = vrot.lane.b32.xlu1 %v11637_v16, %s11465_s16  ;;  %v942_v29 = vld [vmem:[%s11501_s21] sm:$0x3] }
  0x9e   : > { %1158 = vrot.lane.b32.xlu0 %v1092_v39, %s11465_s16  ;;  %1116 = vrot.lane.b32.xlu1 %v11749_v56, %s11464_s2 }
  0xa2   : > { %1118 = vrot.lane.b32.xlu0 %v11655_v30, %s11464_s2  ;;  %1188 = vrot.lane.b32.xlu1 %v1176_v57, %s11466_s20 }
  0xa6   : > { %1190 = vrot.lane.b32.xlu0 %v11693_v47, %s11466_s20  ;;  %1160 = vrot.lane.b32.xlu1 %v11674_v42, %s11465_s16 }
  0xaa   : > { %1162 = vrot.lane.b32.xlu0 %v11664_v37, %s11465_s16  ;;  %1218 = vrot.lane.b32.xlu1 %v1175_v45, %s11467_s22 }
  0xae   : > { %1220 = vrot.lane.b32.xlu0 %v11637_v16, %s11467_s22  ;;  %1192 = vrot.lane.b32.xlu1 %v11662_v36, %s11466_s20 }
  0xb2   : > { %1194 = vrot.lane.b32.xlu0 %v1177_v58, %s11466_s20  ;;  %1248 = vrot.lane.b32.xlu1 %v1174_v49, %s11468_s23 }
  0xb6   : > { %1250 = vrot.lane.b32.xlu0 %v11676_v43, %s11468_s23  ;;  %1222 = vrot.lane.b32.xlu1 %v11678_v44, %s11467_s22 }
  0xba   : > { %1224 = vrot.lane.b32.xlu0 %v1207_v60, %s11467_s22  ;;  %1277 = vrot.lane.b32.xlu1 %v1173_v46, %s11469_s28 }
  0xbc   : > { %v11786_v61 = vpop.permute.xlu0 %1057  ;;  %v11788_v62 = vpop.permute.xlu1 %1104 }
  0xbe   : > { %1279 = vrot.lane.b32.xlu0 %v11651_v26, %s11469_s28  ;;  %1252 = vrot.lane.b32.xlu1 %v11693_v47, %s11468_s23  ;;  %v9213_v26 = vld [vmem:[#allocation2] ss:$0 sm:$0xff] }
  0xc0   : > { %v11796_v0 = vpop.permute.xlu0 %1148  ;;  %v11798_v1 = vpop.permute.xlu1 %1049 }
  0xc2   : > { %1254 = vrot.lane.b32.xlu0 %v1237_v63, %s11468_s23  ;;  %1281 = vrot.lane.b32.xlu1 %v11637_v16, %s11469_s28 }
  0xc4   : > { %v11806_v4 = vpop.permute.xlu0 %1051  ;;  %v11808_v5 = vpop.permute.xlu1 %1102 }
  0xc5   : > { %v1068_v53 = vsel %vm1067_vm0, %v11798_v1, %v11806_v4 }
  0xc6   : > { %1283 = vrot.lane.b32.xlu0 %v1266_v2, %s11469_s28  ;;  %1656 = vrot.lane.b32.xlu1 %v1637_v3, %s11465_s16  ;;  %v1297_v3 = vsel %vm1294_vm3, %v11637_v16, %v1068_v53 }
  0xc8   : > { %v11814_v8 = vpop.permute.xlu0 %1053  ;;  %v11816_v9 = vpop.permute.xlu1 %1055 }
  0xc9   : > { %v1069_v38 = vsel %vm1067_vm0, %v11806_v4, %v11814_v8 }
  0xca   : > { %1658 = vrot.lane.b32.xlu0 %v1639_v6, %s11465_s16  ;;  %1654 = vrot.lane.b32.xlu1 %v1635_v7, %s11465_s16  ;;  %v1300_v43 = vsel %vm1294_vm3, %v11678_v44, %v1069_v38  ;;  %v1121_v6 = vsel %vm1120_vm1, %v11808_v5, %v11788_v62 }
  0xcc   : > { %v11822_v12 = vpop.permute.xlu0 %1106  ;;  %v11824_v13 = vpop.permute.xlu1 %1150 }
  0xcd   : > { %v1122_v39 = vsel %vm1120_vm1, %v11788_v62, %v11822_v12  ;;  %v1166_v46 = vsel %vm1164_vm2, %v11796_v0, %v11824_v13 }
  0xce   : > { %1660 = vrot.lane.b32.xlu0 %v1641_v10, %s11465_s16  ;;  %1662 = vrot.lane.b32.xlu1 %v1643_v11, %s11465_s16  ;;  %v1323_v45 = vsel %vm1319_vm5, %v1300_v43, %v1122_v39 }
  0xcf   : > { %v1340_v44 = vsel %vm1336_vm7, %v1323_v45, %v1166_v46 }
  0xd0   : > { %v11834_v18 = vpop.permute.xlu0 %1108  ;;  %v11836_v20 = vpop.permute.xlu1 %1110 }
  0xd2   : > { %1664 = vrot.lane.b32.xlu0 %v1645_v14, %s11465_s16  ;;  %1666 = vrot.lane.b32.xlu1 %v1647_v15, %s11465_s16  ;;  %v1321_v14 = vsel %vm1319_vm5, %v1297_v3, %v1121_v6 }
  0xd4   : > { %v1147_v23 = vpop.permute.xlu0 %1146  ;;  %v1181_v24 = vpop.permute.xlu1 %1180 }
  0xd5   : > { %v1165_v4 = vsel %vm1164_vm2, %v1147_v23, %v11796_v0  ;;  %v1071_v23 = vsel %vm1067_vm0, %v11816_v9, %v11786_v61 }
  0xd6   : > { %1670 = vrot.lane.b32.xlu1 %v1652_v21, %s11465_s16  ;;  %1668 = vrot.lane.b32.xlu0 %v1649_v22, %s11465_s16  ;;  %v1338_v15 = vsel %vm1336_vm7, %v1321_v14, %v1165_v4  ;;  %v1306_v38 = vsel %vm1294_vm3, %v11738_v55, %v1071_v23 }
  0xd8   : > { %v11845_v27 = vpop.permute.xlu0 %1182  ;;  %v11847_v28 = vpop.permute.xlu1 %1152 }
  0xd9   : > { %v1198_v48 = vsel %vm1196_vm4, %v1181_v24, %v11845_v27 }
  0xda   : > { %1431 = vperm.xlu0 %10294, %v941_v25   ;;  %1616 = vperm.xlu1 %10295, %v9213_v26   ;;  %v1357_v54 = vsel %vm1353_vm9, %v1340_v44, %v1198_v48  ;;  %v11915_v26 = vld [vmem:[%s11486_s9] sm:$0x1] }
  0xdc   : > { %v11850_v30 = vpop.permute.xlu0 %1154  ;;  %v1179_v19 = vpop.permute.xlu1 %1178 }
  0xdd   : > { %v1197_v7 = vsel %vm1196_vm4, %v1179_v19, %v1181_v24  ;;  %v1124_v19 = vsel %vm1120_vm1, %v11834_v18, %v11836_v20 }
  0xde   : > { %1884 = vperm.xlu1 %10295, %v942_v29   ;;  %v1355_v5 = vsel %vm1353_vm9, %v1338_v15, %v1197_v7  ;;  %v1070_v29 = vsel %vm1067_vm0, %v11814_v8, %v11816_v9  ;;  %v1167_v8 = vsel %vm1164_vm2, %v11824_v13, %v11847_v28  ;;  %v1327_v43 = vsel %vm1319_vm5, %v1306_v38, %v1124_v19 }
  0xe0   : > { %v1211_v31 = vpop.permute.xlu0 %1210  ;;  %v11852_v32 = vpop.permute.xlu1 %1212 }
  0xe1   : > { %v1228_v51 = vsel %vm1226_vm6, %v1211_v31, %v11852_v32 }
  0xe2   : > { %v1374_v60 = vsel %vm1370_vm10, %v1357_v54, %v1228_v51 }
  0xe4   : > { %v11854_v33 = vpop.permute.xlu0 %1184  ;;  %v11856_v34 = vpop.permute.xlu1 %1186 }
  0xe5   : > { %v1200_v9 = vsel %vm1196_vm4, %v11854_v33, %v11856_v34  ;;  %v1199_v55 = vsel %vm1196_vm4, %v11845_v27, %v11854_v33 }
  0xe8   : > { %v1209_v35 = vpop.permute.xlu0 %1208  ;;  %v1241_v37 = vpop.permute.xlu1 %1240 }
  0xe9   : > { %v1227_v16 = vsel %vm1226_vm6, %v1209_v35, %v1211_v31  ;;  %v1123_v35 = vsel %vm1120_vm1, %v11822_v12, %v11834_v18  ;;  %v1303_v18 = vsel %vm1294_vm3, %v11674_v42, %v1070_v29 }
  0xea   : > { %v1372_v21 = vsel %vm1370_vm10, %v1355_v5, %v1227_v16 }
  0xec   : > { %v11864_v40 = vpop.permute.xlu0 %1242  ;;  %v11866_v41 = vpop.permute.xlu1 %1214 }
  0xed   : > { %v1258_v52 = vsel %vm1256_vm8, %v1241_v37, %v11864_v40  ;;  %v1229_v46 = vsel %vm1226_vm6, %v11852_v32, %v11866_v41 }
  0xee   : > { %v1391_v2 = vsel %vm1387_vm12, %v1374_v60, %v1258_v52 }
  0xf0   : > { %v11876_v49 = vpop.permute.xlu0 %1216  ;;  %v1239_v50 = vpop.permute.xlu1 %1238 }
  0xf1   : > { %v1257_v62 = vsel %vm1256_vm8, %v1239_v50, %v1241_v37  ;;  %v1168_v37 = vsel %vm1164_vm2, %v11847_v28, %v11850_v30  ;;  %v1230_v13 = vsel %vm1226_vm6, %v11866_v41, %v11876_v49  ;;  %v1325_v28 = vsel %vm1319_vm5, %v1303_v18, %v1123_v35 }
  0xf2   : > { %v1389_v25 = vsel %vm1387_vm12, %v1372_v21, %v1257_v62  ;;  %v1344_v45 = vsel %vm1336_vm7, %v1327_v43, %v1168_v37  ;;  %v1342_v27 = vsel %vm1336_vm7, %v1325_v28, %v1167_v8 }
  0xf3   : > { %v1361_v33 = vsel %vm1353_vm9, %v1344_v45, %v1200_v9  ;;  %v1359_v50 = vsel %vm1353_vm9, %v1342_v27, %v1199_v55 }
  0xf4   : > { %v1270_v57 = vpop.permute.xlu0 %1269  ;;  %v1272_v58 = vpop.permute.xlu1 %1271  ;;  %v1378_v32 = vsel %vm1370_vm10, %v1361_v33, %v1230_v13  ;;  %v1376_v54 = vsel %vm1370_vm10, %v1359_v50, %v1229_v46 }
  0xf5   : > { %v1287_v63 = vsel %vm1285_vm11, %v1270_v57, %v1272_v58 }
  0xf6   : > { %v1409_v1 = vsel %vm1404_vm13, %v1391_v2, %v1287_v63 }
  0xf7   : > { %1452 = vmatprep.subr.bf16.mxu0 %v1409_v1 }
  0xf8   : > { %v1245_v10 = vpop.permute.xlu0 %1244  ;;  %v11899_v11 = vpop.permute.xlu1 %1246 }
  0xf9   : > { %v1260_v42 = vsel %vm1256_vm8, %v1245_v10, %v11899_v11  ;;  %v1259_v48 = vsel %vm1256_vm8, %v11864_v40, %v1245_v10 }
  0xfa   : > { %v1395_v53 = vsel %vm1387_vm12, %v1378_v32, %v1260_v42  ;;  %v1393_v40 = vsel %vm1387_vm12, %v1376_v54, %v1259_v48 }
  0xfc   : > { %v1268_v0 = vpop.permute.xlu0 %1267  ;;  %v11907_v22 = vpop.permute.xlu1 %1059 }
  0xfd   : > { %v1286_v24 = vsel %vm1285_vm11, %v1268_v0, %v1270_v57  ;;  %v1072_v29 = vsel %vm1067_vm0, %v11786_v61, %v11907_v22 }
  0xfe   : > { %v1406_v31 = vsel %vm1404_vm13, %v1389_v25, %v1286_v24  ;;  %v1309_v61 = vsel %vm1294_vm3, %v11693_v47, %v1072_v29  ;;  %v1685_v29 = vsel %vm1294_vm3, 65535, %v11470_v59 }
  0xff   : > { %1453 = vmatpush1.bf16.msra.mxu0 %v1406_v31 }
 0x100   : > { %v11938_v39 = vpop.permute.xlu0 %1061  ;;  %v1274_v12 = vpop.permute.xlu1 %1273 }
 0x101   : > { %v1288_v41 = vsel %vm1285_vm11, %v1272_v58, %v1274_v12  ;;  %v1073_v25 = vsel %vm1067_vm0, %v11907_v22, %v11938_v39 }
 0x102   : > { %9209 = vmatmul.mubr.msk.bf16.vlgmr.msra.gmra.mxu0 %vm1434_vm14, %v11915_v26  ;;  %v1412_v60 = vsel %vm1404_vm13, %v1393_v40, %v1288_v41  ;;  %v1312_v37 = vsel %vm1294_vm3, %v11662_v36, %v1073_v25 }
 0x103   : > { %1552 = vmatprep.mubr.bf16.mxu0 %v11470_v59 }
 0x104   : > { %v1276_v51 = vpop.permute.xlu0 %1275  ;;  %v1113_v44 = vpop.permute.xlu1 %1112 }
 0x105   : > { %v1289_v52 = vsel %vm1285_vm11, %v1274_v12, %v1276_v51  ;;  %v1125_v31 = vsel %vm1120_vm1, %v11836_v20, %v1113_v44 }
 0x106   : > { %v1415_v57 = vsel %vm1404_vm13, %v1395_v53, %v1289_v52  ;;  %v1329_v43 = vsel %vm1319_vm5, %v1309_v61, %v1125_v31 }
 0x107   : > { %1493 = vmatprep.subr.bf16.mxu1 %v1415_v57 }
 0x108   : > { %v1115_v63 = vpop.permute.xlu0 %1114  ;;  %1494 = vmatpush1.bf16.msra.mxu1 %v1412_v60  ;;  %v1064_v2 = vpop.permute.xlu1 %1063 }
 0x109   : > { %v1126_v19 = vsel %vm1120_vm1, %v1113_v44, %v1115_v63  ;;  %v1074_v44 = vsel %vm1067_vm0, %v11938_v39, %v1064_v2 }
 0x10a   : > { %v1331_v22 = vsel %vm1319_vm5, %v1312_v37, %v1126_v19 }
 0x10b   : > { %9210 = vmatmul.mubr.msk.bf16.vlgmr.msra.gmra.mxu1 %vm1434_vm14, %v11915_v26 }
 0x10c   : > { %v1066_v58 = vpop.permute.xlu0 %1065  ;;  %v1157_v3 = vpop.permute.xlu1 %1156  ;;  %1593 = vmatprep.mubr.bf16.mxu1 %v11470_v59 }
 0x10d   : > { %v1169_v38 = vsel %vm1164_vm2, %v11850_v30, %v1157_v3  ;;  %v1075_v33 = vsel %vm1067_vm0, %v1064_v2, %v1066_v58  ;;  %v1315_v2 = vsel %vm1294_vm3, %v11749_v56, %v1074_v44 }
 0x10e   : > { %v1346_v13 = vsel %vm1336_vm7, %v1329_v43, %v1169_v38  ;;  %v1318_v54 = vsel %vm1294_vm3, %v11832_v17, %v1075_v33  ;;  %v10307_v33 = vld [vmem:[%s11569_s11 + $0x67c] ss:$36 sps:$4 sm:$0xff]  }
 0x110   : > { %v1159_v6 = vpop.permute.xlu0 %1158  ;;  %v1117_v1 = vpop.permute.xlu1 %1116 }
 0x111   : > { %v1170_v35 = vsel %vm1164_vm2, %v1157_v3, %v1159_v6 }
 0x112   : > { %v1348_v36 = vsel %vm1336_vm7, %v1331_v22, %v1170_v35 }
 0x114   : > { %v1119_v4 = vpop.permute.xlu0 %1118  ;;  %v1189_v7 = vpop.permute.xlu1 %1188 }
 0x115   : > { %v1201_v20 = vsel %vm1196_vm4, %v11856_v34, %v1189_v7 }
 0x116   : > { %v1363_v34 = vsel %vm1353_vm9, %v1346_v13, %v1201_v20 }
 0x118   : > { %v1191_v10 = vpop.permute.xlu0 %1190  ;;  %v1161_v14 = vpop.permute.xlu1 %1160 }
 0x119   : > { %v1202_v8 = vsel %vm1196_vm4, %v1189_v7, %v1191_v10  ;;  %v1171_v57 = vsel %vm1164_vm2, %v1159_v6, %v1161_v14 }
 0x11a   : > { %v1365_v47 = vsel %vm1353_vm9, %v1348_v36, %v1202_v8 }
 0x11c   : > { %v1163_v16 = vpop.permute.xlu0 %1162  ;;  %v1219_v15 = vpop.permute.xlu1 %1218 }
 0x11d   : > { %v1231_v30 = vsel %vm1226_vm6, %v11876_v49, %v1219_v15  ;;  %v1172_v52 = vsel %vm1164_vm2, %v1161_v14, %v1163_v16 }
 0x11e   : > { %v1380_v49 = vsel %vm1370_vm10, %v1363_v34, %v1231_v30 }
 0x120   : > { %v1221_v62 = vpop.permute.xlu0 %1220  ;;  %v1193_v5 = vpop.permute.xlu1 %1192 }
 0x121   : > { %v1232_v18 = vsel %vm1226_vm6, %v1219_v15, %v1221_v62  ;;  %v1203_v58 = vsel %vm1196_vm4, %v1191_v10, %v1193_v5 }
 0x122   : > { %v1382_v45 = vsel %vm1370_vm10, %v1365_v47, %v1232_v18 }
 0x124   : > { %v1195_v21 = vpop.permute.xlu0 %1194  ;;  %v1249_v0 = vpop.permute.xlu1 %1248 }
 0x125   : > { %v1261_v28 = vsel %vm1256_vm8, %v11899_v11, %v1249_v0  ;;  %v1128_v11 = vsel %vm1120_vm1, %v1117_v1, %v1119_v4  ;;  %v1204_v39 = vsel %vm1196_vm4, %v1193_v5, %v1195_v21 }
 0x126   : > { %v1397_v41 = vsel %vm1387_vm12, %v1380_v49, %v1261_v28 }
 0x128   : > { %v1251_v23 = vpop.permute.xlu0 %1250  ;;  %v1223_v24 = vpop.permute.xlu1 %1222 }
 0x129   : > { %v1262_v55 = vsel %vm1256_vm8, %v1249_v0, %v1251_v23  ;;  %v1233_v6 = vsel %vm1226_vm6, %v1221_v62, %v1223_v24 }
 0x12a   : > { %v1399_v50 = vsel %vm1387_vm12, %v1382_v45, %v1262_v55  ;;  %v10301_v55 = vld [vmem:[%s11569_s11 + $0x1fc] ss:$36 sps:$4 sm:$0xff]  }
 0x12b   : > { %v10299_v45 = vld [vmem:[%s11569_s11 + $0x1f8] ss:$36 sps:$4 sm:$0xff]  }
 0x12c   : > { %v1225_v9 = vpop.permute.xlu0 %1224  ;;  %v1278_v12 = vpop.permute.xlu1 %1277 }
 0x12d   : > { %v1290_v46 = vsel %vm1285_vm11, %v1276_v51, %v1278_v12  ;;  %v1127_v51 = vsel %vm1120_vm1, %v1115_v63, %v1117_v1  ;;  %v1335_v63 = vsel %vm1319_vm5, %v1318_v54, %v1128_v11  ;;  %v1234_v3 = vsel %vm1226_vm6, %v1223_v24, %v1225_v9  ;;  %v10302_v11 = vld [vmem:[%s11569_s11 + $0x1b0] ss:$36 sps:$4 sm:$0xff]   ;;  %v10316_v54 = vld [vmem:[%s11569_s11 + $0x124] ss:$36 sps:$4 sm:$0xff]  }
 0x12e   : > { %v1418_v53 = vsel %vm1404_vm13, %v1397_v41, %v1290_v46  ;;  %v1333_v1 = vsel %vm1319_vm5, %v1315_v2, %v1127_v51  ;;  %v1352_v17 = vsel %vm1336_vm7, %v1335_v63, %v1172_v52  ;;  %v10310_v41 = vld [vmem:[%s11569_s11 + $0x16c] ss:$36 sps:$4 sm:$0xff]   ;;  %v10313_v51 = vld [vmem:[%s11569_s11 + $0x634] ss:$36 sps:$4 sm:$0xff]   ;;  %v10325_v2 = vld [vmem:[%s11569_s11 + $0x5a4] ss:$36 sps:$4 sm:$0xff]  }
 0x12f   : > { %v1350_v7 = vsel %vm1336_vm7, %v1333_v1, %v1171_v57  ;;  %v1369_v14 = vsel %vm1353_vm9, %v1352_v17, %v1204_v39  ;;  %v10308_v52 = vld [vmem:[%s11569_s11 + $0x168] ss:$36 sps:$4 sm:$0xff]   ;;  %v10314_v39 = vld [vmem:[%s11569_s11 + $0x120] ss:$36 sps:$4 sm:$0xff]   ;;  %v10320_v63 = vld [vmem:[%s11569_s11 + $0xd8] ss:$36 sps:$4 sm:$0xff]  }
 0x130   : > { %v1280_v42 = vpop.permute.xlu0 %1279  ;;  %v1253_v27 = vpop.permute.xlu1 %1252  ;;  %v1367_v10 = vsel %vm1353_vm9, %v1350_v7, %v1203_v58  ;;  %v1386_v16 = vsel %vm1370_vm10, %v1369_v14, %v1234_v3  ;;  %v10319_v57 = vld [vmem:[%s11569_s11 + $0x5ec] ss:$36 sps:$4 sm:$0xff]   ;;  %v10323_v58 = vld [vmem:[%s11569_s11 + $0x5a0] ss:$36 sps:$4 sm:$0xff]   ;;  %v10328_v3 = vld [vmem:[%s11569_s11 + $0x94] ss:$36 sps:$4 sm:$0xff]  }
 0x131   : > { %v1291_v48 = vsel %vm1285_vm11, %v1278_v12, %v1280_v42  ;;  %v1263_v56 = vsel %vm1256_vm8, %v1251_v23, %v1253_v27  ;;  %v1384_v62 = vsel %vm1370_vm10, %v1367_v10, %v1233_v6  ;;  %v940_v12 = vld [vmem:[%s11491_s13] sm:$0x1]  ;;  %v10326_v17 = vld [vmem:[%s11569_s11 + $0x90] ss:$36 sps:$4 sm:$0xff]   ;;  %v10329_v6 = vld [vmem:[%s11569_s11 + $0x558] ss:$36 sps:$4 sm:$0xff]  }
 0x132   : > { %v1421_v32 = vsel %vm1404_vm13, %v1399_v50, %v1291_v48  ;;  %v1401_v25 = vsel %vm1387_vm12, %v1384_v62, %v1263_v56  ;;  %v10331_v1 = vld [vmem:[%s11569_s11 + $0x55c] ss:$36 sps:$4 sm:$0xff]   ;;  %v10337_v7 = vld [vmem:[%s11569_s11 + $0x514] ss:$36 sps:$4 sm:$0xff]   ;;  %v10332_v14 = vld [vmem:[%s11569_s11 + $0x48] ss:$36 sps:$4 sm:$0xff]  }
 0x133   : > { %1534 = vmatprep.subr.bf16.mxu0 %v1421_v32  ;;  %v10305_v32 = vld [vmem:[%s11569_s11 + $0x678] ss:$36 sps:$4 sm:$0xff]   ;;  %v10335_v56 = vld [vmem:[%s11569_s11 + $0x510] ss:$36 sps:$4 sm:$0xff]   ;;  %v10340_v10 = vld [vmem:[%s11569_s11 + $0x4] ss:$36 sps:$4 sm:$0xff]  }
 0x134   : > { %v1255_v40 = vpop.permute.xlu0 %1254  ;;  %1535 = vmatpush1.bf16.msra.mxu0 %v1418_v53  ;;  %v1282_v60 = vpop.permute.xlu1 %1281  ;;  %v10311_v53 = vld [vmem:[%s11569_s11 + $0x630] ss:$36 sps:$4 sm:$0xff]   ;;  %v10349_v62 = vld [vmem:[%s11569_s11 + $0x484] ss:$36 sps:$4 sm:$0xff]  }
 0x135   : > { %v1264_v4 = vsel %vm1256_vm8, %v1253_v27, %v1255_v40  ;;  %v1292_v15 = vsel %vm1285_vm11, %v1280_v42, %v1282_v60  ;;  %v10304_v27 = vld [vmem:[%s11569_s11 + $0x1b4] ss:$36 sps:$4 sm:$0xff]   ;;  %v10317_v40 = vld [vmem:[%s11569_s11 + $0x5e8] ss:$36 sps:$4 sm:$0xff]  }
 0x136   : > { %v1403_v23 = vsel %vm1387_vm12, %v1386_v16, %v1264_v4  ;;  %v1424_v19 = vsel %vm1404_vm13, %v1401_v25, %v1292_v15  ;;  %v10334_v4 = vld [vmem:[%s11569_s11 + $0x4c] ss:$36 sps:$4 sm:$0xff]   ;;  %v10338_v15 = vld [vmem:[%s11569_s11] ss:$36 sps:$4 sm:$0xff]  }
 0x137   : > { %9211 = vmatmul.mubr.msk.bf16.vlgmr.msra.gmra.mxu0 %vm1434_vm14, %v11915_v26  ;;  %v10343_v16 = vld [vmem:[%s11569_s11 + $0x4cc] ss:$36 sps:$4 sm:$0xff]   ;;  %v10355_v25 = vld [vmem:[%s11569_s11 + $0x8bc] ss:$36 sps:$4 sm:$0xff]  }
 0x138   : > { %v1284_v5 = vpop.permute.xlu0 %1283  ;;  %v1657_v21 = vpop.permute.xlu1 %1656  ;;  %1742 = vmatprep.mubr.bf16.mxu0 %v11470_v59 }
 0x139   : > { %v1293_v0 = vsel %vm1285_vm11, %v1282_v60, %v1284_v5  ;;  %v10322_v60 = vld [vmem:[%s11569_s11 + $0xdc] ss:$36 sps:$4 sm:$0xff]   ;;  %v10341_v5 = vld [vmem:[%s11569_s11 + $0x4c8] ss:$36 sps:$4 sm:$0xff]  }
 0x13a   : > { %v1427_v24 = vsel %vm1404_vm13, %v1403_v23, %v1293_v0  ;;  %v10344_v0 = vld [vmem:[%s11569_s11 + $0x438] ss:$36 sps:$4 sm:$0xff]   ;;  %v10347_v23 = vld [vmem:[%s11569_s11 + $0x480] ss:$36 sps:$4 sm:$0xff]  }
 0x13b   : > { %1575 = vmatprep.subr.bf16.mxu1 %v1427_v24  ;;  %v10352_v24 = vld [vmem:[%s11569_s11 + $0x3f4] ss:$36 sps:$4 sm:$0xff]  }
 0x13c   : > { %v1659_v31 = vpop.permute.xlu0 %1658  ;;  %v1655_v35 = vpop.permute.xlu1 %1654  ;;  %1576 = vmatpush1.bf16.msra.mxu1 %v1424_v19  ;;  %v10353_v19 = vld [vmem:[%s11569_s11 + $0x8b8] ss:$36 sps:$4 sm:$0xff]  }
 0x13d   : > { %v1673_v37 = vsel %vm1164_vm2, %v1657_v21, %v1659_v31  ;;  %v1672_v38 = vsel %vm1164_vm2, %v1655_v35, %v1657_v21  ;;  %v10346_v21 = vld [vmem:[%s11569_s11 + $0x43c] ss:$36 sps:$4 sm:$0xff]   ;;  %v10361_v35 = vld [vmem:[%s11569_s11 + $0x874] ss:$36 sps:$4 sm:$0xff]  }
 0x13e   : > { %v1687_v8 = vand.u32 %v1685_v29, %v1672_v38  ;;  %v1690_v9 = vand.u32 %v1685_v29, %v1673_v37  ;;  %v10356_v37 = vld [vmem:[%s11569_s11 + $0x3a8] ss:$36 sps:$4 sm:$0xff]   ;;  %v10359_v38 = vld [vmem:[%s11569_s11 + $0x870] ss:$36 sps:$4 sm:$0xff]  }
 0x13f   : > { %9212 = vmatmul.mubr.msk.bf16.vlgmr.msra.gmra.mxu1 %vm1434_vm14, %v11915_v26 }
 0x140   : > { %v1661_v61 = vpop.permute.xlu0 %1660  ;;  %1724 = vmatprep.subr.bf16.mxu0 %v1690_v9  ;;  %v1663_v22 = vpop.permute.xlu1 %1662  ;;  %1783 = vmatprep.mubr.bf16.mxu1 %v11470_v59  ;;  %v10367_v9 = vld [vmem:[%s11569_s11 + $0x82c] ss:$36 sps:$4 sm:$0xff]  }
 0x141   : > { %v1674_v20 = vsel %vm1164_vm2, %v1659_v31, %v1661_v61  ;;  %v1675_v18 = vsel %vm1164_vm2, %v1661_v61, %v1663_v22  ;;  %1725 = vmatpush1.bf16.msra.mxu0 %v1687_v8  ;;  %v10358_v31 = vld [vmem:[%s11569_s11 + $0x3ac] ss:$36 sps:$4 sm:$0xff]   ;;  %v10364_v8 = vld [vmem:[%s11569_s11 + $0x364] ss:$36 sps:$4 sm:$0xff]  }
 0x142   : > { %v1693_v43 = vand.u32 %v1685_v29, %v1674_v20  ;;  %v1696_v36 = vand.u32 %v1685_v29, %v1675_v18  ;;  %v10365_v61 = vld [vmem:[%s11569_s11 + $0x828] ss:$36 sps:$4 sm:$0xff]   ;;  %v10368_v18 = vld [vmem:[%s11569_s11 + $0x318] ss:$36 sps:$4 sm:$0xff]  }
 0x143   : > { %v10373_v20 = vld [vmem:[%s11569_s11 + $0x7e4] ss:$36 sps:$4 sm:$0xff]  }
 0x144   : > { %v1665_v30 = vpop.permute.xlu0 %1664  ;;  %9214 = vmatmul.mubr.msk.bf16.vlgmr.msra.gmra.mxu0 %vm13358_vm15, %v940_v12  ;;  %v1667_v26 = vpop.permute.xlu1 %1666  ;;  %1765 = vmatprep.subr.bf16.mxu1 %v1696_v36  ;;  %v10376_v36 = vld [vmem:[%s11569_s11 + $0x2d4] ss:$36 sps:$4 sm:$0xff]  }
 0x145   : > { %v1676_v13 = vsel %vm1164_vm2, %v1663_v22, %v1665_v30  ;;  %v1677_v47 = vsel %vm1164_vm2, %v1665_v30, %v1667_v26  ;;  %1766 = vmatpush1.bf16.msra.mxu1 %v1693_v43  ;;  %1824 = vmatprep.mubr.bf16.mxu0 %v11470_v59  ;;  %v10370_v22 = vld [vmem:[%s11569_s11 + $0x31c] ss:$36 sps:$4 sm:$0xff]  }
 0x146   : > { %v1699_v28 = vand.u32 %v1685_v29, %v1676_v13  ;;  %v1702_v34 = vand.u32 %v1685_v29, %v1677_v47  ;;  %v10371_v43 = vld [vmem:[%s11569_s11 + $0x7e0] ss:$36 sps:$4 sm:$0xff]   ;;  %v10382_v13 = vld [vmem:[%s11569_s11 + $0x28c] ss:$36 sps:$4 sm:$0xff]   ;;  %v10385_v47 = vld [vmem:[%s11569_s11 + $0x754] ss:$36 sps:$4 sm:$0xff]  }
 0x147   : > { %v10379_v30 = vld [vmem:[%s11569_s11 + $0x79c] ss:$36 sps:$4 sm:$0xff]  }
 0x148   : > { %1806 = vmatprep.subr.bf16.mxu0 %v1702_v34  ;;  %v1671_v46 = vpop.permute.xlu1 %1670  ;;  %v1669_v42 = vpop.permute.xlu0 %1668  ;;  %9215 = vmatmul.mubr.msk.bf16.vlgmr.msra.gmra.mxu1 %vm13358_vm15, %v940_v12  ;;  %v10383_v34 = vld [vmem:[%s11569_s11 + $0x750] ss:$36 sps:$4 sm:$0xff]  }
 0x149   : > { %v1678_v49 = vsel %vm1164_vm2, %v1667_v26, %v1669_v42  ;;  %v1679_v48 = vsel %vm1164_vm2, %v1669_v42, %v1671_v46  ;;  %1807 = vmatpush1.bf16.msra.mxu0 %v1699_v28  ;;  %1865 = vmatprep.mubr.bf16.mxu1 %v11470_v59  ;;  %v10374_v26 = vld [vmem:[%s11569_s11 + $0x2d0] ss:$36 sps:$4 sm:$0xff]   ;;  %v10380_v28 = vld [vmem:[%s11569_s11 + $0x288] ss:$36 sps:$4 sm:$0xff]   ;;  %v10386_v42 = vld [vmem:[%s11569_s11 + $0x240] ss:$36 sps:$4 sm:$0xff]  }
 0x14a   : > { %v1705_v50 = vand.u32 %v1685_v29, %v1678_v49  ;;  %v1708_v44 = vand.u32 %v1685_v29, %v1679_v48  ;;  %5487 = vmatprep.subr.bf16.mxu0 %v10301_v55  ;;  %v10350_v29 = vld [vmem:[%s11569_s11 + $0x3f0] ss:$36 sps:$4 sm:$0xff]   ;;  %v10377_v55 = vld [vmem:[%s11569_s11 + $0x798] ss:$36 sps:$4 sm:$0xff]   ;;  %v10392_v48 = vld [vmem:[%s11569_s11 + $0x6c0] ss:$36 sps:$4 sm:$0xff]  }
 0x14b   : > { %v10391_v46 = vld [vmem:[%s11569_s11 + $0x70c] ss:$36 sps:$4 sm:$0xff]   ;;  %v10397_v49 = vld [vmem:[%s11569_s11 + $0xafc] ss:$36 sps:$4 sm:$0xff]  }
 0x14c   : > { %9216 = vmatmul.mubr.msk.bf16.vlgmr.msra.gmra.mxu0 %vm13358_vm15, %v940_v12  ;;  %1847 = vmatprep.subr.bf16.mxu1 %v1708_v44 }
 0x14d   : > { %1848 = vmatpush1.bf16.msra.mxu1 %v1705_v50  ;;  %5488 = vmatpush1.bf16.msra.mxu0 %v10299_v45  ;;  %v10388_v45 = vld [vmem:[%s11569_s11 + $0x244] ss:$36 sps:$4 sm:$0xff]   ;;  %v10403_v50 = vld [vmem:[%s11569_s11 + $0xf7c] ss:$36 sps:$4 sm:$0xff]  }
 0x14e   : > { %5489 = vmatprep.subr.bf16.mxu0 %v10304_v27  ;;  %5528 = vmatprep.subr.bf16.mxu1 %v10307_v33  ;;  %v10389_v27 = vld [vmem:[%s11569_s11 + $0x708] ss:$36 sps:$4 sm:$0xff]  }
 0x14f   : > { %v10394_v33 = vld [vmem:[%s11569_s11 + $0x6c4] ss:$36 sps:$4 sm:$0xff]  }
 0x150   : > { %9217 = vmatmul.mubr.msk.bf16.vlgmr.msra.gmra.mxu1 %vm13358_vm15, %v940_v12  ;;  %v10362_v12 = vld [vmem:[%s11569_s11 + $0x360] ss:$36 sps:$4 sm:$0xff]  }
 0x151   : > { %5490 = vmatpush1.bf16.msra.mxu0 %v10302_v11  ;;  %5529 = vmatpush1.bf16.msra.mxu1 %v10305_v32 }
 0x152   : > { %5491 = vmatprep.subr.bf16.mxu0 %v10310_v41  ;;  %5530 = vmatprep.subr.bf16.mxu1 %v10313_v51 }
 0x155   : > { %5492 = vmatpush1.bf16.msra.mxu0 %v10308_v52  ;;  %5531 = vmatpush1.bf16.msra.mxu1 %v10311_v53 }
 0x156   : > { %5493 = vmatprep.subr.bf16.mxu0 %v10316_v54  ;;  %5532 = vmatprep.subr.bf16.mxu1 %v10319_v57 }
 0x159   : > { %5494 = vmatpush1.bf16.msra.mxu0 %v10314_v39  ;;  %5533 = vmatpush1.bf16.msra.mxu1 %v10317_v40  ;;  %v12136_v39 = vpop.permute.xlu0 %1431 }
 0x15a   : > { %5495 = vmatprep.subr.bf16.mxu0 %v10322_v60  ;;  %5534 = vmatprep.subr.bf16.mxu1 %v10325_v2 }
 0x15d   : > { %5496 = vmatpush1.bf16.msra.mxu0 %v10320_v63  ;;  %5535 = vmatpush1.bf16.msra.mxu1 %v10323_v58  ;;  %v12139_v63 = vpop.permute.xlu1 %1616 }
 0x15e   : > { %5497 = vmatprep.subr.bf16.mxu0 %v10328_v3  ;;  %5536 = vmatprep.subr.bf16.mxu1 %v10331_v1 }
 0x161   : > { %5498 = vmatpush1.bf16.msra.mxu0 %v10326_v17  ;;  %5537 = vmatpush1.bf16.msra.mxu1 %v10329_v6 }
 0x162   : > { %5499 = vmatprep.subr.bf16.mxu0 %v10334_v4  ;;  %5538 = vmatprep.subr.bf16.mxu1 %v10337_v7 }
 0x165   : > { %5500 = vmatpush1.bf16.msra.mxu0 %v10332_v14  ;;  %5539 = vmatpush1.bf16.msra.mxu1 %v10335_v56 }
 0x166   : > { %5501 = vmatprep.subr.bf16.mxu0 %v10340_v10  ;;  %5540 = vmatprep.subr.bf16.mxu1 %v10343_v16 }
 0x169   : > { %5502 = vmatpush1.bf16.msra.mxu0 %v10338_v15  ;;  %5541 = vmatpush1.bf16.msra.mxu1 %v10341_v5 }
 0x16a   : > { %5503 = vmatprep.subr.bf16.mxu0 %v10346_v21  ;;  %5542 = vmatprep.subr.bf16.mxu1 %v10349_v62  ;;  %v12149_v21 = vpop.permute.xlu1 %1884 }
 0x16d   : > { %5504 = vmatpush2.bf16.msra.mxu0 %v10344_v0  ;;  %5543 = vmatpush1.bf16.msra.mxu1 %v10347_v23 }
 0x16e   : > { %5505 = vmatprep.subr.bf16.mxu0 %v10352_v24  ;;  %5544 = vmatprep.subr.bf16.mxu1 %v10355_v25 }
 0x171   : > { %5506 = vmatpush2.bf16.msra.mxu0 %v10350_v29  ;;  %5545 = vmatpush2.bf16.msra.mxu1 %v10353_v19 }
 0x172   : > { %5507 = vmatprep.subr.bf16.mxu0 %v10358_v31  ;;  %5546 = vmatprep.subr.bf16.mxu1 %v10361_v35 }
 0x175   : > { %5508 = vmatpush2.bf16.msra.mxu0 %v10356_v37  ;;  %5547 = vmatpush2.bf16.msra.mxu1 %v10359_v38 }
 0x176   : > { %5509 = vmatprep.subr.bf16.mxu0 %v10364_v8  ;;  %5548 = vmatprep.subr.bf16.mxu1 %v10367_v9 }
 0x179   : > { %5510 = vmatpush2.bf16.msra.mxu0 %v10362_v12  ;;  %5549 = vmatpush2.bf16.msra.mxu1 %v10365_v61 }
 0x17a   : > { %5511 = vmatprep.subr.bf16.mxu0 %v10370_v22  ;;  %5550 = vmatprep.subr.bf16.mxu1 %v10373_v20 }
 0x17d   : > { %5512 = vmatpush2.bf16.msra.mxu0 %v10368_v18  ;;  %5551 = vmatpush2.bf16.msra.mxu1 %v10371_v43 }
 0x17e   : > { %5513 = vmatprep.subr.bf16.mxu0 %v10376_v36  ;;  %5552 = vmatprep.subr.bf16.mxu1 %v10379_v30  ;;  %v10395_v36 = vld [vmem:[%s11569_s11 + $0xaf8] ss:$36 sps:$4 sm:$0xff]  }
 0x181   : > { %5514 = vmatpush2.bf16.msra.mxu0 %v10374_v26  ;;  %5553 = vmatpush2.bf16.msra.mxu1 %v10377_v55 }
 0x182   : > { %5515 = vmatprep.subr.bf16.mxu0 %v10382_v13  ;;  %5554 = vmatprep.subr.bf16.mxu1 %v10385_v47  ;;  %v10400_v47 = vld [vmem:[%s11569_s11 + $0xab4] ss:$36 sps:$4 sm:$0xff]  }
 0x185   : > { %5516 = vmatpush2.bf16.msra.mxu0 %v10380_v28  ;;  %5555 = vmatpush2.bf16.msra.mxu1 %v10383_v34 }
 0x186   : > { %5517 = vmatprep.subr.bf16.mxu0 %v10388_v45  ;;  %5556 = vmatprep.subr.bf16.mxu1 %v10391_v46 }
 0x189   : > { %5518 = vmatpush2.bf16.msra.mxu0 %v10386_v42  ;;  %5557 = vmatpush2.bf16.msra.mxu1 %v10389_v27 }
 0x18a   : > { %5558 = vmatprep.subr.bf16.mxu1 %v10394_v33  ;;  %5569 = vmatprep.subr.bf16.mxu0 %v10397_v49  ;;  %v10398_v49 = vld [vmem:[%s11569_s11 + $0xab0] ss:$36 sps:$4 sm:$0xff]  }
 0x18d   : > { %5559 = vmatpush2.bf16.msra.mxu1 %v10392_v48  ;;  %v10401_v48 = vld [vmem:[%s11569_s11 + $0xf78] ss:$36 sps:$4 sm:$0xff]  }
 0x18e   : > { %5610 = vmatprep.subr.bf16.mxu1 %v10403_v50 }
 0x1c2   : > { %v1472_v44 = vpop.f32.mrf.mxu0 }
 0x1c3   : > { %v1473_v2 = vadd.f32 %v1472_v44, %v12136_v39 }
 0x1c4   : > { %v1474_v11 = vpop.f32.mrf.mxu0 }
 0x1c5   : > { %v1475_v3 = vadd.f32 %v1474_v11, %v12136_v39  ;;  %v1619_v17 = vmul.f32 %v12139_v63, %v1473_v2  ;;  %vm1602_vm7 = vcmp.ge.f32.partialorder %v1473_v2, 0.0  ;;  %v10406_v11 = vld [vmem:[%s11569_s11 + $0xa6c] ss:$36 sps:$4 sm:$0xff]  }
 0x1c6   : > { %v1476_v32 = vpop.f32.mrf.mxu0 }
 0x1c7   : > { %v1620_v7 = vmul.f32 %v12139_v63, %v1475_v3  ;;  %vm1603_vm10 = vcmp.ge.f32.partialorder %v1475_v3, 0.0  ;;  %v1627_v10 = vsel %vm1602_vm7, %v1473_v2, %v1619_v17  ;;  %v10409_v32 = vld [vmem:[%s11569_s11 + $0xf34] ss:$36 sps:$4 sm:$0xff]   ;;  %v10404_v2 = vld [vmem:[%s11569_s11 + $0xa68] ss:$36 sps:$4 sm:$0xff]  }
 0x1c8   : > { %v1477_v41 = vpop.f32.mrf.mxu0  ;;  %v10415_v17 = vld [vmem:[%s11569_s11 + $0xeec] ss:$36 sps:$4 sm:$0xff]  }
 0x1c9   : > { %v1628_v23 = vsel %vm1603_vm10, %v1475_v3, %v1620_v7  ;;  %v10412_v3 = vld [vmem:[%s11569_s11 + $0xa24] ss:$36 sps:$4 sm:$0xff]  }
 0x1cb   : > { %v1513_v51 = vpop.f32.mrf.mxu1 }
 0x1cc   : > { %v1514_v6 = vadd.f32 %v1513_v51, %v12136_v39 }
 0x1cd   : > { %v1515_v52 = vpop.f32.mrf.mxu1 }
 0x1ce   : > { %v1516_v14 = vadd.f32 %v1515_v52, %v12136_v39  ;;  %v1621_v15 = vmul.f32 %v12139_v63, %v1514_v6  ;;  %vm1604_vm13 = vcmp.ge.f32.partialorder %v1514_v6, 0.0 }
 0x1cf   : > { %v1517_v53 = vpop.f32.mrf.mxu1 }
 0x1d0   : > { %v1622_v25 = vmul.f32 %v12139_v63, %v1516_v14  ;;  %vm1605_vm15 = vcmp.ge.f32.partialorder %v1516_v14, 0.0  ;;  %v1629_v31 = vsel %vm1604_vm13, %v1514_v6, %v1621_v15  ;;  %v10421_v15 = vld [vmem:[%s11569_s11 + $0xea4] ss:$36 sps:$4 sm:$0xff]  }
 0x1d1   : > { %v1518_v54 = vpop.f32.mrf.mxu1 }
 0x1d2   : > { %v1630_v22 = vsel %vm1605_vm15, %v1516_v14, %v1622_v25  ;;  %v10425_v25 = vld [vmem:[%s11569_s11 + $0xe58] ss:$36 sps:$4 sm:$0xff]  }
 0x1f7   : > { %v12134_v57 = vpop.f32.mrf.mxu0 }
 0x1f9   : > { %v1556_v40 = vpop.f32.mrf.mxu0 }
 0x1fa   : > { %v1557_v0 = vadd.f32 %v1556_v40, %v12136_v39 }
 0x1fb   : > { %v1558_v60 = vpop.f32.mrf.mxu0 }
 0x1fc   : > { %v1624_v9 = vmul.f32 %v12139_v63, %v1557_v0  ;;  %vm1607_vm7 = vcmp.ge.f32.partialorder %v1557_v0, 0.0 }
 0x1fd   : > { %v1559_v58 = vpop.f32.mrf.mxu0 }
 0x1fe   : > { %v1632_v46 = vsel %vm1607_vm7, %v1557_v0, %v1624_v9  ;;  %v10407_v58 = vld [vmem:[%s11569_s11 + $0xf30] ss:$36 sps:$4 sm:$0xff]   ;;  %v10437_v9 = vld [vmem:[%s11569_s11 + $0xdc8] ss:$36 sps:$4 sm:$0xff]   ;;  %vm6539_vm7 = vcmask 261120  }
 0x1ff   : > { %v12142_v1 = vpop.f32.mrf.mxu1  ;;  %v10424_v0 = vld [vmem:[%s11569_s11 + $0x994] ss:$36 sps:$4 sm:$0xff]  }
 0x201   : > { %v1597_v4 = vpop.f32.mrf.mxu1 }
 0x202   : > { %v1598_v12 = vadd.f32 %v1597_v4, %v12136_v39 }
 0x203   : > { %v1599_v56 = vpop.f32.mrf.mxu1 }
 0x204   : > { %v1744_v16 = vpop.f32.mrf.mxu0  ;;  %v1626_v34 = vmul.f32 %v12139_v63, %v1598_v12  ;;  %vm1609_vm15 = vcmp.ge.f32.partialorder %v1598_v12, 0.0  ;;  %v10410_v56 = vld [vmem:[%s11569_s11 + $0xa20] ss:$36 sps:$4 sm:$0xff]  }
 0x205   : > { %v1874_v5 = vadd.f32 %v1744_v16, %v1627_v10  ;;  %v1600_v62 = vpop.f32.mrf.mxu1  ;;  %v10413_v10 = vld [vmem:[%s11569_s11 + $0xee8] ss:$36 sps:$4 sm:$0xff]   ;;  %v10418_v16 = vld [vmem:[%s11569_s11 + $0x9dc] ss:$36 sps:$4 sm:$0xff]  }
 0x206   : > { %v1746_v24 = vpop.f32.mrf.mxu0  ;;  %v1634_v52 = vsel %vm1609_vm15, %v1598_v12, %v1626_v34  ;;  %v10419_v62 = vld [vmem:[%s11569_s11 + $0xea0] ss:$36 sps:$4 sm:$0xff]   ;;  %v10452_v34 = vld [vmem:[%s11569_s11 + $0xca8] ss:$36 sps:$4 sm:$0xff]  }
 0x207   : > { %v1875_v29 = vadd.f32 %v1746_v24, %v1628_v23  ;;  %v1887_v37 = vadd.f32 %v12149_v21, %v1874_v5  ;;  %v10416_v5 = vld [vmem:[%s11569_s11 + $0x9d8] ss:$36 sps:$4 sm:$0xff]   ;;  %v10422_v24 = vld [vmem:[%s11569_s11 + $0x990] ss:$36 sps:$4 sm:$0xff]  }
 0x208   : > { %v1748_v19 = vpop.f32.mrf.mxu0  ;;  %v1785_v35 = vpop.f32.mrf.mxu1  ;;  %v10427_v23 = vld [vmem:[%s11569_s11 + $0xe5c] ss:$36 sps:$4 sm:$0xff]  }
 0x209   : > { %v1888_v38 = vadd.f32 %v12149_v21, %v1875_v29  ;;  %v1876_v8 = vadd.f32 %v1785_v35, %v1629_v31  ;;  %v12163_v13 = vpack.c.bf16 %v1887_v37, %v1887_v37  ;;  %v10430_v29 = vld [vmem:[%s11569_s11 + $0x94c] ss:$36 sps:$4 sm:$0xff]   ;;  %v10433_v19 = vld [vmem:[%s11569_s11 + $0xe14] ss:$36 sps:$4 sm:$0xff]   ;;  %v10436_v37 = vld [vmem:[%s11569_s11 + $0x904] ss:$36 sps:$4 sm:$0xff]  }
 0x20a   : > { %v1749_v61 = vpop.f32.mrf.mxu0  ;;  %v1787_v20 = vpop.f32.mrf.mxu1  ;;  %v10428_v31 = vld [vmem:[%s11569_s11 + $0x948] ss:$36 sps:$4 sm:$0xff]   ;;  %v10431_v35 = vld [vmem:[%s11569_s11 + $0xe10] ss:$36 sps:$4 sm:$0xff]   ;;  %v10442_v12 = vld [vmem:[%s11569_s11 + $0xd3c] ss:$36 sps:$4 sm:$0xff]  }
 0x20b   : > { %v12157_v18 = vpack.c.bf16 %v1888_v38, %v1888_v38  ;;  %v1877_v43 = vadd.f32 %v1787_v20, %v1630_v22  ;;  %v1889_v30 = vadd.f32 %v12149_v21, %v1876_v8  ;;  %v10439_v38 = vld [vmem:[%s11569_s11 + $0xdcc] ss:$36 sps:$4 sm:$0xff]   ;;  %v10434_v8 = vld [vmem:[%s11569_s11 + $0x900] ss:$36 sps:$4 sm:$0xff]   ;;  %v10440_v22 = vld [vmem:[%s11569_s11 + $0xd38] ss:$36 sps:$4 sm:$0xff]  }
 0x20c   : > { %v1789_v26 = vpop.f32.mrf.mxu1  ;;  %v12161_v55 = vpop.f32.mrf.mxu0  ;;  %v10445_v61 = vld [vmem:[%s11569_s11 + $0xd84] ss:$36 sps:$4 sm:$0xff]  }
 0x20d   : > { %v1890_v28 = vadd.f32 %v12149_v21, %v1877_v43  ;;  %5519 = vmatprep.mubr.bf16.mxu0 %v12157_v18  ;;  %v12174_v50 = vpack.c.bf16 %v1889_v30, %v1889_v30  ;;  %v10443_v20 = vld [vmem:[%s11569_s11 + $0xd80] ss:$36 sps:$4 sm:$0xff]   ;;  %v10448_v43 = vld [vmem:[%s11569_s11 + $0xcf4] ss:$36 sps:$4 sm:$0xff]  }
 0x20e   : > { %v1790_v45 = vpop.f32.mrf.mxu1  ;;  %v1828_v42 = vpop.f32.mrf.mxu0  ;;  %5520 = vmatmul.mubr.bf16.vlgmr.msra.gmra.mxu0 %v12163_v13  ;;  %v10446_v30 = vld [vmem:[%s11569_s11 + $0xcf0] ss:$36 sps:$4 sm:$0xff]   ;;  %v10449_v26 = vld [vmem:[%s11569_s11 + $0x11b8] ss:$36 sps:$4 sm:$0xff]  }
 0x20f   : > { %v12170_v27 = vpack.c.bf16 %v1890_v28, %v1890_v28  ;;  %v1879_v33 = vadd.f32 %v1828_v42, %v1632_v46  ;;  %5570 = vmatpush1.bf16.msra.mxu0 %v10395_v36  ;;  %v10451_v36 = vld [vmem:[%s11569_s11 + $0x11bc] ss:$36 sps:$4 sm:$0xff]   ;;  %v10457_v28 = vld [vmem:[%s11569_s11 + $0x1174] ss:$36 sps:$4 sm:$0xff]   ;;  %v10460_v46 = vld [vmem:[%s11569_s11 + $0xc64] ss:$36 sps:$4 sm:$0xff]  }
 0x210   : > { %v12176_v44 = vpop.f32.mrf.mxu1  ;;  %5571 = vmatprep.subr.bf16.mxu0 %v10400_v47  ;;  %v1830_v41 = vpop.f32.mrf.mxu0  ;;  %v10454_v47 = vld [vmem:[%s11569_s11 + $0xcac] ss:$36 sps:$4 sm:$0xff]  }
 0x211   : > { %v1892_v51 = vadd.f32 %v12149_v21, %v1879_v33  ;;  %5560 = vmatprep.mubr.bf16.mxu1 %v12170_v27  ;;  %v10455_v45 = vld [vmem:[%s11569_s11 + $0x1170] ss:$36 sps:$4 sm:$0xff]   ;;  %v10458_v33 = vld [vmem:[%s11569_s11 + $0xc60] ss:$36 sps:$4 sm:$0xff]   ;;  %v10464_v41 = vld [vmem:[%s11569_s11 + $0xc18] ss:$36 sps:$4 sm:$0xff]  }
 0x212   : > { %v1869_v53 = vpop.f32.mrf.mxu1  ;;  %5561 = vmatmul.mubr.bf16.vlgmr.msra.gmra.mxu1 %v12174_v50  ;;  %v1831_v54 = vpop.f32.mrf.mxu0  ;;  %v10463_v42 = vld [vmem:[%s11569_s11 + $0x112c] ss:$36 sps:$4 sm:$0xff]  }
 0x213   : > { %v12183_v40 = vpack.c.bf16 %v1892_v51, %v1892_v51  ;;  %v1881_v60 = vadd.f32 %v1869_v53, %v1634_v52  ;;  %5572 = vmatpush1.bf16.msra.mxu0 %v10398_v49  ;;  %5611 = vmatpush1.bf16.msra.mxu1 %v10401_v48  ;;  %v10461_v49 = vld [vmem:[%s11569_s11 + $0x1128] ss:$36 sps:$4 sm:$0xff]   ;;  %v10466_v48 = vld [vmem:[%s11569_s11 + $0xc1c] ss:$36 sps:$4 sm:$0xff]   ;;  %v10472_v52 = vld [vmem:[%s11569_s11 + $0xbd4] ss:$36 sps:$4 sm:$0xff]  }
 0x214   : > { %5573 = vmatprep.subr.bf16.mxu0 %v10406_v11  ;;  %5612 = vmatprep.subr.bf16.mxu1 %v10409_v32  ;;  %v1871_v6 = vpop.f32.mrf.mxu1  ;;  %v10469_v11 = vld [vmem:[%s11569_s11 + $0x10e4] ss:$36 sps:$4 sm:$0xff]   ;;  %v1555_v32 = vadd.f32 %v12134_v57, %v12136_v39  ;;  %v10475_v53 = vld [vmem:[%s11569_s11 + $0x109c] ss:$36 sps:$4 sm:$0xff]   ;;  %v10470_v57 = vld [vmem:[%s11569_s11 + $0xbd0] ss:$36 sps:$4 sm:$0xff]  }
 0x215   : > { %v1894_v4 = vadd.f32 %v12149_v21, %v1881_v60  ;;  %5601 = vmatprep.mubr.bf16.mxu0 %v12183_v40  ;;  %v10467_v51 = vld [vmem:[%s11569_s11 + $0x10e0] ss:$36 sps:$4 sm:$0xff]   ;;  %v1596_v60 = vadd.f32 %v12142_v1, %v12136_v39  ;;  %v10479_v39 = vld [vmem:[%s11569_s11 + $0x1050] ss:$36 sps:$4 sm:$0xff]  }
 0x216   : > { %v1872_v7 = vpop.f32.mrf.mxu1  ;;  %v1623_v54 = vmul.f32 %v12139_v63, %v1555_v32  ;;  %vm1606_vm10 = vcmp.ge.f32.partialorder %v1555_v32, 0.0 }
 0x217   : > { %v12191_v14 = vpack.c.bf16 %v1894_v4, %v1894_v4  ;;  %5574 = vmatpush1.bf16.msra.mxu0 %v10404_v2  ;;  %5613 = vmatpush1.bf16.msra.mxu1 %v10407_v58  ;;  %v10473_v2 = vld [vmem:[%s11569_s11 + $0x1098] ss:$36 sps:$4 sm:$0xff]   ;;  %v10478_v58 = vld [vmem:[%s11569_s11 + $0xb8c] ss:$36 sps:$4 sm:$0xff]   ;;  %vm1608_vm13 = vcmp.ge.f32.partialorder %v1596_v60, 0.0 }
 0x218   : > { %5575 = vmatprep.subr.bf16.mxu0 %v10412_v3  ;;  %5614 = vmatprep.subr.bf16.mxu1 %v10415_v17  ;;  %v10481_v3 = vld [vmem:[%s11569_s11 + $0x1054] ss:$36 sps:$4 sm:$0xff]   ;;  %v1625_v17 = vmul.f32 %v12139_v63, %v1596_v60  ;;  %v1631_v6 = vsel %vm1606_vm10, %v1555_v32, %v1623_v54  ;;  %v10476_v4 = vld [vmem:[%s11569_s11 + $0xb88] ss:$36 sps:$4 sm:$0xff]   ;;  %v10482_v63 = vld [vmem:[%s11569_s11 + $0xb40] ss:$36 sps:$4 sm:$0xff]  }
 0x219   : > { %5642 = vmatprep.mubr.bf16.mxu1 %v12191_v14  ;;  %v1878_v1 = vadd.f32 %v12161_v55, %v1631_v6  ;;  %v10484_v7 = vld [vmem:[%s11569_s11 + $0xb44] ss:$36 sps:$4 sm:$0xff]   ;;  %v10533_v32 = vld [vmem:[%s11569_s11 + $0x4d0] ss:$36 sps:$4 sm:$0xff]   ;;  %v10544_v54 = vld [vmem:[%s11569_s11 + $0x3fc] ss:$36 sps:$4 sm:$0xff]  }
 0x21a   : > { %v10490_v55 = vld [vmem:[%s11569_s11 + $0xfc4] ss:$36 sps:$4 sm:$0xff]   ;;  %v10551_v6 = vld [vmem:[%s11569_s11 + $0x878] ss:$36 sps:$4 sm:$0xff]  }
 0x21b   : > { %5576 = vmatpush1.bf16.msra.mxu0 %v10410_v56  ;;  %5615 = vmatpush1.bf16.msra.mxu1 %v10413_v10  ;;  %v10487_v56 = vld [vmem:[%s11569_s11 + $0x100c] ss:$36 sps:$4 sm:$0xff]   ;;  %v1633_v10 = vsel %vm1608_vm13, %v1596_v60, %v1625_v17  ;;  %v10547_v60 = vld [vmem:[%s11569_s11 + $0x8c4] ss:$36 sps:$4 sm:$0xff]  }
 0x21c   : > { %5577 = vmatprep.subr.bf16.mxu0 %v10418_v16  ;;  %5616 = vmatprep.subr.bf16.mxu1 %v10421_v15  ;;  %v10485_v16 = vld [vmem:[%s11569_s11 + $0x1008] ss:$36 sps:$4 sm:$0xff]   ;;  %v1891_v15 = vadd.f32 %v12149_v21, %v1878_v1  ;;  %v10548_v17 = vld [vmem:[%s11569_s11 + $0x3b0] ss:$36 sps:$4 sm:$0xff]  }
 0x21d   : > { %v10554_v1 = vld [vmem:[%s11569_s11 + $0x368] ss:$36 sps:$4 sm:$0xff]  }
 0x21f   : > { %5578 = vmatpush1.bf16.msra.mxu0 %v10416_v5  ;;  %5617 = vmatpush1.bf16.msra.mxu1 %v10419_v62  ;;  %v1880_v5 = vadd.f32 %v12176_v44, %v1633_v10  ;;  %v10493_v62 = vld [vmem:[%s11569_s11 + $0x204] ss:$36 sps:$4 sm:$0xff]   ;;  %v10565_v10 = vld [vmem:[%s11569_s11 + $0x7ec] ss:$36 sps:$4 sm:$0xff]  }
 0x220   : > { %5579 = vmatprep.subr.bf16.mxu0 %v10424_v0  ;;  %5618 = vmatprep.subr.bf16.mxu1 %v10427_v23  ;;  %v10488_v0 = vld [vmem:[%s11569_s11 + $0xfc0] ss:$36 sps:$4 sm:$0xff]  }
 0x221   : > { %v10491_v23 = vld [vmem:[%s11569_s11 + $0x200] ss:$36 sps:$4 sm:$0xff]  }
 0x222   : > { %v10499_v44 = vld [vmem:[%s11569_s11 + $0x684] ss:$36 sps:$4 sm:$0xff]  }
 0x223   : > { %5580 = vmatpush1.bf16.msra.mxu0 %v10422_v24  ;;  %5619 = vmatpush1.bf16.msra.mxu1 %v10425_v25  ;;  %v12257_v24 = vpack.c.bf16 %v1891_v15, %v1891_v15  ;;  %v1893_v25 = vadd.f32 %v12149_v21, %v1880_v5  ;;  %v10502_v21 = vld [vmem:[%s11569_s11 + $0x174] ss:$36 sps:$4 sm:$0xff]   ;;  %v10568_v15 = vld [vmem:[%s11569_s11 + $0x2dc] ss:$36 sps:$4 sm:$0xff]   ;;  %v10571_v5 = vld [vmem:[%s11569_s11 + $0x7a4] ss:$36 sps:$4 sm:$0xff]  }
 0x224   : > { %5581 = vmatprep.subr.bf16.mxu0 %v10430_v29  ;;  %5620 = vmatprep.subr.bf16.mxu1 %v10433_v19  ;;  %v10496_v29 = vld [vmem:[%s11569_s11 + $0x1bc] ss:$36 sps:$4 sm:$0xff]  }
 0x225   : > { %v10494_v19 = vld [vmem:[%s11569_s11 + $0x1b8] ss:$36 sps:$4 sm:$0xff]  }
 0x227   : > { %5582 = vmatpush1.bf16.msra.mxu0 %v10428_v31  ;;  %5621 = vmatpush1.bf16.msra.mxu1 %v10431_v35  ;;  %v10497_v31 = vld [vmem:[%s11569_s11 + $0x680] ss:$36 sps:$4 sm:$0xff]   ;;  %v12265_v35 = vpack.c.bf16 %v1893_v25, %v1893_v25  ;;  %v10572_v25 = vld [vmem:[%s11569_s11 + $0x290] ss:$36 sps:$4 sm:$0xff]  }
 0x228   : > { %5583 = vmatprep.subr.bf16.mxu0 %v10436_v37  ;;  %5622 = vmatprep.subr.bf16.mxu1 %v10439_v38  ;;  %v10505_v37 = vld [vmem:[%s11569_s11 + $0x63c] ss:$36 sps:$4 sm:$0xff]   ;;  %v10500_v38 = vld [vmem:[%s11569_s11 + $0x170] ss:$36 sps:$4 sm:$0xff]  }
 0x22b   : > { %5584 = vmatpush1.bf16.msra.mxu0 %v10434_v8  ;;  %5623 = vmatpush1.bf16.msra.mxu1 %v10437_v9  ;;  %v10503_v8 = vld [vmem:[%s11569_s11 + $0x638] ss:$36 sps:$4 sm:$0xff]   ;;  %v10508_v9 = vld [vmem:[%s11569_s11 + $0x12c] ss:$36 sps:$4 sm:$0xff]  }
 0x22c   : > { %5585 = vmatprep.subr.bf16.mxu0 %v10442_v12  ;;  %5624 = vmatprep.subr.bf16.mxu1 %v10445_v61  ;;  %v10511_v12 = vld [vmem:[%s11569_s11 + $0x5f4] ss:$36 sps:$4 sm:$0xff]   ;;  %v10506_v61 = vld [vmem:[%s11569_s11 + $0x128] ss:$36 sps:$4 sm:$0xff]  }
 0x22f   : > { %5586 = vmatpush2.bf16.msra.mxu0 %v10440_v22  ;;  %5625 = vmatpush1.bf16.msra.mxu1 %v10443_v20  ;;  %v10509_v22 = vld [vmem:[%s11569_s11 + $0x5f0] ss:$36 sps:$4 sm:$0xff]   ;;  %v10514_v20 = vld [vmem:[%s11569_s11 + $0xe4] ss:$36 sps:$4 sm:$0xff]  }
 0x230   : > { %5587 = vmatprep.subr.bf16.mxu0 %v10448_v43  ;;  %5626 = vmatprep.subr.bf16.mxu1 %v10451_v36  ;;  %v10517_v43 = vld [vmem:[%s11569_s11 + $0x5ac] ss:$36 sps:$4 sm:$0xff]   ;;  %v10512_v36 = vld [vmem:[%s11569_s11 + $0xe0] ss:$36 sps:$4 sm:$0xff]  }
 0x233   : > { %5588 = vmatpush2.bf16.msra.mxu0 %v10446_v30  ;;  %5627 = vmatpush2.bf16.msra.mxu1 %v10449_v26  ;;  %v10515_v30 = vld [vmem:[%s11569_s11 + $0x5a8] ss:$36 sps:$4 sm:$0xff]   ;;  %v10520_v26 = vld [vmem:[%s11569_s11 + $0x9c] ss:$36 sps:$4 sm:$0xff]  }
 0x234   : > { %5589 = vmatprep.subr.bf16.mxu0 %v10454_v47  ;;  %5628 = vmatprep.subr.bf16.mxu1 %v10457_v28  ;;  %v10523_v47 = vld [vmem:[%s11569_s11 + $0x564] ss:$36 sps:$4 sm:$0xff]   ;;  %v10518_v28 = vld [vmem:[%s11569_s11 + $0x98] ss:$36 sps:$4 sm:$0xff]  }
 0x237   : > { %5590 = vmatpush2.bf16.msra.mxu0 %v10452_v34  ;;  %5629 = vmatpush2.bf16.msra.mxu1 %v10455_v45  ;;  %v10521_v34 = vld [vmem:[%s11569_s11 + $0x560] ss:$36 sps:$4 sm:$0xff]   ;;  %v10526_v45 = vld [vmem:[%s11569_s11 + $0x54] ss:$36 sps:$4 sm:$0xff]  }
 0x238   : > { %5591 = vmatprep.subr.bf16.mxu0 %v10460_v46  ;;  %5630 = vmatprep.subr.bf16.mxu1 %v10463_v42  ;;  %v10529_v46 = vld [vmem:[%s11569_s11 + $0x51c] ss:$36 sps:$4 sm:$0xff]   ;;  %v10524_v42 = vld [vmem:[%s11569_s11 + $0x50] ss:$36 sps:$4 sm:$0xff]  }
 0x23b   : > { %5592 = vmatpush2.bf16.msra.mxu0 %v10458_v33  ;;  %5631 = vmatpush2.bf16.msra.mxu1 %v10461_v49  ;;  %v10527_v33 = vld [vmem:[%s11569_s11 + $0x518] ss:$36 sps:$4 sm:$0xff]   ;;  %v10532_v49 = vld [vmem:[%s11569_s11 + $0xc] ss:$36 sps:$4 sm:$0xff]  }
 0x23c   : > { %5593 = vmatprep.subr.bf16.mxu0 %v10466_v48  ;;  %5632 = vmatprep.subr.bf16.mxu1 %v10469_v11  ;;  %v10535_v48 = vld [vmem:[%s11569_s11 + $0x4d4] ss:$36 sps:$4 sm:$0xff]   ;;  %v10530_v11 = vld [vmem:[%s11569_s11 + $0x8] ss:$36 sps:$4 sm:$0xff]  }
 0x23f   : > { %5594 = vmatpush2.bf16.msra.mxu0 %v10464_v41  ;;  %5633 = vmatpush2.bf16.msra.mxu1 %v10467_v51  ;;  %v10538_v41 = vld [vmem:[%s11569_s11 + $0x444] ss:$36 sps:$4 sm:$0xff]   ;;  %v10541_v51 = vld [vmem:[%s11569_s11 + $0x48c] ss:$36 sps:$4 sm:$0xff]  }
 0x240   : > { %5595 = vmatprep.subr.bf16.mxu0 %v10472_v52  ;;  %5634 = vmatprep.subr.bf16.mxu1 %v10475_v53  ;;  %v10536_v52 = vld [vmem:[%s11569_s11 + $0x440] ss:$36 sps:$4 sm:$0xff]   ;;  %v10539_v53 = vld [vmem:[%s11569_s11 + $0x488] ss:$36 sps:$4 sm:$0xff]  }
 0x243   : > { %5596 = vmatpush2.bf16.msra.mxu0 %v10470_v57  ;;  %5635 = vmatpush2.bf16.msra.mxu1 %v10473_v2  ;;  %v10542_v57 = vld [vmem:[%s11569_s11 + $0x3f8] ss:$36 sps:$4 sm:$0xff]   ;;  %v10545_v2 = vld [vmem:[%s11569_s11 + $0x8c0] ss:$36 sps:$4 sm:$0xff]  }
 0x244   : > { %5597 = vmatprep.subr.bf16.mxu0 %v10478_v58  ;;  %5636 = vmatprep.subr.bf16.mxu1 %v10481_v3  ;;  %v10550_v58 = vld [vmem:[%s11569_s11 + $0x3b4] ss:$36 sps:$4 sm:$0xff]   ;;  %v10553_v3 = vld [vmem:[%s11569_s11 + $0x87c] ss:$36 sps:$4 sm:$0xff]  }
 0x247   : > { %5598 = vmatpush2.bf16.msra.mxu0 %v10476_v4  ;;  %5637 = vmatpush2.bf16.msra.mxu1 %v10479_v39  ;;  %v10556_v4 = vld [vmem:[%s11569_s11 + $0x36c] ss:$36 sps:$4 sm:$0xff]   ;;  %v10559_v39 = vld [vmem:[%s11569_s11 + $0x834] ss:$36 sps:$4 sm:$0xff]  }
 0x248   : > { %5599 = vmatprep.subr.bf16.mxu0 %v10484_v7  ;;  %5638 = vmatprep.subr.bf16.mxu1 %v10487_v56  ;;  %v10557_v7 = vld [vmem:[%s11569_s11 + $0x830] ss:$36 sps:$4 sm:$0xff]   ;;  %v10562_v56 = vld [vmem:[%s11569_s11 + $0x324] ss:$36 sps:$4 sm:$0xff]  }
 0x24b   : > { %5600 = vmatpush2.bf16.msra.mxu0 %v10482_v63  ;;  %5639 = vmatpush2.bf16.msra.mxu1 %v10485_v16  ;;  %v10560_v63 = vld [vmem:[%s11569_s11 + $0x320] ss:$36 sps:$4 sm:$0xff]   ;;  %v10563_v16 = vld [vmem:[%s11569_s11 + $0x7e8] ss:$36 sps:$4 sm:$0xff]  }
 0x24c   : > { %5640 = vmatprep.subr.bf16.mxu1 %v10490_v55  ;;  %5651 = vmatprep.subr.bf16.mxu0 %v10493_v62  ;;  %v10566_v55 = vld [vmem:[%s11569_s11 + $0x2d8] ss:$36 sps:$4 sm:$0xff]   ;;  %v10569_v62 = vld [vmem:[%s11569_s11 + $0x7a0] ss:$36 sps:$4 sm:$0xff]  }
 0x24e   : > { %5602 = vmatmul.mubr.bf16.vlgmr.msra.gmra.mxu0 %v12257_v24 }
 0x24f   : > { %5641 = vmatpush2.bf16.msra.mxu1 %v10488_v0  ;;  %5652 = vmatpush1.bf16.msra.mxu0 %v10491_v23  ;;  %v10574_v0 = vld [vmem:[%s11569_s11 + $0x294] ss:$36 sps:$4 sm:$0xff]   ;;  %v10577_v23 = vld [vmem:[%s11569_s11 + $0x75c] ss:$36 sps:$4 sm:$0xff]  }
 0x250   : > { %5683 = vmatprep.mubr.bf16.mxu0 %v12157_v18  ;;  %5653 = vmatprep.subr.bf16.mxu0 %v10496_v29  ;;  %v10575_v29 = vld [vmem:[%s11569_s11 + $0x758] ss:$36 sps:$4 sm:$0xff]  }
 0x251   : > { %5692 = vmatprep.subr.bf16.mxu1 %v10499_v44  ;;  %v10580_v44 = vld [vmem:[%s11569_s11 + $0x24c] ss:$36 sps:$4 sm:$0xff]  }
 0x252   : > { %5643 = vmatmul.mubr.bf16.vlgmr.msra.gmra.mxu1 %v12265_v35 }
 0x253   : > { %5654 = vmatpush1.bf16.msra.mxu0 %v10494_v19  ;;  %5693 = vmatpush1.bf16.msra.mxu1 %v10497_v31  ;;  %v10583_v19 = vld [vmem:[%s11569_s11 + $0x714] ss:$36 sps:$4 sm:$0xff]   ;;  %v10578_v31 = vld [vmem:[%s11569_s11 + $0x248] ss:$36 sps:$4 sm:$0xff]  }
 0x254   : > { %5724 = vmatprep.mubr.bf16.mxu1 %v12170_v27  ;;  %5655 = vmatprep.subr.bf16.mxu0 %v10502_v21  ;;  %v10581_v21 = vld [vmem:[%s11569_s11 + $0x710] ss:$36 sps:$4 sm:$0xff]  }
 0x255   : > { %5694 = vmatprep.subr.bf16.mxu1 %v10505_v37  ;;  %v10586_v37 = vld [vmem:[%s11569_s11 + $0x6cc] ss:$36 sps:$4 sm:$0xff]  }
 0x257   : > { %5656 = vmatpush1.bf16.msra.mxu0 %v10500_v38  ;;  %5695 = vmatpush1.bf16.msra.mxu1 %v10503_v8  ;;  %v10589_v38 = vld [vmem:[%s11569_s11 + $0xb04] ss:$36 sps:$4 sm:$0xff]  }
 0x258   : > { %5657 = vmatprep.subr.bf16.mxu0 %v10508_v9  ;;  %5696 = vmatprep.subr.bf16.mxu1 %v10511_v12  ;;  %v10584_v8 = vld [vmem:[%s11569_s11 + $0x6c8] ss:$36 sps:$4 sm:$0xff]   ;;  %v10587_v9 = vld [vmem:[%s11569_s11 + $0xb00] ss:$36 sps:$4 sm:$0xff]  }
 0x259   : > { %v10592_v12 = vld [vmem:[%s11569_s11 + $0xabc] ss:$36 sps:$4 sm:$0xff]  }
 0x25b   : > { %5658 = vmatpush1.bf16.msra.mxu0 %v10506_v61  ;;  %5697 = vmatpush1.bf16.msra.mxu1 %v10509_v22  ;;  %v10595_v61 = vld [vmem:[%s11569_s11 + $0xf84] ss:$36 sps:$4 sm:$0xff]   ;;  %v10590_v22 = vld [vmem:[%s11569_s11 + $0xab8] ss:$36 sps:$4 sm:$0xff]  }
 0x25c   : > { %5659 = vmatprep.subr.bf16.mxu0 %v10514_v20  ;;  %5698 = vmatprep.subr.bf16.mxu1 %v10517_v43  ;;  %v10593_v20 = vld [vmem:[%s11569_s11 + $0xf80] ss:$36 sps:$4 sm:$0xff]   ;;  %v10598_v43 = vld [vmem:[%s11569_s11 + $0xa74] ss:$36 sps:$4 sm:$0xff]  }
 0x25f   : > { %5660 = vmatpush1.bf16.msra.mxu0 %v10512_v36  ;;  %5699 = vmatpush1.bf16.msra.mxu1 %v10515_v30  ;;  %v10601_v36 = vld [vmem:[%s11569_s11 + $0xf3c] ss:$36 sps:$4 sm:$0xff]   ;;  %v10596_v30 = vld [vmem:[%s11569_s11 + $0xa70] ss:$36 sps:$4 sm:$0xff]  }
 0x260   : > { %5661 = vmatprep.subr.bf16.mxu0 %v10520_v26  ;;  %5700 = vmatprep.subr.bf16.mxu1 %v10523_v47  ;;  %v10599_v26 = vld [vmem:[%s11569_s11 + $0xf38] ss:$36 sps:$4 sm:$0xff]   ;;  %v10604_v47 = vld [vmem:[%s11569_s11 + $0xa2c] ss:$36 sps:$4 sm:$0xff]  }
 0x263   : > { %5662 = vmatpush1.bf16.msra.mxu0 %v10518_v28  ;;  %5701 = vmatpush1.bf16.msra.mxu1 %v10521_v34  ;;  %v10607_v28 = vld [vmem:[%s11569_s11 + $0xef4] ss:$36 sps:$4 sm:$0xff]   ;;  %v10602_v34 = vld [vmem:[%s11569_s11 + $0xa28] ss:$36 sps:$4 sm:$0xff]  }
 0x264   : > { %5663 = vmatprep.subr.bf16.mxu0 %v10526_v45  ;;  %5702 = vmatprep.subr.bf16.mxu1 %v10529_v46  ;;  %v10605_v45 = vld [vmem:[%s11569_s11 + $0xef0] ss:$36 sps:$4 sm:$0xff]   ;;  %v10610_v46 = vld [vmem:[%s11569_s11 + $0x9e4] ss:$36 sps:$4 sm:$0xff]  }
 0x267   : > { %5664 = vmatpush1.bf16.msra.mxu0 %v10524_v42  ;;  %5703 = vmatpush1.bf16.msra.mxu1 %v10527_v33  ;;  %v10613_v42 = vld [vmem:[%s11569_s11 + $0xeac] ss:$36 sps:$4 sm:$0xff]   ;;  %v10608_v33 = vld [vmem:[%s11569_s11 + $0x9e0] ss:$36 sps:$4 sm:$0xff]  }
 0x268   : > { %5665 = vmatprep.subr.bf16.mxu0 %v10532_v49  ;;  %5704 = vmatprep.subr.bf16.mxu1 %v10535_v48  ;;  %v10611_v49 = vld [vmem:[%s11569_s11 + $0xea8] ss:$36 sps:$4 sm:$0xff]   ;;  %v10616_v48 = vld [vmem:[%s11569_s11 + $0x99c] ss:$36 sps:$4 sm:$0xff]  }
 0x26b   : > { %5666 = vmatpush1.bf16.msra.mxu0 %v10530_v11  ;;  %5705 = vmatpush1.bf16.msra.mxu1 %v10533_v32  ;;  %v10619_v11 = vld [vmem:[%s11569_s11 + $0xe64] ss:$36 sps:$4 sm:$0xff]   ;;  %v10614_v32 = vld [vmem:[%s11569_s11 + $0x998] ss:$36 sps:$4 sm:$0xff]  }
 0x26c   : > { %5667 = vmatprep.subr.bf16.mxu0 %v10538_v41  ;;  %5706 = vmatprep.subr.bf16.mxu1 %v10541_v51  ;;  %v10617_v41 = vld [vmem:[%s11569_s11 + $0xe60] ss:$36 sps:$4 sm:$0xff]   ;;  %v10622_v51 = vld [vmem:[%s11569_s11 + $0x954] ss:$36 sps:$4 sm:$0xff]  }
 0x26f   : > { %5668 = vmatpush2.bf16.msra.mxu0 %v10536_v52  ;;  %5707 = vmatpush1.bf16.msra.mxu1 %v10539_v53  ;;  %v10625_v52 = vld [vmem:[%s11569_s11 + $0xe1c] ss:$36 sps:$4 sm:$0xff]   ;;  %v10620_v53 = vld [vmem:[%s11569_s11 + $0x950] ss:$36 sps:$4 sm:$0xff]  }
 0x270   : > { %5669 = vmatprep.subr.bf16.mxu0 %v10544_v54  ;;  %5708 = vmatprep.subr.bf16.mxu1 %v10547_v60  ;;  %v10623_v54 = vld [vmem:[%s11569_s11 + $0xe18] ss:$36 sps:$4 sm:$0xff]   ;;  %v10628_v60 = vld [vmem:[%s11569_s11 + $0x90c] ss:$36 sps:$4 sm:$0xff]  }
 0x273   : > { %5670 = vmatpush2.bf16.msra.mxu0 %v10542_v57  ;;  %5709 = vmatpush2.bf16.msra.mxu1 %v10545_v2  ;;  %v10631_v57 = vld [vmem:[%s11569_s11 + $0xdd4] ss:$36 sps:$4 sm:$0xff]   ;;  %v10626_v2 = vld [vmem:[%s11569_s11 + $0x908] ss:$36 sps:$4 sm:$0xff]  }
 0x274   : > { %5671 = vmatprep.subr.bf16.mxu0 %v10550_v58  ;;  %5710 = vmatprep.subr.bf16.mxu1 %v10553_v3  ;;  %v10629_v58 = vld [vmem:[%s11569_s11 + $0xdd0] ss:$36 sps:$4 sm:$0xff]   ;;  %v10634_v3 = vld [vmem:[%s11569_s11 + $0xd44] ss:$36 sps:$4 sm:$0xff]  }
 0x277   : > { %5672 = vmatpush2.bf16.msra.mxu0 %v10548_v17  ;;  %5711 = vmatpush2.bf16.msra.mxu1 %v10551_v6  ;;  %v10637_v17 = vld [vmem:[%s11569_s11 + $0xd8c] ss:$36 sps:$4 sm:$0xff]   ;;  %v10632_v6 = vld [vmem:[%s11569_s11 + $0xd40] ss:$36 sps:$4 sm:$0xff]  }
 0x278   : > { %5673 = vmatprep.subr.bf16.mxu0 %v10556_v4  ;;  %5712 = vmatprep.subr.bf16.mxu1 %v10559_v39  ;;  %v10635_v4 = vld [vmem:[%s11569_s11 + $0xd88] ss:$36 sps:$4 sm:$0xff]   ;;  %v10640_v39 = vld [vmem:[%s11569_s11 + $0xcfc] ss:$36 sps:$4 sm:$0xff]  }
 0x27b   : > { %5674 = vmatpush2.bf16.msra.mxu0 %v10554_v1  ;;  %5713 = vmatpush2.bf16.msra.mxu1 %v10557_v7  ;;  %v10643_v1 = vld [vmem:[%s11569_s11 + $0x11c4] ss:$36 sps:$4 sm:$0xff]   ;;  %v10638_v7 = vld [vmem:[%s11569_s11 + $0xcf8] ss:$36 sps:$4 sm:$0xff]  }
 0x27c   : > { %5675 = vmatprep.subr.bf16.mxu0 %v10562_v56  ;;  %5714 = vmatprep.subr.bf16.mxu1 %v10565_v10  ;;  %v10641_v56 = vld [vmem:[%s11569_s11 + $0x11c0] ss:$36 sps:$4 sm:$0xff]   ;;  %v10646_v10 = vld [vmem:[%s11569_s11 + $0xcb4] ss:$36 sps:$4 sm:$0xff]  }
 0x27f   : > { %5676 = vmatpush2.bf16.msra.mxu0 %v10560_v63  ;;  %5715 = vmatpush2.bf16.msra.mxu1 %v10563_v16  ;;  %v10649_v63 = vld [vmem:[%s11569_s11 + $0x117c] ss:$36 sps:$4 sm:$0xff]   ;;  %v10644_v16 = vld [vmem:[%s11569_s11 + $0xcb0] ss:$36 sps:$4 sm:$0xff]  }
 0x280   : > { %5677 = vmatprep.subr.bf16.mxu0 %v10568_v15  ;;  %5716 = vmatprep.subr.bf16.mxu1 %v10571_v5  ;;  %v10647_v15 = vld [vmem:[%s11569_s11 + $0x1178] ss:$36 sps:$4 sm:$0xff]   ;;  %v10652_v5 = vld [vmem:[%s11569_s11 + $0xc6c] ss:$36 sps:$4 sm:$0xff]  }
 0x283   : > { %5678 = vmatpush2.bf16.msra.mxu0 %v10566_v55  ;;  %5717 = vmatpush2.bf16.msra.mxu1 %v10569_v62  ;;  %v10655_v55 = vld [vmem:[%s11569_s11 + $0x1134] ss:$36 sps:$4 sm:$0xff]   ;;  %v10650_v62 = vld [vmem:[%s11569_s11 + $0xc68] ss:$36 sps:$4 sm:$0xff]  }
 0x284   : > { %5679 = vmatprep.subr.bf16.mxu0 %v10574_v0  ;;  %5718 = vmatprep.subr.bf16.mxu1 %v10577_v23  ;;  %v10653_v0 = vld [vmem:[%s11569_s11 + $0x1130] ss:$36 sps:$4 sm:$0xff]   ;;  %v10658_v23 = vld [vmem:[%s11569_s11 + $0xc24] ss:$36 sps:$4 sm:$0xff]  }
 0x287   : > { %5680 = vmatpush2.bf16.msra.mxu0 %v10572_v25  ;;  %5719 = vmatpush2.bf16.msra.mxu1 %v10575_v29  ;;  %v10661_v25 = vld [vmem:[%s11569_s11 + $0x10ec] ss:$36 sps:$4 sm:$0xff]   ;;  %v10656_v29 = vld [vmem:[%s11569_s11 + $0xc20] ss:$36 sps:$4 sm:$0xff]  }
 0x288   : > { %5681 = vmatprep.subr.bf16.mxu0 %v10580_v44  ;;  %5720 = vmatprep.subr.bf16.mxu1 %v10583_v19  ;;  %v10659_v44 = vld [vmem:[%s11569_s11 + $0x10e8] ss:$36 sps:$4 sm:$0xff]   ;;  %v10664_v19 = vld [vmem:[%s11569_s11 + $0xbdc] ss:$36 sps:$4 sm:$0xff]  }
 0x28b   : > { %5682 = vmatpush2.bf16.msra.mxu0 %v10578_v31  ;;  %5721 = vmatpush2.bf16.msra.mxu1 %v10581_v21  ;;  %v10667_v31 = vld [vmem:[%s11569_s11 + $0x10a4] ss:$36 sps:$4 sm:$0xff]   ;;  %v10662_v21 = vld [vmem:[%s11569_s11 + $0xbd8] ss:$36 sps:$4 sm:$0xff]  }
 0x28c   : > { %5722 = vmatprep.subr.bf16.mxu1 %v10586_v37  ;;  %5733 = vmatprep.subr.bf16.mxu0 %v10589_v38  ;;  %v10665_v37 = vld [vmem:[%s11569_s11 + $0x10a0] ss:$36 sps:$4 sm:$0xff]   ;;  %v10670_v38 = vld [vmem:[%s11569_s11 + $0xb94] ss:$36 sps:$4 sm:$0xff]  }
 0x28e   : > { %5684 = vmatmul.mubr.bf16.vlgmr.msra.gmra.mxu0 %v12163_v13 }
 0x28f   : > { %5723 = vmatpush2.bf16.msra.mxu1 %v10584_v8  ;;  %5734 = vmatpush1.bf16.msra.mxu0 %v10587_v9  ;;  %v10673_v8 = vld [vmem:[%s11569_s11 + $0x105c] ss:$36 sps:$4 sm:$0xff]   ;;  %v10668_v9 = vld [vmem:[%s11569_s11 + $0xb90] ss:$36 sps:$4 sm:$0xff]  }
 0x290   : > { %5765 = vmatprep.mubr.bf16.mxu0 %v12183_v40  ;;  %5735 = vmatprep.subr.bf16.mxu0 %v10592_v12  ;;  %v10671_v12 = vld [vmem:[%s11569_s11 + $0x1058] ss:$36 sps:$4 sm:$0xff]  }
 0x291   : > { %5774 = vmatprep.subr.bf16.mxu1 %v10595_v61  ;;  %v10676_v61 = vld [vmem:[%s11569_s11 + $0xb4c] ss:$36 sps:$4 sm:$0xff]  }
 0x292   : > { %5725 = vmatmul.mubr.bf16.vlgmr.msra.gmra.mxu1 %v12174_v50 }
 0x293   : > { %5736 = vmatpush1.bf16.msra.mxu0 %v10590_v22  ;;  %5775 = vmatpush1.bf16.msra.mxu1 %v10593_v20  ;;  %v10679_v22 = vld [vmem:[%s11569_s11 + $0x1014] ss:$36 sps:$4 sm:$0xff]   ;;  %v10674_v20 = vld [vmem:[%s11569_s11 + $0xb48] ss:$36 sps:$4 sm:$0xff]  }
 0x294   : > { %5806 = vmatprep.mubr.bf16.mxu1 %v12191_v14  ;;  %5737 = vmatprep.subr.bf16.mxu0 %v10598_v43  ;;  %v10677_v43 = vld [vmem:[%s11569_s11 + $0x1010] ss:$36 sps:$4 sm:$0xff]  }
 0x295   : > { %5776 = vmatprep.subr.bf16.mxu1 %v10601_v36  ;;  %v10682_v36 = vld [vmem:[%s11569_s11 + $0xfcc] ss:$36 sps:$4 sm:$0xff]  }
 0x297   : > { %5738 = vmatpush1.bf16.msra.mxu0 %v10596_v30  ;;  %5777 = vmatpush1.bf16.msra.mxu1 %v10599_v26  ;;  %v10685_v30 = vld [vmem:[%s11569_s11 + $0x20c] ss:$36 sps:$4 sm:$0xff]  }
 0x298   : > { %5739 = vmatprep.subr.bf16.mxu0 %v10604_v47  ;;  %5778 = vmatprep.subr.bf16.mxu1 %v10607_v28  ;;  %v10680_v26 = vld [vmem:[%s11569_s11 + $0xfc8] ss:$36 sps:$4 sm:$0xff]  }
 0x299   : > { %v10683_v47 = vld [vmem:[%s11569_s11 + $0x208] ss:$36 sps:$4 sm:$0xff]  }
 0x29a   : > { %v10688_v28 = vld [vmem:[%s11569_s11 + $0x1c4] ss:$36 sps:$4 sm:$0xff]  }
 0x29b   : > { %5740 = vmatpush1.bf16.msra.mxu0 %v10602_v34  ;;  %5779 = vmatpush1.bf16.msra.mxu1 %v10605_v45  ;;  %v10691_v34 = vld [vmem:[%s11569_s11 + $0x68c] ss:$36 sps:$4 sm:$0xff]  }
 0x29c   : > { %5741 = vmatprep.subr.bf16.mxu0 %v10610_v46  ;;  %5780 = vmatprep.subr.bf16.mxu1 %v10613_v42  ;;  %v10686_v46 = vld [vmem:[%s11569_s11 + $0x1c0] ss:$36 sps:$4 sm:$0xff]   ;;  %v10689_v42 = vld [vmem:[%s11569_s11 + $0x688] ss:$36 sps:$4 sm:$0xff]  }
 0x29f   : > { %5742 = vmatpush1.bf16.msra.mxu0 %v10608_v33  ;;  %5781 = vmatpush1.bf16.msra.mxu1 %v10611_v49  ;;  %v10694_v49 = vld [vmem:[%s11569_s11 + $0x17c] ss:$36 sps:$4 sm:$0xff]  }
 0x2a0   : > { %5743 = vmatprep.subr.bf16.mxu0 %v10616_v48  ;;  %5782 = vmatprep.subr.bf16.mxu1 %v10619_v11  ;;  %v10697_v48 = vld [vmem:[%s11569_s11 + $0x644] ss:$36 sps:$4 sm:$0xff]  }
 0x2a3   : > { %5744 = vmatpush1.bf16.msra.mxu0 %v10614_v32  ;;  %5783 = vmatpush1.bf16.msra.mxu1 %v10617_v41 }
 0x2a4   : > { %5745 = vmatprep.subr.bf16.mxu0 %v10622_v51  ;;  %5784 = vmatprep.subr.bf16.mxu1 %v10625_v52  ;;  %v10692_v51 = vld [vmem:[%s11569_s11 + $0x178] ss:$36 sps:$4 sm:$0xff]   ;;  %v10695_v52 = vld [vmem:[%s11569_s11 + $0x640] ss:$36 sps:$4 sm:$0xff]  }
 0x2a7   : > { %5746 = vmatpush1.bf16.msra.mxu0 %v10620_v53  ;;  %5785 = vmatpush1.bf16.msra.mxu1 %v10623_v54 }
 0x2a8   : > { %5747 = vmatprep.subr.bf16.mxu0 %v10628_v60  ;;  %5786 = vmatprep.subr.bf16.mxu1 %v10631_v57  ;;  %v10700_v60 = vld [vmem:[%s11569_s11 + $0x134] ss:$36 sps:$4 sm:$0xff]   ;;  %v10703_v57 = vld [vmem:[%s11569_s11 + $0x5fc] ss:$36 sps:$4 sm:$0xff]  }
 0x2ab   : > { %5748 = vmatpush1.bf16.msra.mxu0 %v10626_v2  ;;  %5787 = vmatpush1.bf16.msra.mxu1 %v10629_v58 }
 0x2ac   : > { %5749 = vmatprep.subr.bf16.mxu0 %v10634_v3  ;;  %5788 = vmatprep.subr.bf16.mxu1 %v10637_v17  ;;  %v10698_v3 = vld [vmem:[%s11569_s11 + $0x130] ss:$36 sps:$4 sm:$0xff]   ;;  %v10701_v17 = vld [vmem:[%s11569_s11 + $0x5f8] ss:$36 sps:$4 sm:$0xff]  }
 0x2af   : > { %5750 = vmatpush2.bf16.msra.mxu0 %v10632_v6  ;;  %5789 = vmatpush1.bf16.msra.mxu1 %v10635_v4  ;;  %v10706_v4 = vld [vmem:[%s11569_s11 + $0xec] ss:$36 sps:$4 sm:$0xff]  }
 0x2b0   : > { %5751 = vmatprep.subr.bf16.mxu0 %v10640_v39  ;;  %5790 = vmatprep.subr.bf16.mxu1 %v10643_v1  ;;  %v10709_v39 = vld [vmem:[%s11569_s11 + $0x5b4] ss:$36 sps:$4 sm:$0xff]   ;;  %v10704_v1 = vld [vmem:[%s11569_s11 + $0xe8] ss:$36 sps:$4 sm:$0xff]  }
 0x2b3   : > { %5752 = vmatpush2.bf16.msra.mxu0 %v10638_v7  ;;  %5791 = vmatpush2.bf16.msra.mxu1 %v10641_v56  ;;  %v10707_v7 = vld [vmem:[%s11569_s11 + $0x5b0] ss:$36 sps:$4 sm:$0xff]   ;;  %v10712_v56 = vld [vmem:[%s11569_s11 + $0xa4] ss:$36 sps:$4 sm:$0xff]  }
 0x2b4   : > { %5753 = vmatprep.subr.bf16.mxu0 %v10646_v10  ;;  %5792 = vmatprep.subr.bf16.mxu1 %v10649_v63  ;;  %v10715_v10 = vld [vmem:[%s11569_s11 + $0x56c] ss:$36 sps:$4 sm:$0xff]   ;;  %v10710_v63 = vld [vmem:[%s11569_s11 + $0xa0] ss:$36 sps:$4 sm:$0xff]  }
 0x2b7   : > { %5754 = vmatpush2.bf16.msra.mxu0 %v10644_v16  ;;  %5793 = vmatpush2.bf16.msra.mxu1 %v10647_v15  ;;  %v10713_v16 = vld [vmem:[%s11569_s11 + $0x568] ss:$36 sps:$4 sm:$0xff]   ;;  %v10718_v15 = vld [vmem:[%s11569_s11 + $0x5c] ss:$36 sps:$4 sm:$0xff]  }
 0x2b8   : > { %5755 = vmatprep.subr.bf16.mxu0 %v10652_v5  ;;  %5794 = vmatprep.subr.bf16.mxu1 %v10655_v55  ;;  %v10721_v5 = vld [vmem:[%s11569_s11 + $0x524] ss:$36 sps:$4 sm:$0xff]   ;;  %v10716_v55 = vld [vmem:[%s11569_s11 + $0x58] ss:$36 sps:$4 sm:$0xff]  }
 0x2bb   : > { %5756 = vmatpush2.bf16.msra.mxu0 %v10650_v62  ;;  %5795 = vmatpush2.bf16.msra.mxu1 %v10653_v0  ;;  %v10719_v62 = vld [vmem:[%s11569_s11 + $0x520] ss:$36 sps:$4 sm:$0xff]   ;;  %v10724_v0 = vld [vmem:[%s11569_s11 + $0x14] ss:$36 sps:$4 sm:$0xff]  }
 0x2bc   : > { %5757 = vmatprep.subr.bf16.mxu0 %v10658_v23  ;;  %5796 = vmatprep.subr.bf16.mxu1 %v10661_v25  ;;  %v10727_v23 = vld [vmem:[%s11569_s11 + $0x4dc] ss:$36 sps:$4 sm:$0xff]   ;;  %v10722_v25 = vld [vmem:[%s11569_s11 + $0x10] ss:$36 sps:$4 sm:$0xff]  }
 0x2bf   : > { %5758 = vmatpush2.bf16.msra.mxu0 %v10656_v29  ;;  %5797 = vmatpush2.bf16.msra.mxu1 %v10659_v44  ;;  %v10725_v29 = vld [vmem:[%s11569_s11 + $0x4d8] ss:$36 sps:$4 sm:$0xff]   ;;  %v10730_v44 = vld [vmem:[%s11569_s11 + $0x44c] ss:$36 sps:$4 sm:$0xff]  }
 0x2c0   : > { %5759 = vmatprep.subr.bf16.mxu0 %v10664_v19  ;;  %5798 = vmatprep.subr.bf16.mxu1 %v10667_v31  ;;  %v10733_v19 = vld [vmem:[%s11569_s11 + $0x494] ss:$36 sps:$4 sm:$0xff]   ;;  %v10728_v31 = vld [vmem:[%s11569_s11 + $0x448] ss:$36 sps:$4 sm:$0xff]  }
 0x2c3   : > { %5760 = vmatpush2.bf16.msra.mxu0 %v10662_v21  ;;  %5799 = vmatpush2.bf16.msra.mxu1 %v10665_v37  ;;  %v10731_v21 = vld [vmem:[%s11569_s11 + $0x490] ss:$36 sps:$4 sm:$0xff]   ;;  %v10736_v37 = vld [vmem:[%s11569_s11 + $0x404] ss:$36 sps:$4 sm:$0xff]  }
 0x2c4   : > { %5761 = vmatprep.subr.bf16.mxu0 %v10670_v38  ;;  %5800 = vmatprep.subr.bf16.mxu1 %v10673_v8  ;;  %v10739_v38 = vld [vmem:[%s11569_s11 + $0x8cc] ss:$36 sps:$4 sm:$0xff]   ;;  %v10734_v8 = vld [vmem:[%s11569_s11 + $0x400] ss:$36 sps:$4 sm:$0xff]  }
 0x2c7   : > { %5762 = vmatpush2.bf16.msra.mxu0 %v10668_v9  ;;  %5801 = vmatpush2.bf16.msra.mxu1 %v10671_v12  ;;  %v10737_v9 = vld [vmem:[%s11569_s11 + $0x8c8] ss:$36 sps:$4 sm:$0xff]   ;;  %v10742_v12 = vld [vmem:[%s11569_s11 + $0x3bc] ss:$36 sps:$4 sm:$0xff]  }
 0x2c8   : > { %5763 = vmatprep.subr.bf16.mxu0 %v10676_v61  ;;  %5802 = vmatprep.subr.bf16.mxu1 %v10679_v22  ;;  %v10745_v61 = vld [vmem:[%s11569_s11 + $0x884] ss:$36 sps:$4 sm:$0xff]   ;;  %v10740_v22 = vld [vmem:[%s11569_s11 + $0x3b8] ss:$36 sps:$4 sm:$0xff]  }
 0x2cb   : > { %5764 = vmatpush2.bf16.msra.mxu0 %v10674_v20  ;;  %5803 = vmatpush2.bf16.msra.mxu1 %v10677_v43  ;;  %v10743_v20 = vld [vmem:[%s11569_s11 + $0x880] ss:$36 sps:$4 sm:$0xff]   ;;  %v10748_v43 = vld [vmem:[%s11569_s11 + $0x374] ss:$36 sps:$4 sm:$0xff]  }
 0x2cc   : > { %5804 = vmatprep.subr.bf16.mxu1 %v10682_v36  ;;  %5815 = vmatprep.subr.bf16.mxu0 %v10685_v30  ;;  %v10751_v36 = vld [vmem:[%s11569_s11 + $0x83c] ss:$36 sps:$4 sm:$0xff]   ;;  %v10746_v30 = vld [vmem:[%s11569_s11 + $0x370] ss:$36 sps:$4 sm:$0xff]  }
 0x2ce   : > { %5766 = vmatmul.mubr.bf16.vlgmr.msra.gmra.mxu0 %v12257_v24  ;;  %v5521_v45 = vpop.f32.mrf.mxu0 }
 0x2cf   : > { %5805 = vmatpush2.bf16.msra.mxu1 %v10680_v26  ;;  %5816 = vmatpush1.bf16.msra.mxu0 %v10683_v47  ;;  %v10749_v26 = vld [vmem:[%s11569_s11 + $0x838] ss:$36 sps:$4 sm:$0xff]   ;;  %v10754_v47 = vld [vmem:[%s11569_s11 + $0x32c] ss:$36 sps:$4 sm:$0xff]  }
 0x2d0   : > { %5847 = vmatprep.mubr.bf16.mxu0 %v12157_v18  ;;  %v5523_v33 = vpop.f32.mrf.mxu0  ;;  %5817 = vmatprep.subr.bf16.mxu0 %v10688_v28  ;;  %v10757_v28 = vld [vmem:[%s11569_s11 + $0x7f4] ss:$36 sps:$4 sm:$0xff]  }
 0x2d1   : > { %5856 = vmatprep.subr.bf16.mxu1 %v10691_v34  ;;  %v10752_v34 = vld [vmem:[%s11569_s11 + $0x328] ss:$36 sps:$4 sm:$0xff]  }
 0x2d2   : > { %5807 = vmatmul.mubr.bf16.vlgmr.msra.gmra.mxu1 %v12265_v35  ;;  %v5525_v11 = vpop.f32.mrf.mxu0  ;;  %v5562_v32 = vpop.f32.mrf.mxu1 }
 0x2d3   : > { %v12407_v41 = vadd.f32 %v5562_v32, %v5521_v45  ;;  %5818 = vmatpush1.bf16.msra.mxu0 %v10686_v46  ;;  %5857 = vmatpush1.bf16.msra.mxu1 %v10689_v42  ;;  %v10755_v45 = vld [vmem:[%s11569_s11 + $0x7f0] ss:$36 sps:$4 sm:$0xff]   ;;  %v10760_v46 = vld [vmem:[%s11569_s11 + $0x2e4] ss:$36 sps:$4 sm:$0xff]   ;;  %v10764_v32 = vld [vmem:[%s11569_s11 + $0x298] ss:$36 sps:$4 sm:$0xff]  }
 0x2d4   : > { %5888 = vmatprep.mubr.bf16.mxu1 %v12170_v27  ;;  %v5526_v53 = vpop.f32.mrf.mxu0  ;;  %v5564_v54 = vpop.f32.mrf.mxu1  ;;  %5819 = vmatprep.subr.bf16.mxu0 %v10694_v49  ;;  %v10763_v42 = vld [vmem:[%s11569_s11 + $0x7ac] ss:$36 sps:$4 sm:$0xff]   ;;  %v10769_v11 = vld [vmem:[%s11569_s11 + $0x764] ss:$36 sps:$4 sm:$0xff]  }
 0x2d5   : > { %v12414_v2 = vadd.f32 %v5564_v54, %v5523_v33  ;;  %5858 = vmatprep.subr.bf16.mxu1 %v10697_v48  ;;  %v10758_v33 = vld [vmem:[%s11569_s11 + $0x2e0] ss:$36 sps:$4 sm:$0xff]   ;;  %v10761_v49 = vld [vmem:[%s11569_s11 + $0x7a8] ss:$36 sps:$4 sm:$0xff]   ;;  %v10770_v54 = vld [vmem:[%s11569_s11 + $0x250] ss:$36 sps:$4 sm:$0xff]  }
 0x2d6   : > { %v5566_v58 = vpop.f32.mrf.mxu1  ;;  %v10766_v48 = vld [vmem:[%s11569_s11 + $0x29c] ss:$36 sps:$4 sm:$0xff]  }
 0x2d7   : > { %5820 = vmatpush1.bf16.msra.mxu0 %v10692_v51  ;;  %5859 = vmatpush1.bf16.msra.mxu1 %v10695_v52  ;;  %v10767_v51 = vld [vmem:[%s11569_s11 + $0x760] ss:$36 sps:$4 sm:$0xff]   ;;  %v10772_v52 = vld [vmem:[%s11569_s11 + $0x254] ss:$36 sps:$4 sm:$0xff]   ;;  %v10781_v58 = vld [vmem:[%s11569_s11 + $0xb0c] ss:$36 sps:$4 sm:$0xff]  }
 0x2d8   : > { %v5567_v6 = vpop.f32.mrf.mxu1  ;;  %5821 = vmatprep.subr.bf16.mxu0 %v10700_v60  ;;  %5860 = vmatprep.subr.bf16.mxu1 %v10703_v57  ;;  %v10775_v53 = vld [vmem:[%s11569_s11 + $0x71c] ss:$36 sps:$4 sm:$0xff]   ;;  %v10778_v57 = vld [vmem:[%s11569_s11 + $0x6d4] ss:$36 sps:$4 sm:$0xff]  }
 0x2d9   : > { %v10773_v60 = vld [vmem:[%s11569_s11 + $0x718] ss:$36 sps:$4 sm:$0xff]   ;;  %v10784_v6 = vld [vmem:[%s11569_s11 + $0xac4] ss:$36 sps:$4 sm:$0xff]  }
 0x2db   : > { %5822 = vmatpush1.bf16.msra.mxu0 %v10698_v3  ;;  %5861 = vmatpush1.bf16.msra.mxu1 %v10701_v17  ;;  %v10776_v3 = vld [vmem:[%s11569_s11 + $0x6d0] ss:$36 sps:$4 sm:$0xff]   ;;  %v10779_v17 = vld [vmem:[%s11569_s11 + $0xb08] ss:$36 sps:$4 sm:$0xff]  }
 0x2dc   : > { %5823 = vmatprep.subr.bf16.mxu0 %v10706_v4  ;;  %5862 = vmatprep.subr.bf16.mxu1 %v10709_v39  ;;  %v10787_v4 = vld [vmem:[%s11569_s11 + $0xf8c] ss:$36 sps:$4 sm:$0xff]  }
 0x2df   : > { %5824 = vmatpush1.bf16.msra.mxu0 %v10704_v1  ;;  %5863 = vmatpush1.bf16.msra.mxu1 %v10707_v7  ;;  %v10782_v7 = vld [vmem:[%s11569_s11 + $0xac0] ss:$36 sps:$4 sm:$0xff]  }
 0x2e0   : > { %5825 = vmatprep.subr.bf16.mxu0 %v10712_v56  ;;  %5864 = vmatprep.subr.bf16.mxu1 %v10715_v10  ;;  %v10785_v56 = vld [vmem:[%s11569_s11 + $0xf88] ss:$36 sps:$4 sm:$0xff]  }
 0x2e3   : > { %5826 = vmatpush1.bf16.msra.mxu0 %v10710_v63  ;;  %5865 = vmatpush1.bf16.msra.mxu1 %v10713_v16  ;;  %v10790_v63 = vld [vmem:[%s11569_s11 + $0xa7c] ss:$36 sps:$4 sm:$0xff]  }
 0x2e4   : > { %5827 = vmatprep.subr.bf16.mxu0 %v10718_v15  ;;  %5866 = vmatprep.subr.bf16.mxu1 %v10721_v5  ;;  %v10793_v15 = vld [vmem:[%s11569_s11 + $0xf44] ss:$36 sps:$4 sm:$0xff]  }
 0x2e7   : > { %5828 = vmatpush1.bf16.msra.mxu0 %v10716_v55  ;;  %5867 = vmatpush1.bf16.msra.mxu1 %v10719_v62  ;;  %v10788_v62 = vld [vmem:[%s11569_s11 + $0xa78] ss:$36 sps:$4 sm:$0xff]  }
 0x2e8   : > { %5829 = vmatprep.subr.bf16.mxu0 %v10724_v0  ;;  %5868 = vmatprep.subr.bf16.mxu1 %v10727_v23  ;;  %v10791_v0 = vld [vmem:[%s11569_s11 + $0xf40] ss:$36 sps:$4 sm:$0xff]  }
 0x2eb   : > { %5830 = vmatpush1.bf16.msra.mxu0 %v10722_v25  ;;  %5869 = vmatpush1.bf16.msra.mxu1 %v10725_v29  ;;  %v10796_v25 = vld [vmem:[%s11569_s11 + $0xa34] ss:$36 sps:$4 sm:$0xff]   ;;  %v10799_v29 = vld [vmem:[%s11569_s11 + $0xefc] ss:$36 sps:$4 sm:$0xff]  }
 0x2ec   : > { %5831 = vmatprep.subr.bf16.mxu0 %v10730_v44  ;;  %5870 = vmatprep.subr.bf16.mxu1 %v10733_v19 }
 0x2ef   : > { %5832 = vmatpush2.bf16.msra.mxu0 %v10728_v31  ;;  %5871 = vmatpush1.bf16.msra.mxu1 %v10731_v21  ;;  %v10794_v31 = vld [vmem:[%s11569_s11 + $0xa30] ss:$36 sps:$4 sm:$0xff]   ;;  %v10797_v21 = vld [vmem:[%s11569_s11 + $0xef8] ss:$36 sps:$4 sm:$0xff]  }
 0x2f0   : > { %5833 = vmatprep.subr.bf16.mxu0 %v10736_v37  ;;  %5872 = vmatprep.subr.bf16.mxu1 %v10739_v38  ;;  %v10802_v38 = vld [vmem:[%s11569_s11 + $0x9ec] ss:$36 sps:$4 sm:$0xff]  }
 0x2f3   : > { %5834 = vmatpush2.bf16.msra.mxu0 %v10734_v8  ;;  %5873 = vmatpush2.bf16.msra.mxu1 %v10737_v9  ;;  %v10805_v8 = vld [vmem:[%s11569_s11 + $0xeb4] ss:$36 sps:$4 sm:$0xff]   ;;  %v10800_v9 = vld [vmem:[%s11569_s11 + $0x9e8] ss:$36 sps:$4 sm:$0xff]  }
 0x2f4   : > { %5835 = vmatprep.subr.bf16.mxu0 %v10742_v12  ;;  %5874 = vmatprep.subr.bf16.mxu1 %v10745_v61  ;;  %v10803_v12 = vld [vmem:[%s11569_s11 + $0xeb0] ss:$36 sps:$4 sm:$0xff]   ;;  %v10808_v61 = vld [vmem:[%s11569_s11 + $0x9a4] ss:$36 sps:$4 sm:$0xff]  }
 0x2f7   : > { %5836 = vmatpush2.bf16.msra.mxu0 %v10740_v22  ;;  %5875 = vmatpush2.bf16.msra.mxu1 %v10743_v20  ;;  %v10811_v22 = vld [vmem:[%s11569_s11 + $0xe6c] ss:$36 sps:$4 sm:$0xff]   ;;  %v10806_v20 = vld [vmem:[%s11569_s11 + $0x9a0] ss:$36 sps:$4 sm:$0xff]  }
 0x2f8   : > { %5837 = vmatprep.subr.bf16.mxu0 %v10748_v43  ;;  %5876 = vmatprep.subr.bf16.mxu1 %v10751_v36  ;;  %v10809_v43 = vld [vmem:[%s11569_s11 + $0xe68] ss:$36 sps:$4 sm:$0xff]   ;;  %v10814_v36 = vld [vmem:[%s11569_s11 + $0x95c] ss:$36 sps:$4 sm:$0xff]  }
 0x2fb   : > { %5838 = vmatpush2.bf16.msra.mxu0 %v10746_v30  ;;  %5877 = vmatpush2.bf16.msra.mxu1 %v10749_v26  ;;  %v10817_v30 = vld [vmem:[%s11569_s11 + $0xe24] ss:$36 sps:$4 sm:$0xff]   ;;  %v10812_v26 = vld [vmem:[%s11569_s11 + $0x958] ss:$36 sps:$4 sm:$0xff]  }
 0x2fc   : > { %5839 = vmatprep.subr.bf16.mxu0 %v10754_v47  ;;  %5878 = vmatprep.subr.bf16.mxu1 %v10757_v28  ;;  %v10815_v47 = vld [vmem:[%s11569_s11 + $0xe20] ss:$36 sps:$4 sm:$0xff]   ;;  %v10820_v28 = vld [vmem:[%s11569_s11 + $0x914] ss:$36 sps:$4 sm:$0xff]  }
 0x2ff   : > { %5840 = vmatpush2.bf16.msra.mxu0 %v10752_v34  ;;  %5879 = vmatpush2.bf16.msra.mxu1 %v10755_v45  ;;  %v10823_v34 = vld [vmem:[%s11569_s11 + $0xddc] ss:$36 sps:$4 sm:$0xff]   ;;  %v10818_v45 = vld [vmem:[%s11569_s11 + $0x910] ss:$36 sps:$4 sm:$0xff]  }
 0x300   : > { %5841 = vmatprep.subr.bf16.mxu0 %v10760_v46  ;;  %5880 = vmatprep.subr.bf16.mxu1 %v10763_v42  ;;  %v10821_v46 = vld [vmem:[%s11569_s11 + $0xdd8] ss:$36 sps:$4 sm:$0xff]   ;;  %v10826_v42 = vld [vmem:[%s11569_s11 + $0xd4c] ss:$36 sps:$4 sm:$0xff]  }
 0x303   : > { %5842 = vmatpush2.bf16.msra.mxu0 %v10758_v33  ;;  %5881 = vmatpush2.bf16.msra.mxu1 %v10761_v49  ;;  %v10829_v33 = vld [vmem:[%s11569_s11 + $0xd94] ss:$36 sps:$4 sm:$0xff]   ;;  %v10824_v49 = vld [vmem:[%s11569_s11 + $0xd48] ss:$36 sps:$4 sm:$0xff]  }
 0x304   : > { %5843 = vmatprep.subr.bf16.mxu0 %v10766_v48  ;;  %5882 = vmatprep.subr.bf16.mxu1 %v10769_v11  ;;  %v10827_v48 = vld [vmem:[%s11569_s11 + $0xd90] ss:$36 sps:$4 sm:$0xff]   ;;  %v10832_v11 = vld [vmem:[%s11569_s11 + $0xd04] ss:$36 sps:$4 sm:$0xff]  }
 0x307   : > { %5844 = vmatpush2.bf16.msra.mxu0 %v10764_v32  ;;  %5883 = vmatpush2.bf16.msra.mxu1 %v10767_v51  ;;  %v10835_v32 = vld [vmem:[%s11569_s11 + $0x11cc] ss:$36 sps:$4 sm:$0xff]   ;;  %v10830_v51 = vld [vmem:[%s11569_s11 + $0xd00] ss:$36 sps:$4 sm:$0xff]  }
 0x308   : > { %5845 = vmatprep.subr.bf16.mxu0 %v10772_v52  ;;  %5884 = vmatprep.subr.bf16.mxu1 %v10775_v53  ;;  %v10833_v52 = vld [vmem:[%s11569_s11 + $0x11c8] ss:$36 sps:$4 sm:$0xff]   ;;  %v10838_v53 = vld [vmem:[%s11569_s11 + $0xcbc] ss:$36 sps:$4 sm:$0xff]  }
 0x30b   : > { %5846 = vmatpush2.bf16.msra.mxu0 %v10770_v54  ;;  %5885 = vmatpush2.bf16.msra.mxu1 %v10773_v60  ;;  %v10841_v54 = vld [vmem:[%s11569_s11 + $0x1184] ss:$36 sps:$4 sm:$0xff]   ;;  %v10836_v60 = vld [vmem:[%s11569_s11 + $0xcb8] ss:$36 sps:$4 sm:$0xff]  }
 0x30c   : > { %5886 = vmatprep.subr.bf16.mxu1 %v10778_v57  ;;  %5897 = vmatprep.subr.bf16.mxu0 %v10781_v58  ;;  %v10839_v57 = vld [vmem:[%s11569_s11 + $0x1180] ss:$36 sps:$4 sm:$0xff]   ;;  %v10844_v58 = vld [vmem:[%s11569_s11 + $0xc74] ss:$36 sps:$4 sm:$0xff]  }
 0x30e   : > { %v5603_v39 = vpop.f32.mrf.mxu0  ;;  %5848 = vmatmul.mubr.bf16.vlgmr.msra.gmra.mxu0 %v12163_v13 }
 0x30f   : > { %v5604_v1 = vadd.f32 %v5603_v39, %v12407_v41  ;;  %5887 = vmatpush2.bf16.msra.mxu1 %v10776_v3  ;;  %5898 = vmatpush1.bf16.msra.mxu0 %v10779_v17  ;;  %v10847_v3 = vld [vmem:[%s11569_s11 + $0x113c] ss:$36 sps:$4 sm:$0xff]   ;;  %v10842_v17 = vld [vmem:[%s11569_s11 + $0xc70] ss:$36 sps:$4 sm:$0xff]  }
 0x310   : > { %5929 = vmatprep.mubr.bf16.mxu0 %v12183_v40  ;;  %v5605_v10 = vpop.f32.mrf.mxu0  ;;  %5899 = vmatprep.subr.bf16.mxu0 %v10784_v6  ;;  %v10845_v6 = vld [vmem:[%s11569_s11 + $0x1138] ss:$36 sps:$4 sm:$0xff]  }
 0x311   : > { %v5606_v16 = vadd.f32 %v5605_v10, %v12414_v2  ;;  %5938 = vmatprep.subr.bf16.mxu1 %v10787_v4  ;;  %v10850_v4 = vld [vmem:[%s11569_s11 + $0xc2c] ss:$36 sps:$4 sm:$0xff]   ;;  %v10853_v39 = vld [vmem:[%s11569_s11 + $0x10f4] ss:$36 sps:$4 sm:$0xff]  }
 0x312   : > { %v5607_v5 = vpop.f32.mrf.mxu0  ;;  %v5644_v55 = vpop.f32.mrf.mxu1  ;;  %5889 = vmatmul.mubr.bf16.vlgmr.msra.gmra.mxu1 %v12174_v50  ;;  %v10859_v10 = vld [vmem:[%s11569_s11 + $0x10ac] ss:$36 sps:$4 sm:$0xff]  }
 0x313   : > { %v12481_v41 = vadd.f32 %v5644_v55, %v5604_v1  ;;  %5900 = vmatpush1.bf16.msra.mxu0 %v10782_v7  ;;  %5939 = vmatpush1.bf16.msra.mxu1 %v10785_v56  ;;  %v10848_v1 = vld [vmem:[%s11569_s11 + $0xc28] ss:$36 sps:$4 sm:$0xff]   ;;  %v10851_v7 = vld [vmem:[%s11569_s11 + $0x10f0] ss:$36 sps:$4 sm:$0xff]   ;;  %v10860_v55 = vld [vmem:[%s11569_s11 + $0xb98] ss:$36 sps:$4 sm:$0xff]  }
 0x314   : > { %5970 = vmatprep.mubr.bf16.mxu1 %v12191_v14  ;;  %v5608_v23 = vpop.f32.mrf.mxu0  ;;  %v5646_v2 = vpop.f32.mrf.mxu1  ;;  %5901 = vmatprep.subr.bf16.mxu0 %v10790_v63  ;;  %v10856_v56 = vld [vmem:[%s11569_s11 + $0xbe4] ss:$36 sps:$4 sm:$0xff]  }
 0x315   : > { %v12488_v44 = vadd.f32 %v5646_v2, %v5606_v16  ;;  %5940 = vmatprep.subr.bf16.mxu1 %v10793_v15  ;;  %v10854_v63 = vld [vmem:[%s11569_s11 + $0xbe0] ss:$36 sps:$4 sm:$0xff]   ;;  %v10857_v16 = vld [vmem:[%s11569_s11 + $0x10a8] ss:$36 sps:$4 sm:$0xff]   ;;  %v10866_v2 = vld [vmem:[%s11569_s11 + $0xb50] ss:$36 sps:$4 sm:$0xff]  }
 0x316   : > { %v5648_v19 = vpop.f32.mrf.mxu1  ;;  %v10862_v15 = vld [vmem:[%s11569_s11 + $0xb9c] ss:$36 sps:$4 sm:$0xff]   ;;  %v10865_v5 = vld [vmem:[%s11569_s11 + $0x1064] ss:$36 sps:$4 sm:$0xff]  }
 0x317   : > { %5902 = vmatpush1.bf16.msra.mxu0 %v10788_v62  ;;  %5941 = vmatpush1.bf16.msra.mxu1 %v10791_v0  ;;  %v10863_v62 = vld [vmem:[%s11569_s11 + $0x1060] ss:$36 sps:$4 sm:$0xff]   ;;  %v10868_v0 = vld [vmem:[%s11569_s11 + $0xb54] ss:$36 sps:$4 sm:$0xff]  }
 0x318   : > { %v5649_v37 = vpop.f32.mrf.mxu1  ;;  %5903 = vmatprep.subr.bf16.mxu0 %v10796_v25  ;;  %5942 = vmatprep.subr.bf16.mxu1 %v10799_v29  ;;  %v10871_v23 = vld [vmem:[%s11569_s11 + $0x101c] ss:$36 sps:$4 sm:$0xff]   ;;  %v10874_v29 = vld [vmem:[%s11569_s11 + $0xfd4] ss:$36 sps:$4 sm:$0xff]  }
 0x319   : > { %v10869_v25 = vld [vmem:[%s11569_s11 + $0x1018] ss:$36 sps:$4 sm:$0xff]   ;;  %v10880_v37 = vld [vmem:[%s11569_s11 + $0x1cc] ss:$36 sps:$4 sm:$0xff]  }
 0x31a   : > { %v10877_v19 = vld [vmem:[%s11569_s11 + $0x214] ss:$36 sps:$4 sm:$0xff]  }
 0x31b   : > { %5904 = vmatpush1.bf16.msra.mxu0 %v10794_v31  ;;  %5943 = vmatpush1.bf16.msra.mxu1 %v10797_v21  ;;  %v10872_v31 = vld [vmem:[%s11569_s11 + $0xfd0] ss:$36 sps:$4 sm:$0xff]  }
 0x31c   : > { %5905 = vmatprep.subr.bf16.mxu0 %v10802_v38  ;;  %5944 = vmatprep.subr.bf16.mxu1 %v10805_v8  ;;  %v10875_v21 = vld [vmem:[%s11569_s11 + $0x210] ss:$36 sps:$4 sm:$0xff]  }
 0x31d   : > { %v10883_v38 = vld [vmem:[%s11569_s11 + $0x694] ss:$36 sps:$4 sm:$0xff]  }
 0x31f   : > { %5906 = vmatpush1.bf16.msra.mxu0 %v10800_v9  ;;  %5945 = vmatpush1.bf16.msra.mxu1 %v10803_v12  ;;  %v10878_v9 = vld [vmem:[%s11569_s11 + $0x1c8] ss:$36 sps:$4 sm:$0xff]   ;;  %v10881_v12 = vld [vmem:[%s11569_s11 + $0x690] ss:$36 sps:$4 sm:$0xff]  }
 0x320   : > { %5907 = vmatprep.subr.bf16.mxu0 %v10808_v61  ;;  %5946 = vmatprep.subr.bf16.mxu1 %v10811_v22  ;;  %v10886_v22 = vld [vmem:[%s11569_s11 + $0x184] ss:$36 sps:$4 sm:$0xff]  }
 0x323   : > { %5908 = vmatpush1.bf16.msra.mxu0 %v10806_v20  ;;  %5947 = vmatpush1.bf16.msra.mxu1 %v10809_v43  ;;  %v10889_v20 = vld [vmem:[%s11569_s11 + $0x64c] ss:$36 sps:$4 sm:$0xff]  }
 0x324   : > { %5909 = vmatprep.subr.bf16.mxu0 %v10814_v36  ;;  %5948 = vmatprep.subr.bf16.mxu1 %v10817_v30 }
 0x327   : > { %5910 = vmatpush1.bf16.msra.mxu0 %v10812_v26  ;;  %5949 = vmatpush1.bf16.msra.mxu1 %v10815_v47  ;;  %v10884_v26 = vld [vmem:[%s11569_s11 + $0x180] ss:$36 sps:$4 sm:$0xff]   ;;  %v10887_v47 = vld [vmem:[%s11569_s11 + $0x648] ss:$36 sps:$4 sm:$0xff]  }
 0x328   : > { %5911 = vmatprep.subr.bf16.mxu0 %v10820_v28  ;;  %5950 = vmatprep.subr.bf16.mxu1 %v10823_v34 }
 0x32b   : > { %5912 = vmatpush1.bf16.msra.mxu0 %v10818_v45  ;;  %5951 = vmatpush1.bf16.msra.mxu1 %v10821_v46  ;;  %v10892_v45 = vld [vmem:[%s11569_s11 + $0x13c] ss:$36 sps:$4 sm:$0xff]   ;;  %v10895_v46 = vld [vmem:[%s11569_s11 + $0x604] ss:$36 sps:$4 sm:$0xff]  }
 0x32c   : > { %5913 = vmatprep.subr.bf16.mxu0 %v10826_v42  ;;  %5952 = vmatprep.subr.bf16.mxu1 %v10829_v33 }
 0x32f   : > { %5914 = vmatpush2.bf16.msra.mxu0 %v10824_v49  ;;  %5953 = vmatpush1.bf16.msra.mxu1 %v10827_v48  ;;  %v10890_v49 = vld [vmem:[%s11569_s11 + $0x138] ss:$36 sps:$4 sm:$0xff]   ;;  %v10893_v48 = vld [vmem:[%s11569_s11 + $0x600] ss:$36 sps:$4 sm:$0xff]  }
 0x330   : > { %5915 = vmatprep.subr.bf16.mxu0 %v10832_v11  ;;  %5954 = vmatprep.subr.bf16.mxu1 %v10835_v32  ;;  %v10898_v32 = vld [vmem:[%s11569_s11 + $0xf4] ss:$36 sps:$4 sm:$0xff]  }
 0x333   : > { %5916 = vmatpush2.bf16.msra.mxu0 %v10830_v51  ;;  %5955 = vmatpush2.bf16.msra.mxu1 %v10833_v52  ;;  %v10901_v51 = vld [vmem:[%s11569_s11 + $0x5bc] ss:$36 sps:$4 sm:$0xff]   ;;  %v10896_v52 = vld [vmem:[%s11569_s11 + $0xf0] ss:$36 sps:$4 sm:$0xff]  }
 0x334   : > { %5917 = vmatprep.subr.bf16.mxu0 %v10838_v53  ;;  %5956 = vmatprep.subr.bf16.mxu1 %v10841_v54  ;;  %v10899_v53 = vld [vmem:[%s11569_s11 + $0x5b8] ss:$36 sps:$4 sm:$0xff]   ;;  %v10904_v54 = vld [vmem:[%s11569_s11 + $0xac] ss:$36 sps:$4 sm:$0xff]  }
 0x337   : > { %5918 = vmatpush2.bf16.msra.mxu0 %v10836_v60  ;;  %5957 = vmatpush2.bf16.msra.mxu1 %v10839_v57  ;;  %v10907_v60 = vld [vmem:[%s11569_s11 + $0x574] ss:$36 sps:$4 sm:$0xff]   ;;  %v10902_v57 = vld [vmem:[%s11569_s11 + $0xa8] ss:$36 sps:$4 sm:$0xff]  }
 0x338   : > { %5919 = vmatprep.subr.bf16.mxu0 %v10844_v58  ;;  %5958 = vmatprep.subr.bf16.mxu1 %v10847_v3  ;;  %v10905_v58 = vld [vmem:[%s11569_s11 + $0x570] ss:$36 sps:$4 sm:$0xff]   ;;  %v10910_v3 = vld [vmem:[%s11569_s11 + $0x64] ss:$36 sps:$4 sm:$0xff]  }
 0x33b   : > { %5920 = vmatpush2.bf16.msra.mxu0 %v10842_v17  ;;  %5959 = vmatpush2.bf16.msra.mxu1 %v10845_v6  ;;  %v10913_v17 = vld [vmem:[%s11569_s11 + $0x52c] ss:$36 sps:$4 sm:$0xff]   ;;  %v10908_v6 = vld [vmem:[%s11569_s11 + $0x60] ss:$36 sps:$4 sm:$0xff]  }
 0x33c   : > { %5921 = vmatprep.subr.bf16.mxu0 %v10850_v4  ;;  %5960 = vmatprep.subr.bf16.mxu1 %v10853_v39  ;;  %v10911_v4 = vld [vmem:[%s11569_s11 + $0x528] ss:$36 sps:$4 sm:$0xff]   ;;  %v10916_v39 = vld [vmem:[%s11569_s11 + $0x1c] ss:$36 sps:$4 sm:$0xff]  }
 0x33f   : > { %5922 = vmatpush2.bf16.msra.mxu0 %v10848_v1  ;;  %5961 = vmatpush2.bf16.msra.mxu1 %v10851_v7  ;;  %v10919_v1 = vld [vmem:[%s11569_s11 + $0x4e4] ss:$36 sps:$4 sm:$0xff]   ;;  %v10914_v7 = vld [vmem:[%s11569_s11 + $0x18] ss:$36 sps:$4 sm:$0xff]  }
 0x340   : > { %5923 = vmatprep.subr.bf16.mxu0 %v10856_v56  ;;  %5962 = vmatprep.subr.bf16.mxu1 %v10859_v10  ;;  %v10917_v56 = vld [vmem:[%s11569_s11 + $0x4e0] ss:$36 sps:$4 sm:$0xff]   ;;  %v10922_v10 = vld [vmem:[%s11569_s11 + $0x454] ss:$36 sps:$4 sm:$0xff]  }
 0x343   : > { %5924 = vmatpush2.bf16.msra.mxu0 %v10854_v63  ;;  %5963 = vmatpush2.bf16.msra.mxu1 %v10857_v16  ;;  %v10925_v63 = vld [vmem:[%s11569_s11 + $0x49c] ss:$36 sps:$4 sm:$0xff]   ;;  %v10920_v16 = vld [vmem:[%s11569_s11 + $0x450] ss:$36 sps:$4 sm:$0xff]  }
 0x344   : > { %5925 = vmatprep.subr.bf16.mxu0 %v10862_v15  ;;  %5964 = vmatprep.subr.bf16.mxu1 %v10865_v5  ;;  %v10923_v15 = vld [vmem:[%s11569_s11 + $0x498] ss:$36 sps:$4 sm:$0xff]   ;;  %v10928_v5 = vld [vmem:[%s11569_s11 + $0x40c] ss:$36 sps:$4 sm:$0xff]  }
 0x347   : > { %5926 = vmatpush2.bf16.msra.mxu0 %v10860_v55  ;;  %5965 = vmatpush2.bf16.msra.mxu1 %v10863_v62  ;;  %v10931_v55 = vld [vmem:[%s11569_s11 + $0x8d4] ss:$36 sps:$4 sm:$0xff]   ;;  %v10926_v62 = vld [vmem:[%s11569_s11 + $0x408] ss:$36 sps:$4 sm:$0xff]  }
 0x348   : > { %5927 = vmatprep.subr.bf16.mxu0 %v10868_v0  ;;  %5966 = vmatprep.subr.bf16.mxu1 %v10871_v23  ;;  %v10929_v0 = vld [vmem:[%s11569_s11 + $0x8d0] ss:$36 sps:$4 sm:$0xff]   ;;  %v10934_v23 = vld [vmem:[%s11569_s11 + $0x3c4] ss:$36 sps:$4 sm:$0xff]  }
 0x34b   : > { %5928 = vmatpush2.bf16.msra.mxu0 %v10866_v2  ;;  %5967 = vmatpush2.bf16.msra.mxu1 %v10869_v25  ;;  %v10937_v2 = vld [vmem:[%s11569_s11 + $0x88c] ss:$36 sps:$4 sm:$0xff]   ;;  %v10932_v25 = vld [vmem:[%s11569_s11 + $0x3c0] ss:$36 sps:$4 sm:$0xff]  }
 0x34c   : > { %5968 = vmatprep.subr.bf16.mxu1 %v10874_v29  ;;  %5979 = vmatprep.subr.bf16.mxu0 %v10877_v19  ;;  %v10935_v29 = vld [vmem:[%s11569_s11 + $0x888] ss:$36 sps:$4 sm:$0xff]   ;;  %v10940_v19 = vld [vmem:[%s11569_s11 + $0x37c] ss:$36 sps:$4 sm:$0xff]  }
 0x34e   : > { %v5685_v8 = vpop.f32.mrf.mxu0  ;;  %5930 = vmatmul.mubr.bf16.vlgmr.msra.gmra.mxu0 %v12257_v24 }
 0x34f   : > { %5969 = vmatpush2.bf16.msra.mxu1 %v10872_v31  ;;  %5980 = vmatpush1.bf16.msra.mxu0 %v10875_v21  ;;  %v10943_v31 = vld [vmem:[%s11569_s11 + $0x844] ss:$36 sps:$4 sm:$0xff]   ;;  %v10938_v21 = vld [vmem:[%s11569_s11 + $0x378] ss:$36 sps:$4 sm:$0xff]  }
 0x350   : > { %6011 = vmatprep.mubr.bf16.mxu0 %v12157_v18  ;;  %v5687_v61 = vpop.f32.mrf.mxu0  ;;  %5981 = vmatprep.subr.bf16.mxu0 %v10880_v37  ;;  %v10941_v37 = vld [vmem:[%s11569_s11 + $0x840] ss:$36 sps:$4 sm:$0xff]  }
 0x351   : > { %6020 = vmatprep.subr.bf16.mxu1 %v10883_v38  ;;  %v10946_v38 = vld [vmem:[%s11569_s11 + $0x334] ss:$36 sps:$4 sm:$0xff]  }
 0x352   : > { %v5689_v43 = vpop.f32.mrf.mxu0  ;;  %v5726_v36 = vpop.f32.mrf.mxu1  ;;  %5971 = vmatmul.mubr.bf16.vlgmr.msra.gmra.mxu1 %v12265_v35 }
 0x353   : > { %v12553_v30 = vadd.f32 %v5726_v36, %v5685_v8  ;;  %5982 = vmatpush1.bf16.msra.mxu0 %v10878_v9  ;;  %6021 = vmatpush1.bf16.msra.mxu1 %v10881_v12  ;;  %v10949_v8 = vld [vmem:[%s11569_s11 + $0x7fc] ss:$36 sps:$4 sm:$0xff]   ;;  %v10944_v9 = vld [vmem:[%s11569_s11 + $0x330] ss:$36 sps:$4 sm:$0xff]   ;;  %v10958_v36 = vld [vmem:[%s11569_s11 + $0x2a4] ss:$36 sps:$4 sm:$0xff]  }
 0x354   : > { %6052 = vmatprep.mubr.bf16.mxu1 %v12170_v27  ;;  %v5690_v28 = vpop.f32.mrf.mxu0  ;;  %v5728_v34 = vpop.f32.mrf.mxu1  ;;  %5983 = vmatprep.subr.bf16.mxu0 %v10886_v22  ;;  %v10947_v12 = vld [vmem:[%s11569_s11 + $0x7f8] ss:$36 sps:$4 sm:$0xff]   ;;  %v10953_v43 = vld [vmem:[%s11569_s11 + $0x7b0] ss:$36 sps:$4 sm:$0xff]  }
 0x355   : > { %v12560_v42 = vadd.f32 %v5728_v34, %v5687_v61  ;;  %6022 = vmatprep.subr.bf16.mxu1 %v10889_v20  ;;  %v10952_v61 = vld [vmem:[%s11569_s11 + $0x2ec] ss:$36 sps:$4 sm:$0xff]   ;;  %v10955_v22 = vld [vmem:[%s11569_s11 + $0x7b4] ss:$36 sps:$4 sm:$0xff]   ;;  %v10964_v34 = vld [vmem:[%s11569_s11 + $0x25c] ss:$36 sps:$4 sm:$0xff]  }
 0x356   : > { %v5730_v33 = vpop.f32.mrf.mxu1  ;;  %v10950_v20 = vld [vmem:[%s11569_s11 + $0x2e8] ss:$36 sps:$4 sm:$0xff]  }
 0x357   : > { %5984 = vmatpush1.bf16.msra.mxu0 %v10884_v26  ;;  %6023 = vmatpush1.bf16.msra.mxu1 %v10887_v47  ;;  %v10961_v26 = vld [vmem:[%s11569_s11 + $0x76c] ss:$36 sps:$4 sm:$0xff]   ;;  %v10956_v47 = vld [vmem:[%s11569_s11 + $0x2a0] ss:$36 sps:$4 sm:$0xff]  }
 0x358   : > { %v5731_v11 = vpop.f32.mrf.mxu1  ;;  %5985 = vmatprep.subr.bf16.mxu0 %v10892_v45  ;;  %6024 = vmatprep.subr.bf16.mxu1 %v10895_v46  ;;  %v10959_v28 = vld [vmem:[%s11569_s11 + $0x768] ss:$36 sps:$4 sm:$0xff]   ;;  %v10962_v46 = vld [vmem:[%s11569_s11 + $0x258] ss:$36 sps:$4 sm:$0xff]   ;;  %v10965_v33 = vld [vmem:[%s11569_s11 + $0x720] ss:$36 sps:$4 sm:$0xff]  }
 0x359   : > { %v10967_v45 = vld [vmem:[%s11569_s11 + $0x724] ss:$36 sps:$4 sm:$0xff]   ;;  %v10968_v11 = vld [vmem:[%s11569_s11 + $0x6d8] ss:$36 sps:$4 sm:$0xff]  }
 0x35b   : > { %5986 = vmatpush1.bf16.msra.mxu0 %v10890_v49  ;;  %6025 = vmatpush1.bf16.msra.mxu1 %v10893_v48  ;;  %v10970_v49 = vld [vmem:[%s11569_s11 + $0x6dc] ss:$36 sps:$4 sm:$0xff]   ;;  %v10973_v48 = vld [vmem:[%s11569_s11 + $0xb14] ss:$36 sps:$4 sm:$0xff]  }
 0x35c   : > { %5987 = vmatprep.subr.bf16.mxu0 %v10898_v32  ;;  %6026 = vmatprep.subr.bf16.mxu1 %v10901_v51  ;;  %v10971_v32 = vld [vmem:[%s11569_s11 + $0xb10] ss:$36 sps:$4 sm:$0xff]  }
 0x35d   : > { %v10976_v51 = vld [vmem:[%s11569_s11 + $0xacc] ss:$36 sps:$4 sm:$0xff]  }
 0x35f   : > { %5988 = vmatpush1.bf16.msra.mxu0 %v10896_v52  ;;  %6027 = vmatpush1.bf16.msra.mxu1 %v10899_v53  ;;  %v10979_v52 = vld [vmem:[%s11569_s11 + $0xf94] ss:$36 sps:$4 sm:$0xff]  }
 0x360   : > { %5989 = vmatprep.subr.bf16.mxu0 %v10904_v54  ;;  %6028 = vmatprep.subr.bf16.mxu1 %v10907_v60  ;;  %v10974_v60 = vld [vmem:[%s11569_s11 + $0xac8] ss:$36 sps:$4 sm:$0xff]  }
 0x363   : > { %5990 = vmatpush1.bf16.msra.mxu0 %v10902_v57  ;;  %6029 = vmatpush1.bf16.msra.mxu1 %v10905_v58  ;;  %v10977_v57 = vld [vmem:[%s11569_s11 + $0xf90] ss:$36 sps:$4 sm:$0xff]  }
 0x364   : > { %5991 = vmatprep.subr.bf16.mxu0 %v10910_v3  ;;  %6030 = vmatprep.subr.bf16.mxu1 %v10913_v17  ;;  %v10982_v3 = vld [vmem:[%s11569_s11 + $0xa84] ss:$36 sps:$4 sm:$0xff]  }
 0x367   : > { %5992 = vmatpush1.bf16.msra.mxu0 %v10908_v6  ;;  %6031 = vmatpush1.bf16.msra.mxu1 %v10911_v4  ;;  %v10985_v6 = vld [vmem:[%s11569_s11 + $0xf4c] ss:$36 sps:$4 sm:$0xff]  }
 0x368   : > { %5993 = vmatprep.subr.bf16.mxu0 %v10916_v39  ;;  %6032 = vmatprep.subr.bf16.mxu1 %v10919_v1  ;;  %v10980_v1 = vld [vmem:[%s11569_s11 + $0xa80] ss:$36 sps:$4 sm:$0xff]  }
 0x36b   : > { %5994 = vmatpush1.bf16.msra.mxu0 %v10914_v7  ;;  %6033 = vmatpush1.bf16.msra.mxu1 %v10917_v56  ;;  %v10983_v7 = vld [vmem:[%s11569_s11 + $0xf48] ss:$36 sps:$4 sm:$0xff]  }
 0x36c   : > { %5995 = vmatprep.subr.bf16.mxu0 %v10922_v10  ;;  %6034 = vmatprep.subr.bf16.mxu1 %v10925_v63  ;;  %v10988_v10 = vld [vmem:[%s11569_s11 + $0xa3c] ss:$36 sps:$4 sm:$0xff]   ;;  %v10991_v63 = vld [vmem:[%s11569_s11 + $0xf04] ss:$36 sps:$4 sm:$0xff]  }
 0x36f   : > { %5996 = vmatpush2.bf16.msra.mxu0 %v10920_v16  ;;  %6035 = vmatpush1.bf16.msra.mxu1 %v10923_v15 }
 0x370   : > { %5997 = vmatprep.subr.bf16.mxu0 %v10928_v5  ;;  %6036 = vmatprep.subr.bf16.mxu1 %v10931_v55  ;;  %v10986_v5 = vld [vmem:[%s11569_s11 + $0xa38] ss:$36 sps:$4 sm:$0xff]   ;;  %v10989_v55 = vld [vmem:[%s11569_s11 + $0xf00] ss:$36 sps:$4 sm:$0xff]  }
 0x373   : > { %5998 = vmatpush2.bf16.msra.mxu0 %v10926_v62  ;;  %6037 = vmatpush2.bf16.msra.mxu1 %v10929_v0  ;;  %v10994_v0 = vld [vmem:[%s11569_s11 + $0x9f4] ss:$36 sps:$4 sm:$0xff]  }
 0x374   : > { %5999 = vmatprep.subr.bf16.mxu0 %v10934_v23  ;;  %6038 = vmatprep.subr.bf16.mxu1 %v10937_v2  ;;  %v10997_v23 = vld [vmem:[%s11569_s11 + $0xebc] ss:$36 sps:$4 sm:$0xff]   ;;  %v10992_v2 = vld [vmem:[%s11569_s11 + $0x9f0] ss:$36 sps:$4 sm:$0xff]  }
 0x377   : > { %6000 = vmatpush2.bf16.msra.mxu0 %v10932_v25  ;;  %6039 = vmatpush2.bf16.msra.mxu1 %v10935_v29  ;;  %v10995_v25 = vld [vmem:[%s11569_s11 + $0xeb8] ss:$36 sps:$4 sm:$0xff]   ;;  %v11000_v29 = vld [vmem:[%s11569_s11 + $0x9ac] ss:$36 sps:$4 sm:$0xff]  }
 0x378   : > { %6001 = vmatprep.subr.bf16.mxu0 %v10940_v19  ;;  %6040 = vmatprep.subr.bf16.mxu1 %v10943_v31  ;;  %v11003_v19 = vld [vmem:[%s11569_s11 + $0xe74] ss:$36 sps:$4 sm:$0xff]   ;;  %v10998_v31 = vld [vmem:[%s11569_s11 + $0x9a8] ss:$36 sps:$4 sm:$0xff]  }
 0x37b   : > { %6002 = vmatpush2.bf16.msra.mxu0 %v10938_v21  ;;  %6041 = vmatpush2.bf16.msra.mxu1 %v10941_v37  ;;  %v11001_v21 = vld [vmem:[%s11569_s11 + $0xe70] ss:$36 sps:$4 sm:$0xff]   ;;  %v11006_v37 = vld [vmem:[%s11569_s11 + $0x964] ss:$36 sps:$4 sm:$0xff]  }
 0x37c   : > { %6003 = vmatprep.subr.bf16.mxu0 %v10946_v38  ;;  %6042 = vmatprep.subr.bf16.mxu1 %v10949_v8  ;;  %v11009_v38 = vld [vmem:[%s11569_s11 + $0xe2c] ss:$36 sps:$4 sm:$0xff]   ;;  %v11004_v8 = vld [vmem:[%s11569_s11 + $0x960] ss:$36 sps:$4 sm:$0xff]  }
 0x37f   : > { %6004 = vmatpush2.bf16.msra.mxu0 %v10944_v9  ;;  %6043 = vmatpush2.bf16.msra.mxu1 %v10947_v12  ;;  %v11007_v9 = vld [vmem:[%s11569_s11 + $0xe28] ss:$36 sps:$4 sm:$0xff]   ;;  %v11012_v12 = vld [vmem:[%s11569_s11 + $0x91c] ss:$36 sps:$4 sm:$0xff]  }
 0x380   : > { %6005 = vmatprep.subr.bf16.mxu0 %v10952_v61  ;;  %6044 = vmatprep.subr.bf16.mxu1 %v10955_v22  ;;  %v11015_v61 = vld [vmem:[%s11569_s11 + $0xde4] ss:$36 sps:$4 sm:$0xff]   ;;  %v11010_v22 = vld [vmem:[%s11569_s11 + $0x918] ss:$36 sps:$4 sm:$0xff]  }
 0x383   : > { %6006 = vmatpush2.bf16.msra.mxu0 %v10950_v20  ;;  %6045 = vmatpush2.bf16.msra.mxu1 %v10953_v43  ;;  %v11013_v20 = vld [vmem:[%s11569_s11 + $0xde0] ss:$36 sps:$4 sm:$0xff]   ;;  %v11018_v43 = vld [vmem:[%s11569_s11 + $0xd54] ss:$36 sps:$4 sm:$0xff]  }
 0x384   : > { %6007 = vmatprep.subr.bf16.mxu0 %v10958_v36  ;;  %6046 = vmatprep.subr.bf16.mxu1 %v10961_v26  ;;  %v11021_v36 = vld [vmem:[%s11569_s11 + $0xd9c] ss:$36 sps:$4 sm:$0xff]   ;;  %v11016_v26 = vld [vmem:[%s11569_s11 + $0xd50] ss:$36 sps:$4 sm:$0xff]  }
 0x387   : > { %6008 = vmatpush2.bf16.msra.mxu0 %v10956_v47  ;;  %6047 = vmatpush2.bf16.msra.mxu1 %v10959_v28  ;;  %v11019_v47 = vld [vmem:[%s11569_s11 + $0xd98] ss:$36 sps:$4 sm:$0xff]   ;;  %v11024_v28 = vld [vmem:[%s11569_s11 + $0xd0c] ss:$36 sps:$4 sm:$0xff]  }
 0x388   : > { %6009 = vmatprep.subr.bf16.mxu0 %v10964_v34  ;;  %6048 = vmatprep.subr.bf16.mxu1 %v10967_v45  ;;  %v11027_v34 = vld [vmem:[%s11569_s11 + $0x11d4] ss:$36 sps:$4 sm:$0xff]   ;;  %v11022_v45 = vld [vmem:[%s11569_s11 + $0xd08] ss:$36 sps:$4 sm:$0xff]  }
 0x38b   : > { %6010 = vmatpush2.bf16.msra.mxu0 %v10962_v46  ;;  %6049 = vmatpush2.bf16.msra.mxu1 %v10965_v33  ;;  %v11025_v46 = vld [vmem:[%s11569_s11 + $0x11d0] ss:$36 sps:$4 sm:$0xff]   ;;  %v11030_v33 = vld [vmem:[%s11569_s11 + $0xcc4] ss:$36 sps:$4 sm:$0xff]  }
 0x38c   : > { %6050 = vmatprep.subr.bf16.mxu1 %v10970_v49  ;;  %6061 = vmatprep.subr.bf16.mxu0 %v10973_v48  ;;  %v11033_v49 = vld [vmem:[%s11569_s11 + $0x118c] ss:$36 sps:$4 sm:$0xff]   ;;  %v11028_v48 = vld [vmem:[%s11569_s11 + $0xcc0] ss:$36 sps:$4 sm:$0xff]  }
 0x38e   : > { %v5767_v53 = vpop.f32.mrf.mxu0  ;;  %6012 = vmatmul.mubr.bf16.vlgmr.msra.gmra.mxu0 %v12163_v13 }
 0x38f   : > { %v5768_v54 = vadd.f32 %v5767_v53, %v12553_v30  ;;  %6051 = vmatpush2.bf16.msra.mxu1 %v10968_v11  ;;  %6062 = vmatpush1.bf16.msra.mxu0 %v10971_v32  ;;  %v11031_v11 = vld [vmem:[%s11569_s11 + $0x1188] ss:$36 sps:$4 sm:$0xff]   ;;  %v11036_v32 = vld [vmem:[%s11569_s11 + $0xc7c] ss:$36 sps:$4 sm:$0xff]  }
 0x390   : > { %6093 = vmatprep.mubr.bf16.mxu0 %v12183_v40  ;;  %v5769_v58 = vpop.f32.mrf.mxu0  ;;  %6063 = vmatprep.subr.bf16.mxu0 %v10976_v51  ;;  %v11039_v51 = vld [vmem:[%s11569_s11 + $0x1144] ss:$36 sps:$4 sm:$0xff]  }
 0x391   : > { %v5770_v17 = vadd.f32 %v5769_v58, %v12560_v42  ;;  %6102 = vmatprep.subr.bf16.mxu1 %v10979_v52  ;;  %v11034_v52 = vld [vmem:[%s11569_s11 + $0xc78] ss:$36 sps:$4 sm:$0xff]   ;;  %v11037_v53 = vld [vmem:[%s11569_s11 + $0x1140] ss:$36 sps:$4 sm:$0xff]  }
 0x392   : > { %v5771_v4 = vpop.f32.mrf.mxu0  ;;  %v5808_v39 = vpop.f32.mrf.mxu1  ;;  %6053 = vmatmul.mubr.bf16.vlgmr.msra.gmra.mxu1 %v12174_v50  ;;  %v11043_v58 = vld [vmem:[%s11569_s11 + $0x10f8] ss:$36 sps:$4 sm:$0xff]  }
 0x393   : > { %v12627_v30 = vadd.f32 %v5808_v39, %v5768_v54  ;;  %6064 = vmatpush1.bf16.msra.mxu0 %v10974_v60  ;;  %6103 = vmatpush1.bf16.msra.mxu1 %v10977_v57  ;;  %v11042_v54 = vld [vmem:[%s11569_s11 + $0xc34] ss:$36 sps:$4 sm:$0xff]   ;;  %v11045_v60 = vld [vmem:[%s11569_s11 + $0x10fc] ss:$36 sps:$4 sm:$0xff]   ;;  %v11054_v39 = vld [vmem:[%s11569_s11 + $0xba4] ss:$36 sps:$4 sm:$0xff]  }
 0x394   : > { %6134 = vmatprep.mubr.bf16.mxu1 %v12191_v14  ;;  %v5772_v56 = vpop.f32.mrf.mxu0  ;;  %v5810_v42 = vpop.f32.mrf.mxu1  ;;  %6065 = vmatprep.subr.bf16.mxu0 %v10982_v3  ;;  %v11040_v57 = vld [vmem:[%s11569_s11 + $0xc30] ss:$36 sps:$4 sm:$0xff]  }
 0x395   : > { %v12634_v16 = vadd.f32 %v5810_v42, %v5770_v17  ;;  %6104 = vmatprep.subr.bf16.mxu1 %v10985_v6  ;;  %v11048_v3 = vld [vmem:[%s11569_s11 + $0xbec] ss:$36 sps:$4 sm:$0xff]   ;;  %v11051_v17 = vld [vmem:[%s11569_s11 + $0x10b4] ss:$36 sps:$4 sm:$0xff]   ;;  %v11060_v42 = vld [vmem:[%s11569_s11 + $0xb5c] ss:$36 sps:$4 sm:$0xff]  }
 0x396   : > { %v5812_v15 = vpop.f32.mrf.mxu1  ;;  %v11046_v6 = vld [vmem:[%s11569_s11 + $0xbe8] ss:$36 sps:$4 sm:$0xff]   ;;  %v11049_v4 = vld [vmem:[%s11569_s11 + $0x10b0] ss:$36 sps:$4 sm:$0xff]  }
 0x397   : > { %6066 = vmatpush1.bf16.msra.mxu0 %v10980_v1  ;;  %6105 = vmatpush1.bf16.msra.mxu1 %v10983_v7  ;;  %v11057_v1 = vld [vmem:[%s11569_s11 + $0x106c] ss:$36 sps:$4 sm:$0xff]   ;;  %v11052_v7 = vld [vmem:[%s11569_s11 + $0xba0] ss:$36 sps:$4 sm:$0xff]  }
 0x398   : > { %v5813_v62 = vpop.f32.mrf.mxu1  ;;  %6067 = vmatprep.subr.bf16.mxu0 %v10988_v10  ;;  %6106 = vmatprep.subr.bf16.mxu1 %v10991_v63  ;;  %v11055_v56 = vld [vmem:[%s11569_s11 + $0x1068] ss:$36 sps:$4 sm:$0xff]   ;;  %v11058_v63 = vld [vmem:[%s11569_s11 + $0xb58] ss:$36 sps:$4 sm:$0xff]   ;;  %v11061_v15 = vld [vmem:[%s11569_s11 + $0x1020] ss:$36 sps:$4 sm:$0xff]  }
 0x399   : > { %v11063_v10 = vld [vmem:[%s11569_s11 + $0x1024] ss:$36 sps:$4 sm:$0xff]   ;;  %v11064_v62 = vld [vmem:[%s11569_s11 + $0xfd8] ss:$36 sps:$4 sm:$0xff]  }
 0x39b   : > { %6068 = vmatpush1.bf16.msra.mxu0 %v10986_v5  ;;  %6107 = vmatpush1.bf16.msra.mxu1 %v10989_v55  ;;  %v11066_v5 = vld [vmem:[%s11569_s11 + $0xfdc] ss:$36 sps:$4 sm:$0xff]  }
 0x39c   : > { %6069 = vmatprep.subr.bf16.mxu0 %v10994_v0  ;;  %6108 = vmatprep.subr.bf16.mxu1 %v10997_v23  ;;  %v11067_v55 = vld [vmem:[%s11569_s11 + $0x458] ss:$36 sps:$4 sm:$0xff]   ;;  %v11069_v23 = vld [vmem:[%s11569_s11 + $0x410] ss:$36 sps:$4 sm:$0xff]  }
 0x39d   : > { %v11068_v0 = vld [vmem:[%s11569_s11 + $0x218] ss:$36 sps:$4 sm:$0xff]  }
 0x39f   : > { %6070 = vmatpush1.bf16.msra.mxu0 %v10992_v2  ;;  %6109 = vmatpush1.bf16.msra.mxu1 %v10995_v25  ;;  %v11070_v2 = vld [vmem:[%s11569_s11 + $0x8d8] ss:$36 sps:$4 sm:$0xff]  }
 0x3a0   : > { %6071 = vmatprep.subr.bf16.mxu0 %v11000_v29  ;;  %6110 = vmatprep.subr.bf16.mxu1 %v11003_v19  ;;  %v11071_v29 = vld [vmem:[%s11569_s11 + $0x1d0] ss:$36 sps:$4 sm:$0xff]   ;;  %v11072_v19 = vld [vmem:[%s11569_s11 + $0x698] ss:$36 sps:$4 sm:$0xff]  }
 0x3a3   : > { %6072 = vmatpush1.bf16.msra.mxu0 %v10998_v31  ;;  %6111 = vmatpush1.bf16.msra.mxu1 %v11001_v21  ;;  %v11073_v21 = vld [vmem:[%s11569_s11 + $0x3c8] ss:$36 sps:$4 sm:$0xff]  }
 0x3a4   : > { %6073 = vmatprep.subr.bf16.mxu0 %v11006_v37  ;;  %6112 = vmatprep.subr.bf16.mxu1 %v11009_v38  ;;  %v11074_v37 = vld [vmem:[%s11569_s11 + $0x890] ss:$36 sps:$4 sm:$0xff]  }
 0x3a7   : > { %6074 = vmatpush1.bf16.msra.mxu0 %v11004_v8  ;;  %6113 = vmatpush1.bf16.msra.mxu1 %v11007_v9  ;;  %v11075_v9 = vld [vmem:[%s11569_s11 + $0x188] ss:$36 sps:$4 sm:$0xff]  }
 0x3a8   : > { %6075 = vmatprep.subr.bf16.mxu0 %v11012_v12  ;;  %6114 = vmatprep.subr.bf16.mxu1 %v11015_v61  ;;  %v11076_v12 = vld [vmem:[%s11569_s11 + $0x650] ss:$36 sps:$4 sm:$0xff]  }
 0x3ab   : > { %6076 = vmatpush1.bf16.msra.mxu0 %v11010_v22  ;;  %6115 = vmatpush1.bf16.msra.mxu1 %v11013_v20  ;;  %v11077_v22 = vld [vmem:[%s11569_s11 + $0x380] ss:$36 sps:$4 sm:$0xff]   ;;  %v11078_v20 = vld [vmem:[%s11569_s11 + $0x848] ss:$36 sps:$4 sm:$0xff]  }
 0x3ac   : > { %6077 = vmatprep.subr.bf16.mxu0 %v11018_v43  ;;  %6116 = vmatprep.subr.bf16.mxu1 %v11021_v36  ;;  %v11079_v36 = vld [vmem:[%s11569_s11 + $0x140] ss:$36 sps:$4 sm:$0xff]  }
 0x3af   : > { %6078 = vmatpush2.bf16.msra.mxu0 %v11016_v26  ;;  %6117 = vmatpush1.bf16.msra.mxu1 %v11019_v47  ;;  %v11080_v26 = vld [vmem:[%s11569_s11 + $0x608] ss:$36 sps:$4 sm:$0xff]  }
 0x3b0   : > { %6079 = vmatprep.subr.bf16.mxu0 %v11024_v28  ;;  %6118 = vmatprep.subr.bf16.mxu1 %v11027_v34  ;;  %v11082_v28 = vld [vmem:[%s11569_s11 + $0x800] ss:$36 sps:$4 sm:$0xff]   ;;  %v11083_v34 = vld [vmem:[%s11569_s11 + $0xf8] ss:$36 sps:$4 sm:$0xff]  }
 0x3b3   : > { %6080 = vmatpush2.bf16.msra.mxu0 %v11022_v45  ;;  %6119 = vmatpush2.bf16.msra.mxu1 %v11025_v46  ;;  %v11084_v45 = vld [vmem:[%s11569_s11 + $0x5c0] ss:$36 sps:$4 sm:$0xff]   ;;  %v11085_v46 = vld [vmem:[%s11569_s11 + $0x2f0] ss:$36 sps:$4 sm:$0xff]  }
 0x3b4   : > { %6081 = vmatprep.subr.bf16.mxu0 %v11030_v33  ;;  %6120 = vmatprep.subr.bf16.mxu1 %v11033_v49  ;;  %v11086_v33 = vld [vmem:[%s11569_s11 + $0x7b8] ss:$36 sps:$4 sm:$0xff]   ;;  %v11087_v49 = vld [vmem:[%s11569_s11 + $0xb0] ss:$36 sps:$4 sm:$0xff]  }
 0x3b7   : > { %6082 = vmatpush2.bf16.msra.mxu0 %v11028_v48  ;;  %6121 = vmatpush2.bf16.msra.mxu1 %v11031_v11  ;;  %v11088_v48 = vld [vmem:[%s11569_s11 + $0x578] ss:$36 sps:$4 sm:$0xff]   ;;  %v11089_v11 = vld [vmem:[%s11569_s11 + $0x2a8] ss:$36 sps:$4 sm:$0xff]  }
 0x3b8   : > { %6083 = vmatprep.subr.bf16.mxu0 %v11036_v32  ;;  %6122 = vmatprep.subr.bf16.mxu1 %v11039_v51  ;;  %v11090_v32 = vld [vmem:[%s11569_s11 + $0x770] ss:$36 sps:$4 sm:$0xff]   ;;  %v11091_v51 = vld [vmem:[%s11569_s11 + $0x68] ss:$36 sps:$4 sm:$0xff]  }
 0x3bb   : > { %6084 = vmatpush2.bf16.msra.mxu0 %v11034_v52  ;;  %6123 = vmatpush2.bf16.msra.mxu1 %v11037_v53  ;;  %v11092_v52 = vld [vmem:[%s11569_s11 + $0x530] ss:$36 sps:$4 sm:$0xff]   ;;  %v11093_v53 = vld [vmem:[%s11569_s11 + $0x260] ss:$36 sps:$4 sm:$0xff]  }
 0x3bc   : > { %6085 = vmatprep.subr.bf16.mxu0 %v11042_v54  ;;  %6124 = vmatprep.subr.bf16.mxu1 %v11045_v60  ;;  %v11094_v54 = vld [vmem:[%s11569_s11 + $0x728] ss:$36 sps:$4 sm:$0xff]   ;;  %v11095_v60 = vld [vmem:[%s11569_s11 + $0x20] ss:$36 sps:$4 sm:$0xff]  }
 0x3bf   : > { %6086 = vmatpush2.bf16.msra.mxu0 %v11040_v57  ;;  %6125 = vmatpush2.bf16.msra.mxu1 %v11043_v58  ;;  %v11096_v57 = vld [vmem:[%s11569_s11 + $0x4e8] ss:$36 sps:$4 sm:$0xff]   ;;  %v11097_v58 = vld [vmem:[%s11569_s11 + $0x6e0] ss:$36 sps:$4 sm:$0xff]  }
 0x3c0   : > { %6087 = vmatprep.subr.bf16.mxu0 %v11048_v3  ;;  %6126 = vmatprep.subr.bf16.mxu1 %v11051_v17  ;;  %v11098_v3 = vld [vmem:[%s11569_s11 + $0xd58] ss:$36 sps:$4 sm:$0xff]   ;;  %v11099_v17 = vld [vmem:[%s11569_s11 + $0x4a0] ss:$36 sps:$4 sm:$0xff]  }
 0x3c3   : > { %6088 = vmatpush2.bf16.msra.mxu0 %v11046_v6  ;;  %6127 = vmatpush2.bf16.msra.mxu1 %v11049_v4  ;;  %v11100_v6 = vld [vmem:[%s11569_s11 + $0xb18] ss:$36 sps:$4 sm:$0xff]   ;;  %v11101_v4 = vld [vmem:[%s11569_s11 + $0xd10] ss:$36 sps:$4 sm:$0xff]  }
 0x3c4   : > { %6089 = vmatprep.subr.bf16.mxu0 %v11054_v39  ;;  %6128 = vmatprep.subr.bf16.mxu1 %v11057_v1  ;;  %v11102_v39 = vld [vmem:[%s11569_s11 + $0x11d8] ss:$36 sps:$4 sm:$0xff]   ;;  %v11103_v1 = vld [vmem:[%s11569_s11 + $0xad0] ss:$36 sps:$4 sm:$0xff]  }
 0x3c7   : > { %6090 = vmatpush2.bf16.msra.mxu0 %v11052_v7  ;;  %6129 = vmatpush2.bf16.msra.mxu1 %v11055_v56  ;;  %v11104_v7 = vld [vmem:[%s11569_s11 + $0xf98] ss:$36 sps:$4 sm:$0xff]   ;;  %v11105_v56 = vld [vmem:[%s11569_s11 + $0xcc8] ss:$36 sps:$4 sm:$0xff]  }
 0x3c8   : > { %6091 = vmatprep.subr.bf16.mxu0 %v11060_v42  ;;  %6130 = vmatprep.subr.bf16.mxu1 %v11063_v10  ;;  %v11106_v42 = vld [vmem:[%s11569_s11 + $0x1190] ss:$36 sps:$4 sm:$0xff]  }
 0x3c9   : > { %v11108_v10 = vld [vmem:[%s11569_s11 + $0xf50] ss:$36 sps:$4 sm:$0xff]  }
 0x3cb   : > { %6092 = vmatpush2.bf16.msra.mxu0 %v11058_v63  ;;  %6131 = vmatpush2.bf16.msra.mxu1 %v11061_v15  ;;  %v11110_v63 = vld [vmem:[%s11569_s11 + $0x1148] ss:$36 sps:$4 sm:$0xff]   ;;  %v11111_v15 = vld [vmem:[%s11569_s11 + $0xa40] ss:$36 sps:$4 sm:$0xff]  }
 0x3cc   : > { %6132 = vmatprep.subr.bf16.mxu1 %v11066_v5  ;;  %10027 = vmatprep.subr.bf16.mxu0 %v11067_v55  ;;  %v11113_v5 = vld [vmem:[%s11569_s11 + $0xc38] ss:$36 sps:$4 sm:$0xff]   ;;  %v11114_v55 = vld [vmem:[%s11569_s11 + $0x1100] ss:$36 sps:$4 sm:$0xff]  }
 0x3ce   : > { %v12692_v25 = vpop.f32.mrf.mxu0  ;;  %6094 = vmatmul.mubr.bf16.vlgmr.msra.gmra.mxu0 %v12257_v24 }
 0x3cf   : > { %6133 = vmatpush2.bf16.msra.mxu1 %v11064_v62  ;;  %10028 = vmatpush3.bf16.msra.mxu0 %v11068_v0  ;;  %v11116_v62 = vld [vmem:[%s11569_s11 + $0xec0] ss:$36 sps:$4 sm:$0xff]   ;;  %v11117_v0 = vld [vmem:[%s11569_s11 + $0xbf0] ss:$36 sps:$4 sm:$0xff]  }
 0x3d0   : > { %6175 = vmatprep.mubr.bf16.mxu0 %v12157_v18  ;;  %v12698_v31 = vpop.f32.mrf.mxu0  ;;  %10029 = vmatprep.subr.bf16.mxu0 %v11069_v23  ;;  %v11118_v23 = vld [vmem:[%s11569_s11 + $0x10b8] ss:$36 sps:$4 sm:$0xff]  }
 0x3d1   : > { %10049 = vmatprep.subr.bf16.mxu1 %v11070_v2  ;;  %v11119_v2 = vld [vmem:[%s11569_s11 + $0x9b0] ss:$36 sps:$4 sm:$0xff]  }
 0x3d2   : > { %v5853_v38 = vpop.f32.mrf.mxu0  ;;  %v12702_v8 = vpop.f32.mrf.mxu1  ;;  %6135 = vmatmul.mubr.bf16.vlgmr.msra.gmra.mxu1 %v12265_v35 }
 0x3d3   : > { %10030 = vmatpush3.bf16.msra.mxu0 %v11071_v29  ;;  %10050 = vmatpush3.bf16.msra.mxu1 %v11072_v19  ;;  %v11120_v29 = vld [vmem:[%s11569_s11 + $0xe78] ss:$36 sps:$4 sm:$0xff]   ;;  %v11121_v19 = vld [vmem:[%s11569_s11 + $0xba8] ss:$36 sps:$4 sm:$0xff]   ;;  %v11124_v38 = vld [vmem:[%s11569_s11 + $0xe30] ss:$36 sps:$4 sm:$0xff]  }
 0x3d4   : > { %6215 = vmatprep.mubr.bf16.mxu1 %v12170_v27  ;;  %v5854_v18 = vpop.f32.mrf.mxu0  ;;  %v12708_v61 = vpop.f32.mrf.mxu1  ;;  %10031 = vmatprep.subr.bf16.mxu0 %v11073_v21  ;;  %v11081_v27 = vld [vmem:[%s11569_s11 + $0x338] ss:$36 sps:$4 sm:$0xff]   ;;  %v11122_v21 = vld [vmem:[%s11569_s11 + $0x1070] ss:$36 sps:$4 sm:$0xff]  }
 0x3d5   : > { %10051 = vmatprep.subr.bf16.mxu1 %v11074_v37  ;;  %v11123_v37 = vld [vmem:[%s11569_s11 + $0x968] ss:$36 sps:$4 sm:$0xff]   ;;  %v11127_v18 = vld [vmem:[%s11569_s11 + $0x920] ss:$36 sps:$4 sm:$0xff]  }
 0x3d6   : > { %v5894_v43 = vpop.f32.mrf.mxu1 }
 0x3d7   : > { %10032 = vmatpush3.bf16.msra.mxu0 %v11075_v9  ;;  %10052 = vmatpush3.bf16.msra.mxu1 %v11076_v12  ;;  %v11125_v9 = vld [vmem:[%s11569_s11 + $0xb60] ss:$36 sps:$4 sm:$0xff]   ;;  %v11126_v12 = vld [vmem:[%s11569_s11 + $0x1028] ss:$36 sps:$4 sm:$0xff]  }
 0x3d8   : > { %v5895_v47 = vpop.f32.mrf.mxu1  ;;  %10033 = vmatprep.subr.bf16.mxu0 %v11077_v22  ;;  %10053 = vmatprep.subr.bf16.mxu1 %v11078_v20  ;;  %v11128_v22 = vld [vmem:[%s11569_s11 + $0xde8] ss:$36 sps:$4 sm:$0xff]   ;;  %v11129_v20 = vld [vmem:[%s11569_s11 + $0xfe0] ss:$36 sps:$4 sm:$0xff]  }
 0x3d9   : > { %v11130_v43 = vld [vmem:[%s11569_s11 + $0xda0] ss:$36 sps:$4 sm:$0xff]  }
 0x3db   : > { %10034 = vmatpush3.bf16.msra.mxu0 %v11079_v36  ;;  %10054 = vmatpush3.bf16.msra.mxu1 %v11080_v26  ;;  %v5891_v26 = vadd.f32 %v12702_v8, %v12692_v25 }
 0x3dc   : > { %10035 = vmatprep.subr.bf16.mxu0 %v11081_v27  ;;  %10055 = vmatprep.subr.bf16.mxu1 %v11082_v28  ;;  %v5893_v27 = vadd.f32 %v12708_v61, %v12698_v31 }
 0x3df   : > { %10036 = vmatpush3.bf16.msra.mxu0 %v11083_v34  ;;  %10056 = vmatpush3.bf16.msra.mxu1 %v11084_v45 }
 0x3e0   : > { %10037 = vmatprep.subr.bf16.mxu0 %v11085_v46  ;;  %10057 = vmatprep.subr.bf16.mxu1 %v11086_v33 }
 0x3e3   : > { %10038 = vmatpush3.bf16.msra.mxu0 %v11087_v49  ;;  %10058 = vmatpush3.bf16.msra.mxu1 %v11088_v48 }
 0x3e4   : > { %10039 = vmatprep.subr.bf16.mxu0 %v11089_v11  ;;  %10059 = vmatprep.subr.bf16.mxu1 %v11090_v32 }
 0x3e7   : > { %10040 = vmatpush3.bf16.msra.mxu0 %v11091_v51  ;;  %10060 = vmatpush3.bf16.msra.mxu1 %v11092_v52 }
 0x3e8   : > { %10041 = vmatprep.subr.bf16.mxu0 %v11093_v53  ;;  %10061 = vmatprep.subr.bf16.mxu1 %v11094_v54 }
 0x3eb   : > { %10042 = vmatpush3.bf16.msra.mxu0 %v11095_v60  ;;  %10062 = vmatpush3.bf16.msra.mxu1 %v11096_v57 }
 0x3ec   : > { %10063 = vmatprep.subr.bf16.mxu1 %v11097_v58  ;;  %10071 = vmatprep.subr.bf16.mxu0 %v11098_v3 }
 0x3ee   : > { %6176 = vmatmul.mubr.bf16.vlgmr.msra.gmra.mxu0 %v12163_v13  ;;  %v11107_v13 = vld [vmem:[%s11569_s11 + $0xa88] ss:$36 sps:$4 sm:$0xff]  }
 0x3ef   : > { %10064 = vmatpush3.bf16.msra.mxu1 %v11099_v17  ;;  %10072 = vmatpush3.bf16.msra.mxu0 %v11100_v6 }
 0x3f0   : > { %6255 = vmatprep.mubr.bf16.mxu0 %v12183_v40  ;;  %10073 = vmatprep.subr.bf16.mxu0 %v11101_v4  ;;  %v11109_v40 = vld [vmem:[%s11569_s11 + $0xc80] ss:$36 sps:$4 sm:$0xff]  }
 0x3f1   : > { %10093 = vmatprep.subr.bf16.mxu1 %v11102_v39 }
 0x3f2   : > { %6216 = vmatmul.mubr.bf16.vlgmr.msra.gmra.mxu1 %v12174_v50  ;;  %v11112_v50 = vld [vmem:[%s11569_s11 + $0xf08] ss:$36 sps:$4 sm:$0xff]  }
 0x3f3   : > { %10074 = vmatpush3.bf16.msra.mxu0 %v11103_v1  ;;  %10094 = vmatpush3.bf16.msra.mxu1 %v11104_v7 }
 0x3f4   : > { %6295 = vmatprep.mubr.bf16.mxu1 %v12191_v14  ;;  %10075 = vmatprep.subr.bf16.mxu0 %v11105_v56  ;;  %v11115_v14 = vld [vmem:[%s11569_s11 + $0x9f8] ss:$36 sps:$4 sm:$0xff]  }
 0x3f5   : > { %10095 = vmatprep.subr.bf16.mxu1 %v11106_v42 }
 0x3f7   : > { %10076 = vmatpush3.bf16.msra.mxu0 %v11107_v13  ;;  %10096 = vmatpush3.bf16.msra.mxu1 %v11108_v10 }
 0x3f8   : > { %10077 = vmatprep.subr.bf16.mxu0 %v11109_v40  ;;  %10097 = vmatprep.subr.bf16.mxu1 %v11110_v63 }
 0x3fb   : > { %10078 = vmatpush3.bf16.msra.mxu0 %v11111_v15  ;;  %10098 = vmatpush3.bf16.msra.mxu1 %v11112_v50 }
 0x3fc   : > { %10079 = vmatprep.subr.bf16.mxu0 %v11113_v5  ;;  %10099 = vmatprep.subr.bf16.mxu1 %v11114_v55 }
 0x3ff   : > { %10080 = vmatpush3.bf16.msra.mxu0 %v11115_v14  ;;  %10100 = vmatpush3.bf16.msra.mxu1 %v11116_v62 }
 0x400   : > { %10081 = vmatprep.subr.bf16.mxu0 %v11117_v0  ;;  %10101 = vmatprep.subr.bf16.mxu1 %v11118_v23  ;;  %v6303_v0 = vpack.c.bf16 %v12481_v41, %v12481_v41 }
 0x403   : > { %10082 = vmatpush3.bf16.msra.mxu0 %v11119_v2  ;;  %10102 = vmatpush3.bf16.msra.mxu1 %v11120_v29 }
 0x404   : > { %10083 = vmatprep.subr.bf16.mxu0 %v11121_v19  ;;  %10103 = vmatprep.subr.bf16.mxu1 %v11122_v21 }
 0x407   : > { %10084 = vmatpush3.bf16.msra.mxu0 %v11123_v37  ;;  %10104 = vmatpush3.bf16.msra.mxu1 %v11124_v38 }
 0x408   : > { %10085 = vmatprep.subr.bf16.mxu0 %v11125_v9  ;;  %10105 = vmatprep.subr.bf16.mxu1 %v11126_v12 }
 0x40b   : > { %10086 = vmatpush3.bf16.msra.mxu0 %v11127_v18  ;;  %10106 = vmatpush3.bf16.msra.mxu1 %v11128_v22 }
 0x40c   : > { %10107 = vmatprep.subr.bf16.mxu1 %v11129_v20 }
 0x40e   : > { %v5931_v36 = vpop.f32.mrf.mxu0  ;;  %6256 = vmatmul.mubr.bf16.vlgmr.msra.gmra.mxu0 %v12257_v24 }
 0x40f   : > { %10108 = vmatpush3.bf16.msra.mxu1 %v11130_v43  ;;  %6575 = vmatprep.mubr.bf16.mxu0 %v11470_v59  ;;  %v5932_v28 = vadd.f32 %v5931_v36, %v5891_v26 }
 0x410   : > { %v5933_v47 = vpop.f32.mrf.mxu0 }
 0x411   : > { %v5934_v46 = vadd.f32 %v5933_v47, %v5893_v27 }
 0x412   : > { %v5935_v34 = vpop.f32.mrf.mxu0  ;;  %v5972_v45 = vpop.f32.mrf.mxu1  ;;  %6296 = vmatmul.mubr.bf16.vlgmr.msra.gmra.mxu1 %v12265_v35 }
 0x413   : > { %v5973_v33 = vadd.f32 %v5972_v45, %v5932_v28  ;;  %6616 = vmatprep.mubr.bf16.mxu1 %v11470_v59 }
 0x414   : > { %v5936_v24 = vpop.f32.mrf.mxu0  ;;  %v5974_v49 = vpop.f32.mrf.mxu1 }
 0x415   : > { %v12776_v48 = vpack.c.bf16 %v5973_v33, %v5973_v33  ;;  %v5975_v25 = vadd.f32 %v5974_v49, %v5934_v46 }
 0x416   : > { %v5976_v8 = vpop.f32.mrf.mxu1 }
 0x417   : > { %v6317_v11 = vrot.slane %v12776_v48, 7  ;;  %v6308_v32 = vpack.c.bf16 %v5975_v25, %v5975_v25 }
 0x418   : > { %v5977_v51 = vpop.f32.mrf.mxu1 }
 0x419   : > { %6322 = vrot.lane.b32.xlu0 %v6317_v11, %s11469_s28  ;;  %v6318_v31 = vrot.slane %v6308_v32, 7 }
 0x41d   : > { %6324 = vrot.lane.b32.xlu0 %v6318_v31, %s11469_s28 }
 0x44e   : > { %v6013_v35 = vpop.f32.mrf.mxu0 }
 0x450   : > { %v6015_v61 = vpop.f32.mrf.mxu0 }
 0x452   : > { %v6017_v52 = vpop.f32.mrf.mxu0  ;;  %v6054_v53 = vpop.f32.mrf.mxu1 }
 0x453   : > { %v6055_v6 = vadd.f32 %v6054_v53, %v6013_v35  ;;  %v6304_v35 = vpack.c.bf16 %v12488_v44, %v12488_v44  ;;  %v6305_v53 = vpack.c.bf16 %v12627_v30, %v12627_v30 }
 0x454   : > { %v6018_v54 = vpop.f32.mrf.mxu0  ;;  %v6056_v60 = vpop.f32.mrf.mxu1 }
 0x455   : > { %v6057_v39 = vadd.f32 %v6056_v60, %v6015_v61 }
 0x456   : > { %v6058_v57 = vpop.f32.mrf.mxu1 }
 0x458   : > { %v6059_v58 = vpop.f32.mrf.mxu1 }
 0x48b   : > { %v6323_v3 = vpop.permute.xlu0 %6322 }
 0x48e   : > { %v6095_v17 = vpop.f32.mrf.mxu0 }
 0x48f   : > { %v6096_v1 = vadd.f32 %v6095_v17, %v6055_v6  ;;  %v6325_v42 = vpop.permute.xlu0 %6324 }
 0x490   : > { %v6097_v4 = vpop.f32.mrf.mxu0  ;;  %v6332_v55 = vsel %vm1285_vm11, %v6323_v3, %v6325_v42 }
 0x491   : > { %v6098_v13 = vadd.f32 %v6097_v4, %v6057_v39  ;;  %v12786_v29 = vsel %vm1294_vm3, %v6303_v0, %v6332_v55  ;;  %v6306_v39 = vpack.c.bf16 %v12634_v16, %v12634_v16 }
 0x492   : > { %v6099_v7 = vpop.f32.mrf.mxu0  ;;  %v6136_v56 = vpop.f32.mrf.mxu1  ;;  %v6361_v19 = vrot.slane %v12786_v29, 6  ;;  %v6399_v21 = vrot.slane %v12786_v29, 2  ;;  %v6380_v41 = vrot.slane %v12786_v29, 4 }
 0x493   : > { %v6137_v10 = vadd.f32 %v6136_v56, %v6096_v1 }
 0x494   : > { %v6100_v40 = vpop.f32.mrf.mxu0  ;;  %v6138_v63 = vpop.f32.mrf.mxu1 }
 0x495   : > { %v6309_v15 = vpack.c.bf16 %v6137_v10, %v6137_v10  ;;  %v6139_v50 = vadd.f32 %v6138_v63, %v6098_v13 }
 0x496   : > { %v6140_v5 = vpop.f32.mrf.mxu1 }
 0x497   : > { %v6319_v14 = vrot.slane %v6309_v15, 7  ;;  %v6310_v62 = vpack.c.bf16 %v6139_v50, %v6139_v50  ;;  %v6646_v15 = vrot.slane %v12786_v29, 1 }
 0x498   : > { %v6141_v23 = vpop.f32.mrf.mxu1 }
 0x499   : > { %v6320_v2 = vrot.slane %v6310_v62, 7  ;;  %6326 = vrot.lane.b32.xlu1 %v6319_v14, %s11469_s28 }
 0x49b   : > { %6328 = vrot.lane.b32.xlu0 %v6320_v2, %s11469_s28  ;;  %v9796_v2 = vld [vmem:[#allocation3] ss:$0 sm:$0xff] }
 0x49f   : > { %6432 = vrot.lane.b32.xlu0 %v6361_v19, %s11467_s22 }
 0x4a3   : > { %6460 = vrot.lane.b32.xlu0 %v6399_v21, %s11469_s28 }
 0x4a7   : > { %6385 = vrot.lane.b32.xlu0 %v6380_v41, %s11464_s2 }
 0x4ae   : > { %v10043_v37 = vpop.f32.mrf.mxu0 }
 0x4b0   : > { %v10044_v38 = vpop.f32.mrf.mxu0 }
 0x4b1   : > { %v10045_v27 = vadd.f32 %v10044_v38, %v10043_v37 }
 0x4b2   : > { %v10046_v9 = vpop.f32.mrf.mxu0  ;;  %v10065_v12 = vpop.f32.mrf.mxu1 }
 0x4b4   : > { %v10047_v18 = vpop.f32.mrf.mxu0  ;;  %v10066_v22 = vpop.f32.mrf.mxu1 }
 0x4b5   : > { %v10067_v26 = vadd.f32 %v10066_v22, %v10065_v12 }
 0x4b6   : > { %v10068_v20 = vpop.f32.mrf.mxu1 }
 0x4b7   : > { %v6218_v46 = vadd.f32 %v10067_v26, %v10045_v27 }
 0x4b8   : > { %v10069_v43 = vpop.f32.mrf.mxu1 }
 0x4ce   : > { %v10087_v36 = vpop.f32.mrf.mxu0 }
 0x4d0   : > { %v10088_v47 = vpop.f32.mrf.mxu0 }
 0x4d1   : > { %v10089_v28 = vadd.f32 %v10088_v47, %v10087_v36 }
 0x4d2   : > { %v10090_v34 = vpop.f32.mrf.mxu0  ;;  %v10109_v45 = vpop.f32.mrf.mxu1 }
 0x4d3   : > { %v6258_v49 = vadd.f32 %v10089_v28, %v6218_v46 }
 0x4d4   : > { %v10091_v33 = vpop.f32.mrf.mxu0  ;;  %v10110_v24 = vpop.f32.mrf.mxu1 }
 0x4d5   : > { %v10111_v25 = vadd.f32 %v10110_v24, %v10109_v45 }
 0x4d6   : > { %v10112_v8 = vpop.f32.mrf.mxu1 }
 0x4d7   : > { %v6298_v11 = vadd.f32 %v10111_v25, %v6258_v49 }
 0x4d8   : > { %v10113_v32 = vpop.f32.mrf.mxu1 }
 0x4d9   : > { %v6311_v51 = vpack.c.bf16 %v6298_v11, %v6298_v11 }
 0x4db   : > { %v6321_v31 = vrot.slane %v6311_v51, 7 }
 0x4dd   : > { %6330 = vrot.lane.b32.xlu1 %v6321_v31, %s11469_s28 }
 0x4e1   : > { %6418 = vrot.lane.b32.xlu1 %v12786_v29, %s11466_s20 }
 0x4e5   : > { %6446 = vrot.lane.b32.xlu1 %v6380_v41, %s11468_s23  ;;  %v6354_v41 = vld [vmem:[%s11524_s14] sm:$0xf] }
 0x4e9   : > { %6366 = vrot.lane.b32.xlu1 %v6361_v19, %s11463_s12  ;;  %v6353_v19 = vld [vmem:[%s11519_s8] sm:$0xf] }
 0x50b   : > { %v6327_v61 = vpop.permute.xlu1 %6326 }
 0x50c   : > { %v6333_v52 = vsel %vm1285_vm11, %v6325_v42, %v6327_v61 }
 0x50d   : > { %v12808_v54 = vsel %vm1294_vm3, %v6304_v35, %v6333_v52  ;;  %v6329_v60 = vpop.permute.xlu0 %6328 }
 0x50e   : > { %v6334_v57 = vsel %vm1285_vm11, %v6327_v61, %v6329_v60  ;;  %6420 = vrot.lane.b32.xlu1 %v12808_v54, %s11466_s20  ;;  %v6362_v44 = vrot.slane %v12808_v54, 6  ;;  %v6400_v30 = vrot.slane %v12808_v54, 2  ;;  %v6381_v3 = vrot.slane %v12808_v54, 4 }
 0x50f   : > { %v12814_v58 = vsel %vm1294_vm3, %v6305_v53, %v6334_v57  ;;  %v6647_v55 = vrot.slane %v12808_v54, 1 }
 0x510   : > { %6422 = vrot.lane.b32.xlu0 %v12814_v58, %s11466_s20  ;;  %v6363_v17 = vrot.slane %v12814_v58, 6  ;;  %v6382_v6 = vrot.slane %v12814_v58, 4  ;;  %v6401_v4 = vrot.slane %v12814_v58, 2  ;;  %v6648_v50 = vrot.slane %v12814_v58, 1 }
 0x511   : > { %v6433_v14 = vpop.permute.xlu0 %6432 }
 0x512   : > { %6434 = vrot.lane.b32.xlu1 %v6362_v44, %s11467_s22 }
 0x514   : > { %6462 = vrot.lane.b32.xlu0 %v6400_v30, %s11469_s28 }
 0x516   : > { %6448 = vrot.lane.b32.xlu1 %v6381_v3, %s11468_s23 }
 0x518   : > { %6387 = vrot.lane.b32.xlu0 %v6381_v3, %s11464_s2 }
 0x51a   : > { %6368 = vrot.lane.b32.xlu1 %v6362_v44, %s11463_s12 }
 0x51c   : > { %6436 = vrot.lane.b32.xlu0 %v6363_v17, %s11467_s22 }
 0x51e   : > { %6406 = vrot.lane.b32.xlu1 %v6400_v30, %s11465_s16 }
 0x520   : > { %6450 = vrot.lane.b32.xlu0 %v6382_v6, %s11468_s23 }
 0x522   : > { %6464 = vrot.lane.b32.xlu1 %v6401_v4, %s11469_s28 }
 0x524   : > { %6370 = vrot.lane.b32.xlu0 %v6363_v17, %s11463_s12 }
 0x526   : > { %6389 = vrot.lane.b32.xlu1 %v6382_v6, %s11464_s2 }
 0x528   : > { %6408 = vrot.lane.b32.xlu0 %v6401_v4, %s11465_s16 }
 0x54f   : > { %v6331_v1 = vpop.permute.xlu1 %6330 }
 0x550   : > { %v6335_v7 = vsel %vm1285_vm11, %v6329_v60, %v6331_v1  ;;  %v6350_v56 = vsel %vm1294_vm3, %v12776_v48, %v6331_v1 }
 0x551   : > { %v12842_v42 = vsel %vm1294_vm3, %v6306_v39, %v6335_v7  ;;  %6426 = vrot.lane.b32.xlu0 %v6350_v56, %s11466_s20  ;;  %v6365_v13 = vrot.slane %v6350_v56, 6  ;;  %v6403_v10 = vrot.slane %v6350_v56, 2  ;;  %v6384_v16 = vrot.slane %v6350_v56, 4 }
 0x552   : > { %6424 = vrot.lane.b32.xlu1 %v12842_v42, %s11466_s20  ;;  %v6364_v48 = vrot.slane %v12842_v42, 6  ;;  %v6383_v40 = vrot.slane %v12842_v42, 4  ;;  %v6402_v63 = vrot.slane %v12842_v42, 2  ;;  %v6650_v62 = vrot.slane %v6350_v56, 1 }
 0x553   : > { %v6419_v5 = vpop.permute.xlu1 %6418  ;;  %v6649_v0 = vrot.slane %v12842_v42, 1 }
 0x555   : > { %6440 = vrot.lane.b32.xlu0 %v6365_v13, %s11467_s22 }
 0x556   : > { %6468 = vrot.lane.b32.xlu1 %v6403_v10, %s11469_s28 }
 0x557   : > { %v6447_v23 = vpop.permute.xlu1 %6446 }
 0x559   : > { %6454 = vrot.lane.b32.xlu0 %v6384_v16, %s11468_s23 }
 0x55a   : > { %6393 = vrot.lane.b32.xlu1 %v6384_v16, %s11464_s2 }
 0x55b   : > { %v6367_v37 = vpop.permute.xlu1 %6366 }
 0x55d   : > { %6374 = vrot.lane.b32.xlu0 %v6365_v13, %s11463_s12 }
 0x55e   : > { %6438 = vrot.lane.b32.xlu1 %v6364_v48, %s11467_s22 }
 0x561   : > { %6412 = vrot.lane.b32.xlu0 %v6403_v10, %s11465_s16 }
 0x562   : > { %6452 = vrot.lane.b32.xlu1 %v6383_v40, %s11468_s23 }
 0x565   : > { %6466 = vrot.lane.b32.xlu0 %v6402_v63, %s11469_s28 }
 0x566   : > { %6372 = vrot.lane.b32.xlu1 %v6364_v48, %s11463_s12 }
 0x569   : > { %6391 = vrot.lane.b32.xlu0 %v6383_v40, %s11464_s2 }
 0x56a   : > { %6410 = vrot.lane.b32.xlu1 %v6402_v63, %s11465_s16 }
 0x56d   : > { %6651 = vrot.lane.b32.xlu0 %v6646_v15, %s11465_s16 }
 0x56e   : > { %6404 = vrot.lane.b32.xlu1 %v6399_v21, %s11465_s16  ;;  %v6461_v21 = vpop.permute.xlu0 %6460 }
 0x571   : > { %6655 = vrot.lane.b32.xlu0 %v6648_v50, %s11465_s16 }
 0x572   : > { %6653 = vrot.lane.b32.xlu1 %v6647_v55, %s11465_s16  ;;  %v6386_v38 = vpop.permute.xlu0 %6385 }
 0x575   : > { %6659 = vrot.lane.b32.xlu0 %v6650_v62, %s11465_s16 }
 0x576   : > { %6657 = vrot.lane.b32.xlu1 %v6649_v0, %s11465_s16 }
 0x579   : > { %6635 = vperm.xlu0 %10294, %v9796_v2  }
 0x57a   : > { %6536 = vperm.xlu1 %10295, %v6353_v19  }
 0x57e   : > { %6769 = vperm.xlu1 %10295, %v6354_v41  }
 0x580   : > { %v6421_v9 = vpop.permute.xlu1 %6420 }
 0x581   : > { %v6428_v49 = vsel %vm1196_vm4, %v6419_v5, %v6421_v9 }
 0x582   : > { %v6423_v12 = vpop.permute.xlu0 %6422 }
 0x583   : > { %v6429_v25 = vsel %vm1196_vm4, %v6421_v9, %v6423_v12 }
 0x584   : > { %v6435_v18 = vpop.permute.xlu1 %6434 }
 0x585   : > { %v6442_v45 = vsel %vm1226_vm6, %v6433_v14, %v6435_v18 }
 0x586   : > { %v6463_v22 = vpop.permute.xlu0 %6462  ;;  %v6504_v11 = vsel %vm1319_vm5, %v6428_v49, %v6442_v45 }
 0x587   : > { %v6470_v52 = vsel %vm1285_vm11, %v6461_v21, %v6463_v22 }
 0x588   : > { %v6449_v20 = vpop.permute.xlu1 %6448 }
 0x589   : > { %v6456_v24 = vsel %vm1256_vm8, %v6447_v23, %v6449_v20 }
 0x58a   : > { %v6388_v43 = vpop.permute.xlu0 %6387  ;;  %v6515_v51 = vsel %vm1353_vm9, %v6504_v11, %v6456_v24  ;;  %v6351_v11 = vld [vmem:[%s11509_s29] sm:$0x3] }
 0x58b   : > { %v6395_v36 = vsel %vm1120_vm1, %v6386_v38, %v6388_v43  ;;  %v6523_v44 = vsel %vm1387_vm12, %v6515_v51, %v6470_v52 }
 0x58c   : > { %v6369_v26 = vpop.permute.xlu1 %6368 }
 0x58d   : > { %v6376_v47 = vsel %vm1067_vm0, %v6367_v37, %v6369_v26 }
 0x58e   : > { %v6475_v27 = vsel %vm1319_vm5, %v12786_v29, %v6376_v47  ;;  %v6437_v28 = vpop.permute.xlu0 %6436 }
 0x58f   : > { %v12881_v34 = vsel %vm1353_vm9, %v6475_v27, %v6395_v36  ;;  %v6443_v46 = vsel %vm1226_vm6, %v6435_v18, %v6437_v28 }
 0x590   : > { %v12885_v33 = vpop.permute.xlu1 %6406  ;;  %v6507_v29 = vsel %vm1319_vm5, %v6429_v25, %v6443_v46 }
 0x592   : > { %v6451_v8 = vpop.permute.xlu0 %6450 }
 0x593   : > { %v6457_v32 = vsel %vm1256_vm8, %v6449_v20, %v6451_v8 }
 0x594   : > { %v6465_v31 = vpop.permute.xlu1 %6464  ;;  %v6517_v35 = vsel %vm1353_vm9, %v6507_v29, %v6457_v32 }
 0x595   : > { %v6471_v61 = vsel %vm1285_vm11, %v6463_v22, %v6465_v31 }
 0x596   : > { %v6371_v53 = vpop.permute.xlu0 %6370  ;;  %v6526_v60 = vsel %vm1387_vm12, %v6517_v35, %v6471_v61  ;;  %v11133_v35 = vld [vmem:[%s11574_s18 + $0x11c] ss:$20 sps:$4 sm:$0xff]  }
 0x597   : > { %v6377_v57 = vsel %vm1067_vm0, %v6369_v26, %v6371_v53  ;;  %6555 = vmatprep.subr.bf16.mxu0 %v6526_v60  ;;  %v11136_v60 = vld [vmem:[%s11574_s18 + $0x39c] ss:$20 sps:$4 sm:$0xff]  }
 0x598   : > { %v6477_v30 = vsel %vm1319_vm5, %v12808_v54, %v6377_v57  ;;  %v6390_v3 = vpop.permute.xlu1 %6389  ;;  %6556 = vmatpush1.bf16.msra.mxu0 %v6523_v44 }
 0x599   : > { %v6396_v17 = vsel %vm1120_vm1, %v6388_v43, %v6390_v3 }
 0x59a   : > { %v6409_v6 = vpop.permute.xlu0 %6408  ;;  %v6485_v4 = vsel %vm1353_vm9, %v6477_v30, %v6396_v17  ;;  %v11131_v17 = vld [vmem:[%s11574_s18 + $0x118] ss:$20 sps:$4 sm:$0xff]  }
 0x59b   : > { %v6415_v39 = vsel %vm1164_vm2, %v12885_v33, %v6409_v6 }
 0x59c   : > { %v6494_v1 = vsel %vm1387_vm12, %v6485_v4, %v6415_v39  ;;  %v11139_v4 = vld [vmem:[%s11574_s18 + $0xf4] ss:$20 sps:$4 sm:$0xff]  }
 0x59d   : > { %6557 = vmatprep.subr.bf16.mxu0 %v6494_v1  ;;  %v11142_v39 = vld [vmem:[%s11574_s18 + $0x374] ss:$20 sps:$4 sm:$0xff]   ;;  %v11137_v1 = vld [vmem:[%s11574_s18 + $0xf0] ss:$20 sps:$4 sm:$0xff]  }
 0x5c3   : > { %v6427_v7 = vpop.permute.xlu0 %6426 }
 0x5c4   : > { %v6425_v56 = vpop.permute.xlu1 %6424 }
 0x5c5   : > { %v6430_v62 = vsel %vm1196_vm4, %v6423_v12, %v6425_v56  ;;  %v6431_v0 = vsel %vm1196_vm4, %v6425_v56, %v6427_v7  ;;  %v11140_v7 = vld [vmem:[%s11574_s18 + $0x370] ss:$20 sps:$4 sm:$0xff]   ;;  %v11145_v56 = vld [vmem:[%s11574_s18 + $0xcc] ss:$20 sps:$4 sm:$0xff]  }
 0x5c7   : > { %v6441_v13 = vpop.permute.xlu0 %6440 }
 0x5c8   : > { %v6469_v10 = vpop.permute.xlu1 %6468 }
 0x5cb   : > { %v6455_v16 = vpop.permute.xlu0 %6454 }
 0x5cc   : > { %v6394_v48 = vpop.permute.xlu1 %6393 }
 0x5cf   : > { %v6375_v54 = vpop.permute.xlu0 %6374 }
 0x5d0   : > { %v6439_v40 = vpop.permute.xlu1 %6438 }
 0x5d1   : > { %v6444_v15 = vsel %vm1226_vm6, %v6437_v28, %v6439_v40  ;;  %v6445_v50 = vsel %vm1226_vm6, %v6439_v40, %v6441_v13  ;;  %v11148_v13 = vld [vmem:[%s11574_s18 + $0x34c] ss:$20 sps:$4 sm:$0xff]  }
 0x5d2   : > { %v6510_v23 = vsel %vm1319_vm5, %v6430_v62, %v6444_v15  ;;  %v6513_v2 = vsel %vm1319_vm5, %v6431_v0, %v6445_v50  ;;  %v11149_v40 = vld [vmem:[%s11574_s18 + $0xa0] ss:$20 sps:$4 sm:$0xff]   ;;  %v11157_v15 = vld [vmem:[%s11574_s18 + $0x7c] ss:$20 sps:$4 sm:$0xff]  }
 0x5d3   : > { %v6413_v63 = vpop.permute.xlu0 %6412  ;;  %v11160_v50 = vld [vmem:[%s11574_s18 + $0x2fc] ss:$20 sps:$4 sm:$0xff]   ;;  %v11166_v62 = vld [vmem:[%s11574_s18 + $0x2d4] ss:$20 sps:$4 sm:$0xff]  }
 0x5d4   : > { %v6453_v5 = vpop.permute.xlu1 %6452  ;;  %v11161_v0 = vld [vmem:[%s11574_s18 + $0x50] ss:$20 sps:$4 sm:$0xff]  }
 0x5d5   : > { %v6458_v55 = vsel %vm1256_vm8, %v6451_v8, %v6453_v5  ;;  %v6459_v14 = vsel %vm1256_vm8, %v6453_v5, %v6455_v16  ;;  %v11146_v16 = vld [vmem:[%s11574_s18 + $0x348] ss:$20 sps:$4 sm:$0xff]   ;;  %v11155_v5 = vld [vmem:[%s11574_s18 + $0x78] ss:$20 sps:$4 sm:$0xff]  }
 0x5d6   : > { %v6519_v21 = vsel %vm1353_vm9, %v6510_v23, %v6458_v55  ;;  %v6521_v9 = vsel %vm1353_vm9, %v6513_v2, %v6459_v14  ;;  %v11158_v55 = vld [vmem:[%s11574_s18 + $0x2f8] ss:$20 sps:$4 sm:$0xff]   ;;  %v11163_v14 = vld [vmem:[%s11574_s18 + $0x54] ss:$20 sps:$4 sm:$0xff]   ;;  %v11164_v23 = vld [vmem:[%s11574_s18 + $0x2d0] ss:$20 sps:$4 sm:$0xff]  }
 0x5d7   : > { %v6467_v19 = vpop.permute.xlu0 %6466  ;;  %v11169_v2 = vld [vmem:[%s11574_s18 + $0x2c] ss:$20 sps:$4 sm:$0xff]  }
 0x5d8   : > { %v6472_v41 = vsel %vm1285_vm11, %v6465_v31, %v6467_v19  ;;  %v6473_v37 = vsel %vm1285_vm11, %v6467_v19, %v6469_v10  ;;  %v6373_v38 = vpop.permute.xlu1 %6372  ;;  %v11143_v10 = vld [vmem:[%s11574_s18 + $0xc8] ss:$20 sps:$4 sm:$0xff]   ;;  %v11172_v19 = vld [vmem:[%s11574_s18 + $0x2ac] ss:$20 sps:$4 sm:$0xff]  }
 0x5d9   : > { %v6378_v18 = vsel %vm1067_vm0, %v6371_v53, %v6373_v38  ;;  %v6379_v12 = vsel %vm1067_vm0, %v6373_v38, %v6375_v54  ;;  %v6532_v22 = vsel %vm1387_vm12, %v6521_v9, %v6473_v37  ;;  %v6529_v20 = vsel %vm1387_vm12, %v6519_v21, %v6472_v41  ;;  %v11154_v54 = vld [vmem:[%s11574_s18 + $0x324] ss:$20 sps:$4 sm:$0xff]   ;;  %v11167_v21 = vld [vmem:[%s11574_s18 + $0x28] ss:$20 sps:$4 sm:$0xff]   ;;  %v11173_v9 = vld [vmem:[%s11574_s18] ss:$20 sps:$4 sm:$0xff]  }
 0x5da   : > { %6596 = vmatprep.subr.bf16.mxu1 %v6532_v22  ;;  %v6479_v36 = vsel %vm1319_vm5, %v12814_v58, %v6378_v18  ;;  %v6481_v26 = vsel %vm1319_vm5, %v12842_v42, %v6379_v12  ;;  %v11170_v41 = vld [vmem:[%s11574_s18 + $0x2a8] ss:$20 sps:$4 sm:$0xff]   ;;  %v11175_v37 = vld [vmem:[%s11574_s18 + $0x4] ss:$20 sps:$4 sm:$0xff]   ;;  %v11176_v18 = vld [vmem:[%s11574_s18 + $0x280] ss:$20 sps:$4 sm:$0xff]  }
 0x5db   : > { %6597 = vmatpush1.bf16.msra.mxu1 %v6529_v20  ;;  %v6392_v43 = vpop.permute.xlu0 %6391  ;;  %v11178_v38 = vld [vmem:[%s11574_s18 + $0x284] ss:$20 sps:$4 sm:$0xff]   ;;  %v11181_v12 = vld [vmem:[%s11574_s18 + $0x25c] ss:$20 sps:$4 sm:$0xff]  }
 0x5dc   : > { %v6397_v47 = vsel %vm1120_vm1, %v6390_v3, %v6392_v43  ;;  %v6398_v27 = vsel %vm1120_vm1, %v6392_v43, %v6394_v48  ;;  %v6411_v28 = vpop.permute.xlu1 %6410  ;;  %v6352_v3 = vld [vmem:[%s11514_s3] sm:$0x3]  ;;  %v11151_v48 = vld [vmem:[%s11574_s18 + $0xa4] ss:$20 sps:$4 sm:$0xff]   ;;  %v11184_v22 = vld [vmem:[%s11574_s18 + $0x4dc] ss:$20 sps:$4 sm:$0xff]  }
 0x5dd   : > { %v6487_v45 = vsel %vm1353_vm9, %v6479_v36, %v6397_v47  ;;  %v6416_v46 = vsel %vm1164_vm2, %v6409_v6, %v6411_v28  ;;  %v6417_v24 = vsel %vm1164_vm2, %v6411_v28, %v6413_v63  ;;  %v6489_v49 = vsel %vm1353_vm9, %v6481_v26, %v6398_v27  ;;  %v11134_v6 = vld [vmem:[%s11574_s18 + $0x398] ss:$20 sps:$4 sm:$0xff]   ;;  %v11152_v63 = vld [vmem:[%s11574_s18 + $0x320] ss:$20 sps:$4 sm:$0xff]   ;;  %v11185_v47 = vld [vmem:[%s11574_s18 + $0x230] ss:$20 sps:$4 sm:$0xff]  }
 0x5de   : > { %v6500_v25 = vsel %vm1387_vm12, %v6489_v49, %v6417_v24  ;;  %v6497_v58 = vsel %vm1387_vm12, %v6487_v45, %v6416_v46  ;;  %v11179_v20 = vld [vmem:[%s11574_s18 + $0x258] ss:$20 sps:$4 sm:$0xff]   ;;  %v11187_v36 = vld [vmem:[%s11574_s18 + $0x234] ss:$20 sps:$4 sm:$0xff]   ;;  %v11188_v27 = vld [vmem:[%s11574_s18 + $0x4b0] ss:$20 sps:$4 sm:$0xff]  }
 0x5df   : > { %6598 = vmatprep.subr.bf16.mxu1 %v6500_v25  ;;  %v6652_v42 = vpop.permute.xlu0 %6651  ;;  %v11182_v43 = vld [vmem:[%s11574_s18 + $0x4d8] ss:$20 sps:$4 sm:$0xff]   ;;  %v11190_v26 = vld [vmem:[%s11574_s18 + $0x4b4] ss:$20 sps:$4 sm:$0xff]  }
 0x5e0   : > { %v6405_v8 = vpop.permute.xlu1 %6404  ;;  %6599 = vmatpush1.bf16.msra.mxu1 %v6497_v58  ;;  %v11193_v28 = vld [vmem:[%s11574_s18 + $0x20c] ss:$20 sps:$4 sm:$0xff]   ;;  %v11191_v46 = vld [vmem:[%s11574_s18 + $0x208] ss:$20 sps:$4 sm:$0xff]   ;;  %v11199_v49 = vld [vmem:[%s11574_s18 + $0x1e4] ss:$20 sps:$4 sm:$0xff]  }
 0x5e1   : > { %v6414_v29 = vsel %vm1164_vm2, %v6405_v8, %v12885_v33  ;;  %v11196_v45 = vld [vmem:[%s11574_s18 + $0x48c] ss:$20 sps:$4 sm:$0xff]   ;;  %v11194_v24 = vld [vmem:[%s11574_s18 + $0x488] ss:$20 sps:$4 sm:$0xff]   ;;  %v11202_v25 = vld [vmem:[%s11574_s18 + $0x464] ss:$20 sps:$4 sm:$0xff]  }
 0x5e2   : > { %v6491_v32 = vsel %vm1387_vm12, %v12881_v34, %v6414_v29  ;;  %vm6665_vm12 = vcmask 15360   ;;  %v11197_v58 = vld [vmem:[%s11574_s18 + $0x1e0] ss:$20 sps:$4 sm:$0xff]   ;;  %v11205_v8 = vld [vmem:[%s11574_s18 + $0x1bc] ss:$20 sps:$4 sm:$0xff]  }
 0x5e3   : > { %6558 = vmatpush1.bf16.msra.mxu0 %v6491_v32  ;;  %9795 = vmatmul.mubr.msk.bf16.vlgmr.msra.gmra.mxu1 %vm6539_vm7, %v6351_v11  ;;  %v6656_v51 = vpop.permute.xlu0 %6655  ;;  %v11203_v29 = vld [vmem:[%s11574_s18 + $0x1b8] ss:$20 sps:$4 sm:$0xff]  }
 0x5e4   : > { %v6654_v31 = vpop.permute.xlu1 %6653  ;;  %6754 = vmatprep.mubr.bf16.mxu1 %v11470_v59  ;;  %v11206_v32 = vld [vmem:[%s11574_s18 + $0x438] ss:$20 sps:$4 sm:$0xff]  }
 0x5e5   : > { %v6661_v61 = vsel %vm1164_vm2, %v6652_v42, %v6654_v31  ;;  %v6662_v52 = vsel %vm1164_vm2, %v6654_v31, %v6656_v51  ;;  %v11200_v42 = vld [vmem:[%s11574_s18 + $0x460] ss:$20 sps:$4 sm:$0xff]  }
 0x5e6   : > { %v6670_v53 = vsel %vm1294_vm3, %v6661_v61, 0  ;;  %9794 = vmatmul.mubr.msk.bf16.vlgmr.msra.gmra.mxu0 %vm6539_vm7, %v6351_v11  ;;  %9797 = vmatprep.subr.msk.bf16.mxu0 %vm1294_vm3, %v6662_v52  ;;  %v11208_v11 = vld [vmem:[%s11574_s18 + $0x43c] ss:$20 sps:$4 sm:$0xff]   ;;  %v11214_v31 = vld [vmem:[%s11574_s18 + $0x414] ss:$20 sps:$4 sm:$0xff]   ;;  %vm8178_vm7 = vcmask 523264  }
 0x5e7   : > { %6696 = vmatpush1.bf16.msra.mxu0 %v6670_v53  ;;  %v6660_v34 = vpop.permute.xlu0 %6659  ;;  %6713 = vmatprep.mubr.bf16.mxu0 %v11470_v59  ;;  %v11212_v61 = vld [vmem:[%s11574_s18 + $0x410] ss:$20 sps:$4 sm:$0xff]   ;;  %v11217_v52 = vld [vmem:[%s11574_s18 + $0x16c] ss:$20 sps:$4 sm:$0xff]  }
 0x5e8   : > { %v6658_v33 = vpop.permute.xlu1 %6657  ;;  %7804 = vmatprep.subr.bf16.mxu0 %v11133_v35  ;;  %v11209_v35 = vld [vmem:[%s11574_s18 + $0x190] ss:$20 sps:$4 sm:$0xff]   ;;  %v11220_v53 = vld [vmem:[%s11574_s18 + $0x3ec] ss:$20 sps:$4 sm:$0xff]  }
 0x5e9   : > { %v6663_v57 = vsel %vm1164_vm2, %v6656_v51, %v6658_v33  ;;  %v6664_v44 = vsel %vm1164_vm2, %v6658_v33, %v6660_v34  ;;  %v11211_v51 = vld [vmem:[%s11574_s18 + $0x194] ss:$20 sps:$4 sm:$0xff]  }
 0x5ea   : > { %v6676_v30 = vsel %vm1294_vm3, %v6663_v57, 0  ;;  %9799 = vmatprep.subr.msk.bf16.mxu1 %vm1294_vm3, %v6664_v44  ;;  %v11215_v34 = vld [vmem:[%s11574_s18 + $0x168] ss:$20 sps:$4 sm:$0xff]   ;;  %v11226_v57 = vld [vmem:[%s11574_s18 + $0x3c4] ss:$20 sps:$4 sm:$0xff]  }
 0x5eb   : > { %6737 = vmatpush1.bf16.msra.mxu1 %v6676_v30  ;;  %v11218_v33 = vld [vmem:[%s11574_s18 + $0x3e8] ss:$20 sps:$4 sm:$0xff]   ;;  %v11221_v44 = vld [vmem:[%s11574_s18 + $0x140] ss:$20 sps:$4 sm:$0xff]  }
 0x5ec   : > { %7845 = vmatprep.subr.bf16.mxu1 %v11136_v60  ;;  %v11223_v60 = vld [vmem:[%s11574_s18 + $0x144] ss:$20 sps:$4 sm:$0xff]   ;;  %v11224_v30 = vld [vmem:[%s11574_s18 + $0x3c0] ss:$20 sps:$4 sm:$0xff]  }
 0x5ee   : > { %9798 = vmatmul.mubr.msk.bf16.vlgmr.msra.gmra.mxu0 %vm6665_vm12, %v6352_v3  ;;  %9800 = vmatmul.mubr.msk.bf16.vlgmr.msra.gmra.mxu1 %vm6665_vm12, %v6352_v3  ;;  %v11229_v3 = vld [vmem:[%s11574_s18 + $0x124] ss:$20 sps:$4 sm:$0xff]   ;;  %vm8249_vm12 = vcmask 31744  }
 0x5ef   : > { %7805 = vmatpush1.bf16.msra.mxu0 %v11131_v17  ;;  %7846 = vmatpush1.bf16.msra.mxu1 %v11134_v6  ;;  %v11232_v17 = vld [vmem:[%s11574_s18 + $0x3a4] ss:$20 sps:$4 sm:$0xff]  }
 0x5f0   : > { %7806 = vmatprep.subr.bf16.mxu0 %v11139_v4  ;;  %7847 = vmatprep.subr.bf16.mxu1 %v11142_v39 }
 0x5f3   : > { %7807 = vmatpush1.bf16.msra.mxu0 %v11137_v1  ;;  %7848 = vmatpush1.bf16.msra.mxu1 %v11140_v7 }
 0x5f4   : > { %7808 = vmatprep.subr.bf16.mxu0 %v11145_v56  ;;  %7849 = vmatprep.subr.bf16.mxu1 %v11148_v13 }
 0x5f5   : > { %v6537_v4 = vpop.permute.xlu1 %6536 }
 0x5f7   : > { %7809 = vmatpush1.bf16.msra.mxu0 %v11143_v10  ;;  %7850 = vmatpush1.bf16.msra.mxu1 %v11146_v16 }
 0x5f8   : > { %7810 = vmatprep.subr.bf16.mxu0 %v11151_v48  ;;  %7851 = vmatprep.subr.bf16.mxu1 %v11154_v54  ;;  %v6636_v48 = vpop.permute.xlu0 %6635 }
 0x5fb   : > { %7811 = vmatpush1.bf16.msra.mxu0 %v11149_v40  ;;  %7852 = vmatpush1.bf16.msra.mxu1 %v11152_v63 }
 0x5fc   : > { %7812 = vmatprep.subr.bf16.mxu0 %v11157_v15  ;;  %7853 = vmatprep.subr.bf16.mxu1 %v11160_v50 }
 0x5ff   : > { %7813 = vmatpush1.bf16.msra.mxu0 %v11155_v5  ;;  %7854 = vmatpush1.bf16.msra.mxu1 %v11158_v55 }
 0x600   : > { %7814 = vmatprep.subr.bf16.mxu0 %v11163_v14  ;;  %7855 = vmatprep.subr.bf16.mxu1 %v11166_v62 }
 0x603   : > { %7815 = vmatpush1.bf16.msra.mxu0 %v11161_v0  ;;  %7856 = vmatpush1.bf16.msra.mxu1 %v11164_v23 }
 0x604   : > { %7816 = vmatprep.subr.bf16.mxu0 %v11169_v2  ;;  %7857 = vmatprep.subr.bf16.mxu1 %v11172_v19 }
 0x607   : > { %7817 = vmatpush1.bf16.msra.mxu0 %v11167_v21  ;;  %7858 = vmatpush1.bf16.msra.mxu1 %v11170_v41 }
 0x608   : > { %7818 = vmatprep.subr.bf16.mxu0 %v11175_v37  ;;  %7859 = vmatprep.subr.bf16.mxu1 %v11178_v38 }
 0x60b   : > { %7819 = vmatpush1.bf16.msra.mxu0 %v11173_v9  ;;  %7860 = vmatpush1.bf16.msra.mxu1 %v11176_v18  ;;  %v6770_v18 = vpop.permute.xlu1 %6769 }
 0x60c   : > { %7820 = vmatprep.subr.bf16.mxu0 %v11181_v12  ;;  %7861 = vmatprep.subr.bf16.mxu1 %v11184_v22 }
 0x60f   : > { %7821 = vmatpush2.bf16.msra.mxu0 %v11179_v20  ;;  %7862 = vmatpush2.bf16.msra.mxu1 %v11182_v43 }
 0x610   : > { %7822 = vmatprep.subr.bf16.mxu0 %v11187_v36  ;;  %7863 = vmatprep.subr.bf16.mxu1 %v11190_v26 }
 0x613   : > { %7823 = vmatpush2.bf16.msra.mxu0 %v11185_v47  ;;  %7864 = vmatpush2.bf16.msra.mxu1 %v11188_v27 }
 0x614   : > { %7824 = vmatprep.subr.bf16.mxu0 %v11193_v28  ;;  %7865 = vmatprep.subr.bf16.mxu1 %v11196_v45 }
 0x617   : > { %7825 = vmatpush2.bf16.msra.mxu0 %v11191_v46  ;;  %7866 = vmatpush2.bf16.msra.mxu1 %v11194_v24 }
 0x618   : > { %7826 = vmatprep.subr.bf16.mxu0 %v11199_v49  ;;  %7867 = vmatprep.subr.bf16.mxu1 %v11202_v25  ;;  %v11227_v49 = vld [vmem:[%s11574_s18 + $0x120] ss:$20 sps:$4 sm:$0xff]  }
 0x619   : > { %v11230_v25 = vld [vmem:[%s11574_s18 + $0x3a0] ss:$20 sps:$4 sm:$0xff]  }
 0x61b   : > { %7827 = vmatpush2.bf16.msra.mxu0 %v11197_v58  ;;  %7868 = vmatpush2.bf16.msra.mxu1 %v11200_v42 }
 0x61c   : > { %7828 = vmatprep.subr.bf16.mxu0 %v11205_v8  ;;  %7869 = vmatprep.subr.bf16.mxu1 %v11208_v11  ;;  %v11235_v8 = vld [vmem:[%s11574_s18 + $0xfc] ss:$20 sps:$4 sm:$0xff]  }
 0x61d   : > { %v11238_v11 = vld [vmem:[%s11574_s18 + $0x37c] ss:$20 sps:$4 sm:$0xff]  }
 0x61f   : > { %7829 = vmatpush2.bf16.msra.mxu0 %v11203_v29  ;;  %7870 = vmatpush2.bf16.msra.mxu1 %v11206_v32  ;;  %v11233_v29 = vld [vmem:[%s11574_s18 + $0xf8] ss:$20 sps:$4 sm:$0xff]  }
 0x620   : > { %7830 = vmatprep.subr.bf16.mxu0 %v11211_v51  ;;  %7871 = vmatprep.subr.bf16.mxu1 %v11214_v31  ;;  %v11236_v32 = vld [vmem:[%s11574_s18 + $0x378] ss:$20 sps:$4 sm:$0xff]   ;;  %v11241_v51 = vld [vmem:[%s11574_s18 + $0xd4] ss:$20 sps:$4 sm:$0xff]  }
 0x621   : > { %v11244_v31 = vld [vmem:[%s11574_s18 + $0x354] ss:$20 sps:$4 sm:$0xff]  }
 0x623   : > { %7831 = vmatpush2.bf16.msra.mxu0 %v11209_v35  ;;  %7872 = vmatpush2.bf16.msra.mxu1 %v11212_v61  ;;  %v11239_v35 = vld [vmem:[%s11574_s18 + $0xd0] ss:$20 sps:$4 sm:$0xff]  }
 0x624   : > { %7832 = vmatprep.subr.bf16.mxu0 %v11217_v52  ;;  %7873 = vmatprep.subr.bf16.mxu1 %v11220_v53  ;;  %v11242_v61 = vld [vmem:[%s11574_s18 + $0x350] ss:$20 sps:$4 sm:$0xff]   ;;  %v11247_v52 = vld [vmem:[%s11574_s18 + $0xac] ss:$20 sps:$4 sm:$0xff]  }
 0x625   : > { %v11250_v53 = vld [vmem:[%s11574_s18 + $0x32c] ss:$20 sps:$4 sm:$0xff]  }
 0x627   : > { %7833 = vmatpush2.bf16.msra.mxu0 %v11215_v34  ;;  %7874 = vmatpush2.bf16.msra.mxu1 %v11218_v33  ;;  %v11245_v34 = vld [vmem:[%s11574_s18 + $0xa8] ss:$20 sps:$4 sm:$0xff]  }
 0x628   : > { %7834 = vmatprep.subr.bf16.mxu0 %v11223_v60  ;;  %7875 = vmatprep.subr.bf16.mxu1 %v11226_v57  ;;  %v11248_v33 = vld [vmem:[%s11574_s18 + $0x328] ss:$20 sps:$4 sm:$0xff]   ;;  %v11253_v60 = vld [vmem:[%s11574_s18 + $0x84] ss:$20 sps:$4 sm:$0xff]  }
 0x629   : > { %v11256_v57 = vld [vmem:[%s11574_s18 + $0x304] ss:$20 sps:$4 sm:$0xff]  }
 0x62b   : > { %7835 = vmatpush2.bf16.msra.mxu0 %v11221_v44  ;;  %7876 = vmatpush2.bf16.msra.mxu1 %v11224_v30  ;;  %v11251_v44 = vld [vmem:[%s11574_s18 + $0x80] ss:$20 sps:$4 sm:$0xff]  }
 0x62c   : > { %7886 = vmatprep.subr.bf16.mxu0 %v11229_v3  ;;  %7927 = vmatprep.subr.bf16.mxu1 %v11232_v17  ;;  %v11254_v30 = vld [vmem:[%s11574_s18 + $0x300] ss:$20 sps:$4 sm:$0xff]   ;;  %v11259_v3 = vld [vmem:[%s11574_s18 + $0x5c] ss:$20 sps:$4 sm:$0xff]  }
 0x62d   : > { %v11262_v17 = vld [vmem:[%s11574_s18 + $0x2dc] ss:$20 sps:$4 sm:$0xff]  }
 0x6a3   : > { %v6618_v6 = vpop.f32.mrf.mxu1 }
 0x6a4   : > { %v6619_v1 = vadd.f32 %v6618_v6, %v6537_v4  ;;  %v11257_v6 = vld [vmem:[%s11574_s18 + $0x58] ss:$20 sps:$4 sm:$0xff]  }
 0x6a5   : > { %v6620_v39 = vpop.f32.mrf.mxu1 }
 0x6a6   : > { %v6577_v7 = vpop.f32.mrf.mxu0  ;;  %v6621_v10 = vadd.f32 %v6620_v39, %v6537_v4  ;;  %v6640_v63 = vmul.f32 %v6636_v48, %v6619_v1  ;;  %vm6627_vm15 = vcmp.ge.f32.partialorder %v6619_v1, 0.0  ;;  %v11265_v39 = vld [vmem:[%s11574_s18 + $0x34] ss:$20 sps:$4 sm:$0xff]  }
 0x6a7   : > { %v6578_v56 = vadd.f32 %v6577_v7, %v6537_v4  ;;  %v6622_v13 = vpop.f32.mrf.mxu1  ;;  %v11263_v7 = vld [vmem:[%s11574_s18 + $0x30] ss:$20 sps:$4 sm:$0xff]  }
 0x6a8   : > { %v6579_v16 = vpop.f32.mrf.mxu0  ;;  %v6641_v5 = vmul.f32 %v6636_v48, %v6621_v10  ;;  %vm6628_vm13 = vcmp.ge.f32.partialorder %v6621_v10, 0.0  ;;  %v6644_v23 = vsel %vm6627_vm15, %v6619_v1, %v6640_v63  ;;  %v11268_v1 = vld [vmem:[%s11574_s18 + $0x2b4] ss:$20 sps:$4 sm:$0xff]   ;;  %v11271_v13 = vld [vmem:[%s11574_s18 + $0xc] ss:$20 sps:$4 sm:$0xff]   ;;  %vm11472_vm15 = vmmov 0  }
 0x6a9   : > { %v6580_v54 = vadd.f32 %v6579_v16, %v6537_v4  ;;  %v6623_v40 = vpop.f32.mrf.mxu1  ;;  %v6638_v15 = vmul.f32 %v6636_v48, %v6578_v56  ;;  %vm6625_vm3 = vcmp.ge.f32.partialorder %v6578_v56, 0.0  ;;  %v11260_v4 = vld [vmem:[%s11574_s18 + $0x2d8] ss:$20 sps:$4 sm:$0xff]   ;;  %v11269_v16 = vld [vmem:[%s11574_s18 + $0x8] ss:$20 sps:$4 sm:$0xff]  }
 0x6aa   : > { %v6581_v50 = vpop.f32.mrf.mxu0  ;;  %v6645_v38 = vsel %vm6628_vm13, %v6621_v10, %v6641_v5  ;;  %v11274_v10 = vld [vmem:[%s11574_s18 + $0x28c] ss:$20 sps:$4 sm:$0xff]   ;;  %v11280_v40 = vld [vmem:[%s11574_s18 + $0x4e4] ss:$20 sps:$4 sm:$0xff]   ;;  %v11286_v5 = vld [vmem:[%s11574_s18 + $0x4bc] ss:$20 sps:$4 sm:$0xff]  }
 0x6ab   : > { %v6639_v55 = vmul.f32 %v6636_v48, %v6580_v54  ;;  %vm6626_vm10 = vcmp.ge.f32.partialorder %v6580_v54, 0.0  ;;  %v6642_v62 = vsel %vm6625_vm3, %v6578_v56, %v6638_v15  ;;  %v11266_v56 = vld [vmem:[%s11574_s18 + $0x2b0] ss:$20 sps:$4 sm:$0xff]   ;;  %v11272_v48 = vld [vmem:[%s11574_s18 + $0x288] ss:$20 sps:$4 sm:$0xff]  }
 0x6ac   : > { %v6582_v14 = vpop.f32.mrf.mxu0  ;;  %v11275_v63 = vld [vmem:[%s11574_s18 + $0x260] ss:$20 sps:$4 sm:$0xff]   ;;  %v11283_v50 = vld [vmem:[%s11574_s18 + $0x23c] ss:$20 sps:$4 sm:$0xff]  }
 0x6ad   : > { %v6643_v41 = vsel %vm6626_vm10, %v6580_v54, %v6639_v55  ;;  %v11277_v54 = vld [vmem:[%s11574_s18 + $0x264] ss:$20 sps:$4 sm:$0xff]   ;;  %v11278_v15 = vld [vmem:[%s11574_s18 + $0x4e0] ss:$20 sps:$4 sm:$0xff]  }
 0x6ae   : > { %v6715_v0 = vpop.f32.mrf.mxu0  ;;  %v6756_v2 = vpop.f32.mrf.mxu1  ;;  %v11281_v55 = vld [vmem:[%s11574_s18 + $0x238] ss:$20 sps:$4 sm:$0xff]  }
 0x6af   : > { %v6763_v19 = vadd.f32 %v6715_v0, %v6642_v62  ;;  %v6765_v21 = vadd.f32 %v6756_v2, %v6644_v23  ;;  %v11284_v14 = vld [vmem:[%s11574_s18 + $0x4b8] ss:$20 sps:$4 sm:$0xff]   ;;  %v11289_v62 = vld [vmem:[%s11574_s18 + $0x214] ss:$20 sps:$4 sm:$0xff]   ;;  %v11287_v23 = vld [vmem:[%s11574_s18 + $0x210] ss:$20 sps:$4 sm:$0xff]  }
 0x6b0   : > { %v6717_v37 = vpop.f32.mrf.mxu0  ;;  %v6758_v9 = vpop.f32.mrf.mxu1  ;;  %v11292_v0 = vld [vmem:[%s11574_s18 + $0x494] ss:$20 sps:$4 sm:$0xff]   ;;  %v11290_v2 = vld [vmem:[%s11574_s18 + $0x490] ss:$20 sps:$4 sm:$0xff]  }
 0x6b1   : > { %v6764_v12 = vadd.f32 %v6717_v37, %v6643_v41  ;;  %v6766_v22 = vadd.f32 %v6758_v9, %v6645_v38  ;;  %v6772_v20 = vadd.f32 %v6770_v18, %v6763_v19  ;;  %v6774_v43 = vadd.f32 %v6770_v18, %v6765_v21  ;;  %v11295_v19 = vld [vmem:[%s11574_s18 + $0x1ec] ss:$20 sps:$4 sm:$0xff]   ;;  %v11293_v41 = vld [vmem:[%s11574_s18 + $0x1e8] ss:$20 sps:$4 sm:$0xff]   ;;  %v11301_v38 = vld [vmem:[%s11574_s18 + $0x1c4] ss:$20 sps:$4 sm:$0xff]  }
 0x6b2   : > { %v6719_v36 = vpop.f32.mrf.mxu0  ;;  %v6760_v26 = vpop.f32.mrf.mxu1  ;;  %v11298_v21 = vld [vmem:[%s11574_s18 + $0x46c] ss:$20 sps:$4 sm:$0xff]   ;;  %v11296_v37 = vld [vmem:[%s11574_s18 + $0x468] ss:$20 sps:$4 sm:$0xff]   ;;  %v11304_v9 = vld [vmem:[%s11574_s18 + $0x444] ss:$20 sps:$4 sm:$0xff]  }
 0x6b3   : > { %v6773_v47 = vadd.f32 %v6770_v18, %v6764_v12  ;;  %v6775_v27 = vadd.f32 %v6770_v18, %v6766_v22  ;;  %v13023_v58 = vpack.c.bf16 %v6772_v20, %v6772_v20  ;;  %v13025_v42 = vpack.c.bf16 %v6774_v43, %v6774_v43  ;;  %v11299_v18 = vld [vmem:[%s11574_s18 + $0x1c0] ss:$20 sps:$4 sm:$0xff]   ;;  %v11307_v22 = vld [vmem:[%s11574_s18 + $0x19c] ss:$20 sps:$4 sm:$0xff]   ;;  %v11305_v43 = vld [vmem:[%s11574_s18 + $0x198] ss:$20 sps:$4 sm:$0xff]  }
 0x6b4   : > { %v6720_v28 = vpop.f32.mrf.mxu0  ;;  %v6761_v45 = vpop.f32.mrf.mxu1  ;;  %v11302_v12 = vld [vmem:[%s11574_s18 + $0x440] ss:$20 sps:$4 sm:$0xff]   ;;  %v11310_v20 = vld [vmem:[%s11574_s18 + $0x41c] ss:$20 sps:$4 sm:$0xff]   ;;  %v11308_v36 = vld [vmem:[%s11574_s18 + $0x418] ss:$20 sps:$4 sm:$0xff]  }
 0x6b5   : > { %v13017_v46 = vpack.c.bf16 %v6773_v47, %v6773_v47  ;;  %v13019_v24 = vpack.c.bf16 %v6775_v27, %v6775_v27  ;;  %v11313_v26 = vld [vmem:[%s11574_s18 + $0x174] ss:$20 sps:$4 sm:$0xff]   ;;  %v11311_v27 = vld [vmem:[%s11574_s18 + $0x170] ss:$20 sps:$4 sm:$0xff]   ;;  %v11319_v45 = vld [vmem:[%s11574_s18 + $0x14c] ss:$20 sps:$4 sm:$0xff]  }
 0x6b6   : > { %v11316_v47 = vld [vmem:[%s11574_s18 + $0x3f4] ss:$20 sps:$4 sm:$0xff]   ;;  %v11314_v28 = vld [vmem:[%s11574_s18 + $0x3f0] ss:$20 sps:$4 sm:$0xff]  }
 0x6b7   : > { %7836 = vmatprep.mubr.bf16.mxu0 %v13017_v46  ;;  %7877 = vmatprep.mubr.bf16.mxu1 %v13019_v24 }
 0x6b8   : > { %7837 = vmatmul.mubr.bf16.vlgmr.msra.gmra.mxu0 %v13023_v58  ;;  %7878 = vmatmul.mubr.bf16.vlgmr.msra.gmra.mxu1 %v13025_v42 }
 0x6b9   : > { %7887 = vmatpush1.bf16.msra.mxu0 %v11227_v49  ;;  %7928 = vmatpush1.bf16.msra.mxu1 %v11230_v25  ;;  %v11322_v49 = vld [vmem:[%s11574_s18 + $0x3cc] ss:$20 sps:$4 sm:$0xff]   ;;  %v11317_v25 = vld [vmem:[%s11574_s18 + $0x148] ss:$20 sps:$4 sm:$0xff]  }
 0x6ba   : > { %7918 = vmatprep.mubr.bf16.mxu0 %v13017_v46  ;;  %7959 = vmatprep.mubr.bf16.mxu1 %v13019_v24 }
 0x6bb   : > { %7888 = vmatprep.subr.bf16.mxu0 %v11235_v8  ;;  %7929 = vmatprep.subr.bf16.mxu1 %v11238_v11  ;;  %v11320_v8 = vld [vmem:[%s11574_s18 + $0x3c8] ss:$20 sps:$4 sm:$0xff]  }
 0x6bc   : > { %v11323_v11 = vld [vmem:[%s11574_s18 + $0x268] ss:$20 sps:$4 sm:$0xff]  }
 0x6bd   : > { %7889 = vmatpush1.bf16.msra.mxu0 %v11233_v29  ;;  %7930 = vmatpush1.bf16.msra.mxu1 %v11236_v32  ;;  %v11324_v29 = vld [vmem:[%s11574_s18 + $0x4e8] ss:$20 sps:$4 sm:$0xff]  }
 0x6be   : > { %7890 = vmatprep.subr.bf16.mxu0 %v11241_v51  ;;  %7931 = vmatprep.subr.bf16.mxu1 %v11244_v31  ;;  %v11325_v32 = vld [vmem:[%s11574_s18 + $0x128] ss:$20 sps:$4 sm:$0xff]   ;;  %v11327_v31 = vld [vmem:[%s11574_s18 + $0x240] ss:$20 sps:$4 sm:$0xff]  }
 0x6bf   : > { %v11326_v51 = vld [vmem:[%s11574_s18 + $0x3a8] ss:$20 sps:$4 sm:$0xff]  }
 0x6c1   : > { %7891 = vmatpush1.bf16.msra.mxu0 %v11239_v35  ;;  %7932 = vmatpush1.bf16.msra.mxu1 %v11242_v61  ;;  %v11328_v35 = vld [vmem:[%s11574_s18 + $0x4c0] ss:$20 sps:$4 sm:$0xff]  }
 0x6c2   : > { %7892 = vmatprep.subr.bf16.mxu0 %v11247_v52  ;;  %7933 = vmatprep.subr.bf16.mxu1 %v11250_v53  ;;  %v11329_v61 = vld [vmem:[%s11574_s18 + $0x100] ss:$20 sps:$4 sm:$0xff]   ;;  %v11331_v53 = vld [vmem:[%s11574_s18 + $0x218] ss:$20 sps:$4 sm:$0xff]  }
 0x6c3   : > { %v11330_v52 = vld [vmem:[%s11574_s18 + $0x380] ss:$20 sps:$4 sm:$0xff]  }
 0x6c5   : > { %7893 = vmatpush1.bf16.msra.mxu0 %v11245_v34  ;;  %7934 = vmatpush1.bf16.msra.mxu1 %v11248_v33  ;;  %v11332_v34 = vld [vmem:[%s11574_s18 + $0x498] ss:$20 sps:$4 sm:$0xff]  }
 0x6c6   : > { %7894 = vmatprep.subr.bf16.mxu0 %v11253_v60  ;;  %7935 = vmatprep.subr.bf16.mxu1 %v11256_v57  ;;  %v11333_v33 = vld [vmem:[%s11574_s18 + $0xd8] ss:$20 sps:$4 sm:$0xff]   ;;  %v11335_v60 = vld [vmem:[%s11574_s18 + $0x1f0] ss:$20 sps:$4 sm:$0xff]  }
 0x6c7   : > { %v11336_v57 = vld [vmem:[%s11574_s18 + $0x470] ss:$20 sps:$4 sm:$0xff]  }
 0x6c9   : > { %7895 = vmatpush1.bf16.msra.mxu0 %v11251_v44  ;;  %7936 = vmatpush1.bf16.msra.mxu1 %v11254_v30  ;;  %v11338_v44 = vld [vmem:[%s11574_s18 + $0x330] ss:$20 sps:$4 sm:$0xff]   ;;  %v11339_v30 = vld [vmem:[%s11574_s18 + $0x1c8] ss:$20 sps:$4 sm:$0xff]  }
 0x6ca   : > { %7896 = vmatprep.subr.bf16.mxu0 %v11259_v3  ;;  %7937 = vmatprep.subr.bf16.mxu1 %v11262_v17  ;;  %v11340_v3 = vld [vmem:[%s11574_s18 + $0x448] ss:$20 sps:$4 sm:$0xff]  }
 0x6cb   : > { %v11341_v17 = vld [vmem:[%s11574_s18 + $0x88] ss:$20 sps:$4 sm:$0xff]  }
 0x6cd   : > { %7897 = vmatpush1.bf16.msra.mxu0 %v11257_v6  ;;  %7938 = vmatpush1.bf16.msra.mxu1 %v11260_v4  ;;  %v11342_v6 = vld [vmem:[%s11574_s18 + $0x308] ss:$20 sps:$4 sm:$0xff]   ;;  %v11343_v4 = vld [vmem:[%s11574_s18 + $0x1a0] ss:$20 sps:$4 sm:$0xff]  }
 0x6ce   : > { %7898 = vmatprep.subr.bf16.mxu0 %v11265_v39  ;;  %7939 = vmatprep.subr.bf16.mxu1 %v11268_v1  ;;  %v11344_v39 = vld [vmem:[%s11574_s18 + $0x420] ss:$20 sps:$4 sm:$0xff]  }
 0x6cf   : > { %v11345_v1 = vld [vmem:[%s11574_s18 + $0x60] ss:$20 sps:$4 sm:$0xff]  }
 0x6d1   : > { %7899 = vmatpush1.bf16.msra.mxu0 %v11263_v7  ;;  %7940 = vmatpush1.bf16.msra.mxu1 %v11266_v56  ;;  %v11346_v7 = vld [vmem:[%s11574_s18 + $0x2e0] ss:$20 sps:$4 sm:$0xff]   ;;  %v11347_v56 = vld [vmem:[%s11574_s18 + $0x178] ss:$20 sps:$4 sm:$0xff]  }
 0x6d2   : > { %7900 = vmatprep.subr.bf16.mxu0 %v11271_v13  ;;  %7941 = vmatprep.subr.bf16.mxu1 %v11274_v10  ;;  %v11348_v13 = vld [vmem:[%s11574_s18 + $0x3f8] ss:$20 sps:$4 sm:$0xff]  }
 0x6d3   : > { %v11349_v10 = vld [vmem:[%s11574_s18 + $0x38] ss:$20 sps:$4 sm:$0xff]  }
 0x6d5   : > { %7901 = vmatpush1.bf16.msra.mxu0 %v11269_v16  ;;  %7942 = vmatpush1.bf16.msra.mxu1 %v11272_v48  ;;  %v11350_v16 = vld [vmem:[%s11574_s18 + $0x2b8] ss:$20 sps:$4 sm:$0xff]   ;;  %v11351_v48 = vld [vmem:[%s11574_s18 + $0x150] ss:$20 sps:$4 sm:$0xff]  }
 0x6d6   : > { %7902 = vmatprep.subr.bf16.mxu0 %v11277_v54  ;;  %7943 = vmatprep.subr.bf16.mxu1 %v11280_v40  ;;  %v11352_v54 = vld [vmem:[%s11574_s18 + $0x3d0] ss:$20 sps:$4 sm:$0xff]  }
 0x6d7   : > { %v11353_v40 = vld [vmem:[%s11574_s18 + $0x10] ss:$20 sps:$4 sm:$0xff]  }
 0x6d9   : > { %7903 = vmatpush2.bf16.msra.mxu0 %v11275_v63  ;;  %7944 = vmatpush2.bf16.msra.mxu1 %v11278_v15  ;;  %v11354_v63 = vld [vmem:[%s11574_s18 + $0x290] ss:$20 sps:$4 sm:$0xff]  }
 0x6da   : > { %7904 = vmatprep.subr.bf16.mxu0 %v11283_v50  ;;  %7945 = vmatprep.subr.bf16.mxu1 %v11286_v5 }
 0x6dd   : > { %7905 = vmatpush2.bf16.msra.mxu0 %v11281_v55  ;;  %7946 = vmatpush2.bf16.msra.mxu1 %v11284_v14 }
 0x6de   : > { %7906 = vmatprep.subr.bf16.mxu0 %v11289_v62  ;;  %7947 = vmatprep.subr.bf16.mxu1 %v11292_v0 }
 0x6e1   : > { %7907 = vmatpush2.bf16.msra.mxu0 %v11287_v23  ;;  %7948 = vmatpush2.bf16.msra.mxu1 %v11290_v2 }
 0x6e2   : > { %7908 = vmatprep.subr.bf16.mxu0 %v11295_v19  ;;  %7949 = vmatprep.subr.bf16.mxu1 %v11298_v21 }
 0x6e5   : > { %7909 = vmatpush2.bf16.msra.mxu0 %v11293_v41  ;;  %7950 = vmatpush2.bf16.msra.mxu1 %v11296_v37 }
 0x6e6   : > { %7910 = vmatprep.subr.bf16.mxu0 %v11301_v38  ;;  %7951 = vmatprep.subr.bf16.mxu1 %v11304_v9 }
 0x6e9   : > { %7911 = vmatpush2.bf16.msra.mxu0 %v11299_v18  ;;  %7952 = vmatpush2.bf16.msra.mxu1 %v11302_v12 }
 0x6ea   : > { %7912 = vmatprep.subr.bf16.mxu0 %v11307_v22  ;;  %7953 = vmatprep.subr.bf16.mxu1 %v11310_v20 }
 0x6ed   : > { %7913 = vmatpush2.bf16.msra.mxu0 %v11305_v43  ;;  %7954 = vmatpush2.bf16.msra.mxu1 %v11308_v36 }
 0x6ee   : > { %7914 = vmatprep.subr.bf16.mxu0 %v11313_v26  ;;  %7955 = vmatprep.subr.bf16.mxu1 %v11316_v47 }
 0x6f1   : > { %7915 = vmatpush2.bf16.msra.mxu0 %v11311_v27  ;;  %7956 = vmatpush2.bf16.msra.mxu1 %v11314_v28 }
 0x6f2   : > { %7916 = vmatprep.subr.bf16.mxu0 %v11319_v45  ;;  %7957 = vmatprep.subr.bf16.mxu1 %v11322_v49 }
 0x6f5   : > { %7917 = vmatpush2.bf16.msra.mxu0 %v11317_v25  ;;  %7958 = vmatpush2.bf16.msra.mxu1 %v11320_v8 }
 0x6f6   : > { %10115 = vmatprep.subr.bf16.mxu0 %v11323_v11  ;;  %10137 = vmatprep.subr.bf16.mxu1 %v11324_v29 }
 0x6f8   : > { %7919 = vmatmul.mubr.bf16.vlgmr.msra.gmra.mxu0 %v13023_v58  ;;  %7960 = vmatmul.mubr.bf16.vlgmr.msra.gmra.mxu1 %v13025_v42 }
 0x6f9   : > { %10116 = vmatpush3.bf16.msra.mxu0 %v11325_v32  ;;  %8000 = vmatprep.mubr.bf16.mxu0 %v13017_v46  ;;  %v11334_v46 = vld [vmem:[%s11574_s18 + $0x358] ss:$20 sps:$4 sm:$0xff]  }
 0x6fa   : > { %10138 = vmatpush3.bf16.msra.mxu1 %v11326_v51  ;;  %8040 = vmatprep.mubr.bf16.mxu1 %v13019_v24  ;;  %v11337_v24 = vld [vmem:[%s11574_s18 + $0xb0] ss:$20 sps:$4 sm:$0xff]  }
 0x6fb   : > { %10117 = vmatprep.subr.bf16.mxu0 %v11327_v31  ;;  %10139 = vmatprep.subr.bf16.mxu1 %v11328_v35 }
 0x6fd   : > { %10118 = vmatpush3.bf16.msra.mxu0 %v11329_v61 }
 0x6fe   : > { %10140 = vmatpush3.bf16.msra.mxu1 %v11330_v52  ;;  %10119 = vmatprep.subr.bf16.mxu0 %v11331_v53 }
 0x6ff   : > { %10141 = vmatprep.subr.bf16.mxu1 %v11332_v34 }
 0x701   : > { %10120 = vmatpush3.bf16.msra.mxu0 %v11333_v33 }
 0x702   : > { %10142 = vmatpush3.bf16.msra.mxu1 %v11334_v46  ;;  %10121 = vmatprep.subr.bf16.mxu0 %v11335_v60 }
 0x703   : > { %10143 = vmatprep.subr.bf16.mxu1 %v11336_v57 }
 0x705   : > { %10122 = vmatpush3.bf16.msra.mxu0 %v11337_v24 }
 0x706   : > { %10144 = vmatpush3.bf16.msra.mxu1 %v11338_v44  ;;  %10123 = vmatprep.subr.bf16.mxu0 %v11339_v30 }
 0x707   : > { %10145 = vmatprep.subr.bf16.mxu1 %v11340_v3 }
 0x709   : > { %10124 = vmatpush3.bf16.msra.mxu0 %v11341_v17 }
 0x70a   : > { %10146 = vmatpush3.bf16.msra.mxu1 %v11342_v6  ;;  %10125 = vmatprep.subr.bf16.mxu0 %v11343_v4 }
 0x70b   : > { %10147 = vmatprep.subr.bf16.mxu1 %v11344_v39  ;;  %v9962_v39 = vld [vmem:[#allocation4] ss:$0 sm:$0xff] }
 0x70d   : > { %10126 = vmatpush3.bf16.msra.mxu0 %v11345_v1  ;;  %v8078_v1 = vld [vmem:[%s11539_s30] sm:$0xff] }
 0x70e   : > { %10148 = vmatpush3.bf16.msra.mxu1 %v11346_v7  ;;  %10127 = vmatprep.subr.bf16.mxu0 %v11347_v56  ;;  %v8079_v7 = vld [vmem:[%s11544_s6] sm:$0xff] }
 0x70f   : > { %10149 = vmatprep.subr.bf16.mxu1 %v11348_v13 }
 0x711   : > { %10128 = vmatpush3.bf16.msra.mxu0 %v11349_v10 }
 0x712   : > { %10150 = vmatpush3.bf16.msra.mxu1 %v11350_v16  ;;  %10129 = vmatprep.subr.bf16.mxu0 %v11351_v48 }
 0x713   : > { %10151 = vmatprep.subr.bf16.mxu1 %v11352_v54 }
 0x715   : > { %10130 = vmatpush3.bf16.msra.mxu0 %v11353_v40 }
 0x716   : > { %10152 = vmatpush3.bf16.msra.mxu1 %v11354_v63 }
 0x718   : > { %8001 = vmatmul.mubr.bf16.vlgmr.msra.gmra.mxu0 %v13023_v58 }
 0x719   : > { %8041 = vmatmul.mubr.bf16.vlgmr.msra.gmra.mxu1 %v13025_v42  ;;  %8214 = vmatprep.mubr.bf16.mxu0 %v11470_v59 }
 0x71a   : > { %8291 = vmatprep.mubr.bf16.mxu1 %v11470_v59 }
 0x778   : > { %v7838_v15 = vpop.f32.mrf.mxu0  ;;  %v7879_v50 = vpop.f32.mrf.mxu1 }
 0x779   : > { %v7880_v5 = vadd.f32 %v7879_v50, %v7838_v15 }
 0x77a   : > { %v7840_v55 = vpop.f32.mrf.mxu0  ;;  %v7881_v14 = vpop.f32.mrf.mxu1 }
 0x77b   : > { %v7882_v62 = vadd.f32 %v7881_v14, %v7840_v55  ;;  %v8048_v61 = vpack.c.bf16 %v7880_v5, %v7880_v5 }
 0x77c   : > { %v7842_v0 = vpop.f32.mrf.mxu0  ;;  %v7883_v23 = vpop.f32.mrf.mxu1 }
 0x77d   : > { %v8049_v46 = vpack.c.bf16 %v7882_v62, %v7882_v62 }
 0x77e   : > { %v7843_v2 = vpop.f32.mrf.mxu0  ;;  %v7884_v19 = vpop.f32.mrf.mxu1 }
 0x7b8   : > { %v7920_v21 = vpop.f32.mrf.mxu0  ;;  %v7961_v41 = vpop.f32.mrf.mxu1 }
 0x7b9   : > { %v7962_v38 = vadd.f32 %v7961_v41, %v7920_v21 }
 0x7ba   : > { %v7922_v37 = vpop.f32.mrf.mxu0  ;;  %v7963_v58 = vpop.f32.mrf.mxu1 }
 0x7bb   : > { %v7964_v42 = vadd.f32 %v7963_v58, %v7922_v37  ;;  %v8050_v20 = vpack.c.bf16 %v7962_v38, %v7962_v38 }
 0x7bc   : > { %v7924_v9 = vpop.f32.mrf.mxu0  ;;  %v7965_v18 = vpop.f32.mrf.mxu1 }
 0x7bd   : > { %v8051_v12 = vpack.c.bf16 %v7964_v42, %v7964_v42  ;;  %v8056_v36 = vrot.slane %v8050_v20, 6 }
 0x7be   : > { %v7925_v59 = vpop.f32.mrf.mxu0  ;;  %v7966_v22 = vpop.f32.mrf.mxu1 }
 0x7bf   : > { %v8057_v43 = vrot.slane %v8051_v12, 6 }
 0x7c1   : > { %8061 = vrot.lane.b32.xlu0 %v8057_v43, %s11469_s28 }
 0x7c5   : > { %8059 = vrot.lane.b32.xlu0 %v8056_v36, %s11469_s28 }
 0x7d8   : > { %v10131_v26 = vpop.f32.mrf.mxu0 }
 0x7d9   : > { %v10153_v47 = vpop.f32.mrf.mxu1 }
 0x7da   : > { %v10132_v27 = vpop.f32.mrf.mxu0 }
 0x7db   : > { %v10133_v28 = vadd.f32 %v10132_v27, %v10131_v26  ;;  %v10154_v45 = vpop.f32.mrf.mxu1 }
 0x7dc   : > { %v10155_v49 = vadd.f32 %v10154_v45, %v10153_v47  ;;  %v10134_v25 = vpop.f32.mrf.mxu0 }
 0x7dd   : > { %v10156_v8 = vpop.f32.mrf.mxu1 }
 0x7de   : > { %v8043_v11 = vadd.f32 %v10155_v49, %v10133_v28  ;;  %v10135_v29 = vpop.f32.mrf.mxu0 }
 0x7df   : > { %v10157_v32 = vpop.f32.mrf.mxu1 }
 0x7e0   : > { %v8052_v51 = vpack.c.bf16 %v8043_v11, %v8043_v11  ;;  %v11382_v32 = vld [vmem:[%s13371_s27 + $0x170] ss:$12 sps:$4 sm:$0xff]  }
 0x7e2   : > { %v8058_v31 = vrot.slane %v8052_v51, 6 }
 0x7e4   : > { %8063 = vrot.lane.b32.xlu1 %v8058_v31, %s11469_s28 }
 0x833   : > { %v8062_v35 = vpop.permute.xlu0 %8061 }
 0x837   : > { %v8060_v52 = vpop.permute.xlu0 %8059 }
 0x838   : > { %v8065_v53 = vsel %vm1285_vm11, %v8060_v52, %v8062_v35  ;;  %v11383_v52 = vld [vmem:[%s13371_s27 + $0xb0] ss:$12 sps:$4 sm:$0xff]  }
 0x839   : > { %v13138_v34 = vsel %vm1319_vm5, %v8048_v61, %v8065_v53  ;;  %v8076_v61 = vld [vmem:[%s13372_s1] sm:$0xf] }
 0x83a   : > { %8127 = vrot.lane.b32.xlu1 %v13138_v34, %s11468_s23  ;;  %v8084_v33 = vrot.slane %v13138_v34, 4  ;;  %v8238_v17 = vrot.slane %v13138_v34, 2 }
 0x83c   : > { %8135 = vrot.lane.b32.xlu0 %v8084_v33, %s11469_s28 }
 0x83e   : > { %8111 = vrot.lane.b32.xlu1 %v13138_v34, %s11466_s20 }
 0x840   : > { %8119 = vrot.lane.b32.xlu0 %v8084_v33, %s11467_s22 }
 0x842   : > { %8095 = vrot.lane.b32.xlu1 %v13138_v34, %s11464_s2 }
 0x844   : > { %8103 = vrot.lane.b32.xlu0 %v8084_v33, %s11465_s16 }
 0x856   : > { %v8064_v60 = vpop.permute.xlu1 %8063 }
 0x857   : > { %v8066_v57 = vsel %vm1285_vm11, %v8062_v35, %v8064_v60  ;;  %v8075_v24 = vsel %vm1319_vm5, %v8050_v20, %v8064_v60 }
 0x858   : > { %v13153_v44 = vsel %vm1319_vm5, %v8049_v46, %v8066_v57  ;;  %8131 = vrot.lane.b32.xlu0 %v8075_v24, %s11468_s23  ;;  %v8086_v30 = vrot.slane %v8075_v24, 4  ;;  %v8240_v6 = vrot.slane %v8075_v24, 2  ;;  %v11387_v46 = vld [vmem:[%s13371_s27 + $0x158] ss:$12 sps:$4 sm:$0xff]  }
 0x859   : > { %8129 = vrot.lane.b32.xlu1 %v13153_v44, %s11468_s23  ;;  %v8085_v3 = vrot.slane %v13153_v44, 4  ;;  %v8239_v4 = vrot.slane %v13153_v44, 2 }
 0x85c   : > { %8115 = vrot.lane.b32.xlu0 %v8075_v24, %s11466_s20 }
 0x85d   : > { %8113 = vrot.lane.b32.xlu1 %v13153_v44, %s11466_s20 }
 0x860   : > { %8099 = vrot.lane.b32.xlu0 %v8075_v24, %s11464_s2  ;;  %v8077_v24 = vld [vmem:[%s13373_s7] sm:$0xf] }
 0x861   : > { %8097 = vrot.lane.b32.xlu1 %v13153_v44, %s11464_s2 }
 0x864   : > { %8139 = vrot.lane.b32.xlu0 %v8086_v30, %s11469_s28 }
 0x865   : > { %8137 = vrot.lane.b32.xlu1 %v8085_v3, %s11469_s28 }
 0x868   : > { %8123 = vrot.lane.b32.xlu0 %v8086_v30, %s11467_s22 }
 0x869   : > { %8121 = vrot.lane.b32.xlu1 %v8085_v3, %s11467_s22 }
 0x86c   : > { %8107 = vrot.lane.b32.xlu0 %v8086_v30, %s11465_s16 }
 0x86d   : > { %8105 = vrot.lane.b32.xlu1 %v8085_v3, %s11465_s16 }
 0x870   : > { %8091 = vrot.lane.b32.xlu0 %v8086_v30, %s11463_s12  ;;  %v11388_v30 = vld [vmem:[%s13371_s27 + $0x98] ss:$12 sps:$4 sm:$0xff]  }
 0x871   : > { %8089 = vrot.lane.b32.xlu1 %v8085_v3, %s11463_s12  ;;  %v11360_v3 = vld [vmem:[%s13371_s27 + $0x94] ss:$12 sps:$4 sm:$0xff]  }
 0x874   : > { %8241 = vrot.lane.b32.xlu0 %v8238_v17, %s11465_s16  ;;  %v11392_v17 = vld [vmem:[%s13371_s27 + $0x140] ss:$12 sps:$4 sm:$0xff]  }
 0x875   : > { %8087 = vrot.lane.b32.xlu1 %v8084_v33, %s11463_s12  ;;  %v11357_v33 = vld [vmem:[%s13371_s27 + $0xac] ss:$12 sps:$4 sm:$0xff]  }
 0x878   : > { %8245 = vrot.lane.b32.xlu0 %v8240_v6, %s11465_s16  ;;  %v11358_v6 = vld [vmem:[%s13371_s27 + $0x90] ss:$12 sps:$4 sm:$0xff]  }
 0x879   : > { %8243 = vrot.lane.b32.xlu1 %v8239_v4, %s11465_s16  ;;  %v11393_v4 = vld [vmem:[%s13371_s27 + $0x80] ss:$12 sps:$4 sm:$0xff]  }
 0x87c   : > { %8231 = vperm.xlu0 %10294, %v9962_v39   ;;  %v11363_v39 = vld [vmem:[%s13371_s27 + $0x7c] ss:$12 sps:$4 sm:$0xff]  }
 0x87d   : > { %8175 = vperm.xlu1 %10295, %v8078_v1   ;;  %v11397_v1 = vld [vmem:[%s13371_s27 + $0x128] ss:$12 sps:$4 sm:$0xff]  }
 0x881   : > { %8304 = vperm.xlu1 %10295, %v8079_v7   ;;  %v11361_v7 = vld [vmem:[%s13371_s27 + $0x78] ss:$12 sps:$4 sm:$0xff]  }
 0x8ac   : > { %v8128_v13 = vpop.permute.xlu1 %8127 }
 0x8ae   : > { %v8136_v56 = vpop.permute.xlu0 %8135 }
 0x8b0   : > { %v8112_v16 = vpop.permute.xlu1 %8111 }
 0x8b2   : > { %v8120_v10 = vpop.permute.xlu0 %8119 }
 0x8b4   : > { %v8096_v54 = vpop.permute.xlu1 %8095 }
 0x8b6   : > { %v8104_v48 = vpop.permute.xlu0 %8103 }
 0x8ca   : > { %v8132_v40 = vpop.permute.xlu0 %8131 }
 0x8cb   : > { %v8130_v63 = vpop.permute.xlu1 %8129 }
 0x8cc   : > { %v8133_v0 = vsel %vm1256_vm8, %v8128_v13, %v8130_v63  ;;  %v8134_v23 = vsel %vm1256_vm8, %v8130_v63, %v8132_v40  ;;  %v11366_v13 = vld [vmem:[%s13371_s27 + $0x64] ss:$12 sps:$4 sm:$0xff]   ;;  %v11372_v40 = vld [vmem:[%s13371_s27 + $0x34] ss:$12 sps:$4 sm:$0xff]  }
 0x8cd   : > { %v11370_v63 = vld [vmem:[%s13371_s27 + $0x30] ss:$12 sps:$4 sm:$0xff]  }
 0x8ce   : > { %v8116_v15 = vpop.permute.xlu0 %8115 }
 0x8cf   : > { %v8114_v50 = vpop.permute.xlu1 %8113 }
 0x8d0   : > { %v8117_v38 = vsel %vm1196_vm4, %v8112_v16, %v8114_v50  ;;  %v8118_v42 = vsel %vm1196_vm4, %v8114_v50, %v8116_v15  ;;  %v11364_v16 = vld [vmem:[%s13371_s27 + $0x60] ss:$12 sps:$4 sm:$0xff]   ;;  %v11375_v15 = vld [vmem:[%s13371_s27 + $0x1c] ss:$12 sps:$4 sm:$0xff]   ;;  %v11373_v50 = vld [vmem:[%s13371_s27 + $0x18] ss:$12 sps:$4 sm:$0xff]  }
 0x8d2   : > { %v8100_v5 = vpop.permute.xlu0 %8099 }
 0x8d3   : > { %v8098_v55 = vpop.permute.xlu1 %8097 }
 0x8d4   : > { %v8101_v43 = vsel %vm1120_vm1, %v8096_v54, %v8098_v55  ;;  %v8102_v36 = vsel %vm1120_vm1, %v8098_v55, %v8100_v5  ;;  %v11367_v54 = vld [vmem:[%s13371_s27 + $0x48] ss:$12 sps:$4 sm:$0xff]   ;;  %v11378_v5 = vld [vmem:[%s13371_s27 + $0x4] ss:$12 sps:$4 sm:$0xff]   ;;  %v11376_v55 = vld [vmem:[%s13371_s27] ss:$12 sps:$4 sm:$0xff]  }
 0x8d6   : > { %v8140_v14 = vpop.permute.xlu0 %8139 }
 0x8d7   : > { %v8138_v62 = vpop.permute.xlu1 %8137 }
 0x8d8   : > { %v8141_v2 = vsel %vm1285_vm11, %v8136_v56, %v8138_v62  ;;  %v8142_v19 = vsel %vm1285_vm11, %v8138_v62, %v8140_v14  ;;  %v11398_v56 = vld [vmem:[%s13371_s27 + $0x68] ss:$12 sps:$4 sm:$0xff]   ;;  %v11381_v14 = vld [vmem:[%s13371_s27 + $0x16c] ss:$12 sps:$4 sm:$0xff]  }
 0x8d9   : > { %v8171_v21 = vsel %vm1353_vm9, %v8134_v23, %v8142_v19  ;;  %v8167_v41 = vsel %vm1353_vm9, %v8133_v0, %v8141_v2  ;;  %v11379_v62 = vld [vmem:[%s13371_s27 + $0x168] ss:$12 sps:$4 sm:$0xff]   ;;  %v11384_v23 = vld [vmem:[%s13371_s27 + $0x150] ss:$12 sps:$4 sm:$0xff]   ;;  %v11389_v19 = vld [vmem:[%s13371_s27 + $0x138] ss:$12 sps:$4 sm:$0xff]  }
 0x8da   : > { %v8124_v37 = vpop.permute.xlu0 %8123  ;;  %8190 = vmatprep.subr.bf16.mxu0 %v8171_v21  ;;  %v11386_v0 = vld [vmem:[%s13371_s27 + $0x154] ss:$12 sps:$4 sm:$0xff]   ;;  %v11391_v2 = vld [vmem:[%s13371_s27 + $0x13c] ss:$12 sps:$4 sm:$0xff]   ;;  %v11396_v21 = vld [vmem:[%s13371_s27 + $0x124] ss:$12 sps:$4 sm:$0xff]  }
 0x8db   : > { %8191 = vmatpush1.bf16.msra.mxu0 %v8167_v41  ;;  %v8122_v58 = vpop.permute.xlu1 %8121  ;;  %v11394_v41 = vld [vmem:[%s13371_s27 + $0x120] ss:$12 sps:$4 sm:$0xff]  }
 0x8dc   : > { %v8125_v9 = vsel %vm1226_vm6, %v8120_v10, %v8122_v58  ;;  %v8126_v18 = vsel %vm1226_vm6, %v8122_v58, %v8124_v37  ;;  %v11402_v10 = vld [vmem:[%s13371_s27 + $0x110] ss:$12 sps:$4 sm:$0xff]   ;;  %v11401_v37 = vld [vmem:[%s13371_s27 + $0x10c] ss:$12 sps:$4 sm:$0xff]   ;;  %v11399_v58 = vld [vmem:[%s13371_s27 + $0x108] ss:$12 sps:$4 sm:$0xff]  }
 0x8dd   : > { %v8163_v12 = vsel %vm1353_vm9, %v8118_v42, %v8126_v18  ;;  %v8159_v59 = vsel %vm1353_vm9, %v8117_v38, %v8125_v9  ;;  %v11403_v38 = vld [vmem:[%s13371_s27 + $0x50] ss:$12 sps:$4 sm:$0xff]   ;;  %v11406_v42 = vld [vmem:[%s13371_s27 + $0xf4] ss:$12 sps:$4 sm:$0xff]   ;;  %v11407_v9 = vld [vmem:[%s13371_s27 + $0xf8] ss:$12 sps:$4 sm:$0xff]  }
 0x8de   : > { %v8108_v22 = vpop.permute.xlu0 %8107  ;;  %8192 = vmatprep.subr.bf16.mxu0 %v8163_v12  ;;  %v11404_v18 = vld [vmem:[%s13371_s27 + $0xf0] ss:$12 sps:$4 sm:$0xff]   ;;  %v11408_v12 = vld [vmem:[%s13371_s27 + $0x38] ss:$12 sps:$4 sm:$0xff]  }
 0x8df   : > { %8193 = vmatpush1.bf16.msra.mxu0 %v8159_v59  ;;  %v8106_v20 = vpop.permute.xlu1 %8105  ;;  %v11411_v59 = vld [vmem:[%s13371_s27 + $0xdc] ss:$12 sps:$4 sm:$0xff]  }
 0x8e0   : > { %v8109_v26 = vsel %vm1164_vm2, %v8104_v48, %v8106_v20  ;;  %v8110_v47 = vsel %vm1164_vm2, %v8106_v20, %v8108_v22  ;;  %v11369_v48 = vld [vmem:[%s13371_s27 + $0x4c] ss:$12 sps:$4 sm:$0xff]  }
 0x8e1   : > { %v8155_v27 = vsel %vm1353_vm9, %v8102_v36, %v8110_v47  ;;  %v8151_v28 = vsel %vm1353_vm9, %v8101_v43, %v8109_v26  ;;  %v11412_v22 = vld [vmem:[%s13371_s27 + $0xe0] ss:$12 sps:$4 sm:$0xff]   ;;  %v11409_v20 = vld [vmem:[%s13371_s27 + $0xd8] ss:$12 sps:$4 sm:$0xff]   ;;  %v11417_v26 = vld [vmem:[%s13371_s27 + $0xc8] ss:$12 sps:$4 sm:$0xff]  }
 0x8e2   : > { %v8092_v45 = vpop.permute.xlu0 %8091  ;;  %8194 = vmatprep.subr.bf16.mxu0 %v8155_v27  ;;  %v11413_v43 = vld [vmem:[%s13371_s27 + $0x20] ss:$12 sps:$4 sm:$0xff]   ;;  %v11416_v36 = vld [vmem:[%s13371_s27 + $0xc4] ss:$12 sps:$4 sm:$0xff]   ;;  %v11418_v27 = vld [vmem:[%s13371_s27 + $0x8] ss:$12 sps:$4 sm:$0xff]  }
 0x8e3   : > { %8195 = vmatpush1.bf16.msra.mxu0 %v8151_v28  ;;  %v8090_v49 = vpop.permute.xlu1 %8089  ;;  %v11414_v47 = vld [vmem:[%s13371_s27 + $0xc0] ss:$12 sps:$4 sm:$0xff]  }
 0x8e4   : > { %v8094_v25 = vsel %vm1067_vm0, %v8090_v49, %v8092_v45 }
 0x8e5   : > { %v8147_v8 = vsel %vm1353_vm9, %v13153_v44, %v8094_v25  ;;  %v11355_v44 = vld [vmem:[%s13371_s27 + $0xa8] ss:$12 sps:$4 sm:$0xff]  }
 0x8e6   : > { %v8242_v11 = vpop.permute.xlu0 %8241  ;;  %8196 = vmatprep.subr.bf16.mxu0 %v8147_v8 }
 0x8e7   : > { %v8088_v29 = vpop.permute.xlu1 %8087 }
 0x8e8   : > { %v8093_v51 = vsel %vm1067_vm0, %v8088_v29, %v8090_v49 }
 0x8e9   : > { %v8144_v31 = vsel %vm1353_vm9, %v13138_v34, %v8093_v51 }
 0x8ea   : > { %v8246_v35 = vpop.permute.xlu0 %8245  ;;  %8197 = vmatpush1.bf16.msra.mxu0 %v8144_v31 }
 0x8eb   : > { %v8244_v53 = vpop.permute.xlu1 %8243  ;;  %10159 = vmatprep.subr.bf16.mxu0 %v11382_v32 }
 0x8ec   : > { %v8247_v60 = vsel %vm1164_vm2, %v8242_v11, %v8244_v53  ;;  %v8248_v57 = vsel %vm1164_vm2, %v8244_v53, %v8246_v35 }
 0x8ed   : > { %v8254_v34 = vsel %vm1319_vm5, %v8247_v60, 0  ;;  %9961 = vmatmul.mubr.msk.bf16.vlgmr.msra.gmra.mxu0 %vm8178_vm7, %v8076_v61  ;;  %9963 = vmatprep.subr.msk.bf16.mxu1 %vm1319_vm5, %v8248_v57 }
 0x8ee   : > { %8274 = vmatpush1.bf16.msra.mxu1 %v8254_v34  ;;  %10160 = vmatpush3.bf16.msra.mxu0 %v11383_v52 }
 0x8ef   : > { %8631 = vmatprep.subr.bf16.mxu1 %v11357_v33  ;;  %10161 = vmatprep.subr.bf16.mxu0 %v11387_v46 }
 0x8f1   : > { %9964 = vmatmul.mubr.msk.bf16.vlgmr.msra.gmra.mxu1 %vm8249_vm12, %v8077_v24 }
 0x8f2   : > { %8632 = vmatpush1.bf16.msra.mxu1 %v11355_v44  ;;  %10162 = vmatpush3.bf16.msra.mxu0 %v11388_v30 }
 0x8f3   : > { %8633 = vmatprep.subr.bf16.mxu1 %v11360_v3  ;;  %10163 = vmatprep.subr.bf16.mxu0 %v11392_v17 }
 0x8f6   : > { %8634 = vmatpush1.bf16.msra.mxu1 %v11358_v6  ;;  %10164 = vmatpush3.bf16.msra.mxu0 %v11393_v4 }
 0x8f7   : > { %8635 = vmatprep.subr.bf16.mxu1 %v11363_v39  ;;  %10165 = vmatprep.subr.bf16.mxu0 %v11397_v1  ;;  %v8232_v25 = vpop.permute.xlu0 %8231 }
 0x8f8   : > { %v8176_v28 = vpop.permute.xlu1 %8175 }
 0x8fa   : > { %8636 = vmatpush1.bf16.msra.mxu1 %v11361_v7  ;;  %10166 = vmatpush3.bf16.msra.mxu0 %v11398_v56 }
 0x8fb   : > { %8637 = vmatprep.subr.bf16.mxu1 %v11366_v13  ;;  %10167 = vmatprep.subr.bf16.mxu0 %v11402_v10 }
 0x8fc   : > { %v8305_v46 = vpop.permute.xlu1 %8304 }
 0x8fe   : > { %8638 = vmatpush1.bf16.msra.mxu1 %v11364_v16  ;;  %10168 = vmatpush3.bf16.msra.mxu0 %v11403_v38 }
 0x8ff   : > { %8639 = vmatprep.subr.bf16.mxu1 %v11369_v48  ;;  %10169 = vmatprep.subr.bf16.mxu0 %v11407_v9 }
 0x902   : > { %8640 = vmatpush1.bf16.msra.mxu1 %v11367_v54  ;;  %10170 = vmatpush3.bf16.msra.mxu0 %v11408_v12 }
 0x903   : > { %8641 = vmatprep.subr.bf16.mxu1 %v11372_v40  ;;  %10171 = vmatprep.subr.bf16.mxu0 %v11412_v22 }
 0x906   : > { %8642 = vmatpush1.bf16.msra.mxu1 %v11370_v63  ;;  %10172 = vmatpush3.bf16.msra.mxu0 %v11413_v43  ;;  %v11471_v63 = vmov 0.0  }
 0x907   : > { %8643 = vmatprep.subr.bf16.mxu1 %v11375_v15  ;;  %10173 = vmatprep.subr.bf16.mxu0 %v11417_v26 }
 0x90a   : > { %8644 = vmatpush1.bf16.msra.mxu1 %v11373_v50  ;;  %10174 = vmatpush3.bf16.msra.mxu0 %v11418_v27 }
 0x90b   : > { %8645 = vmatprep.subr.bf16.mxu1 %v11378_v5  ;;  %10199 = vmatprep.subr.bf16.mxu0 %v11471_v63 }
 0x90e   : > { %8646 = vmatpush1.bf16.msra.mxu1 %v11376_v55 }
 0x90f   : > { %8647 = vmatprep.subr.bf16.mxu1 %v11381_v14 }
 0x912   : > { %8648 = vmatpush2.bf16.msra.mxu1 %v11379_v62 }
 0x913   : > { %8649 = vmatprep.subr.bf16.mxu1 %v11386_v0 }
 0x916   : > { %8650 = vmatpush2.bf16.msra.mxu1 %v11384_v23 }
 0x917   : > { %8651 = vmatprep.subr.bf16.mxu1 %v11391_v2  ;;  %v8736_v2 = vld [vmem:[%s13374_s4 + $0x8] sm:$0xff] }
 0x91a   : > { %8652 = vmatpush2.bf16.msra.mxu1 %v11389_v19  ;;  %v8735_v19 = vld [vmem:[%s13374_s4] sm:$0xff] }
 0x91b   : > { %8653 = vmatprep.subr.bf16.mxu1 %v11396_v21  ;;  %v8737_v21 = vld [vmem:[%s13375_s10] sm:$0xff] }
 0x91e   : > { %8654 = vmatpush2.bf16.msra.mxu1 %v11394_v41  ;;  %v10014_v41 = vld [vmem:[#allocation5] ss:$0 sm:$0xff] }
 0x91f   : > { %8655 = vmatprep.subr.bf16.mxu1 %v11401_v37  ;;  %v8738_v37 = vld [vmem:[%s13375_s10 + $0x8] sm:$0xff] }
 0x922   : > { %8656 = vmatpush2.bf16.msra.mxu1 %v11399_v58 }
 0x923   : > { %8657 = vmatprep.subr.bf16.mxu1 %v11406_v42 }
 0x926   : > { %8658 = vmatpush2.bf16.msra.mxu1 %v11404_v18 }
 0x927   : > { %8659 = vmatprep.subr.bf16.mxu1 %v11411_v59 }
 0x92a   : > { %8660 = vmatpush2.bf16.msra.mxu1 %v11409_v20 }
 0x92b   : > { %8661 = vmatprep.subr.bf16.mxu1 %v11416_v36 }
 0x92e   : > { %8662 = vmatpush2.bf16.msra.mxu1 %v11414_v47 }
 0x92f   : > { %10219 = vmatprep.subr.bf16.mxu1 %v11471_v63 }
 0x9ad   : > { %v8216_v45 = vpop.f32.mrf.mxu0 }
 0x9ae   : > { %v8217_v49 = vadd.f32 %v8216_v45, %v8176_v28 }
 0x9af   : > { %v8218_v8 = vpop.f32.mrf.mxu0 }
 0x9b0   : > { %v8234_v11 = vmul.f32 %v8232_v25, %v8217_v49  ;;  %v8219_v29 = vadd.f32 %v8218_v8, %v8176_v28  ;;  %vm8223_vm5 = vcmp.ge.f32.partialorder %v8217_v49, 0.0 }
 0x9b1   : > { %v8220_v32 = vpop.f32.mrf.mxu0  ;;  %v8293_v51 = vpop.f32.mrf.mxu1 }
 0x9b2   : > { %v8235_v31 = vmul.f32 %v8232_v25, %v8219_v29  ;;  %v8236_v35 = vsel %vm8223_vm5, %v8217_v49, %v8234_v11  ;;  %vm8224_vm3 = vcmp.ge.f32.partialorder %v8219_v29, 0.0 }
 0x9b3   : > { %v8300_v61 = vadd.f32 %v8293_v51, %v8236_v35  ;;  %v8221_v52 = vpop.f32.mrf.mxu0  ;;  %v8295_v53 = vpop.f32.mrf.mxu1  ;;  %v11419_v35 = vld [vmem:[%s13376_s0] sm:$0xff]  }
 0x9b4   : > { %v8237_v33 = vsel %vm8224_vm3, %v8219_v29, %v8235_v31  ;;  %v11420_v52 = vld [vmem:[%s13377_s19] sm:$0xff]  }
 0x9b5   : > { %v8301_v60 = vadd.f32 %v8295_v53, %v8237_v33  ;;  %v8297_v57 = vpop.f32.mrf.mxu1  ;;  %v8307_v34 = vadd.f32 %v8305_v46, %v8300_v61 }
 0x9b7   : > { %v8308_v24 = vadd.f32 %v8305_v46, %v8301_v60  ;;  %v8298_v44 = vpop.f32.mrf.mxu1  ;;  %v8373_v3 = vpack.c.bf16 %v8307_v34, %v8307_v34 }
 0x9b9   : > { %v8374_v30 = vpack.c.bf16 %v8308_v24, %v8308_v24 }
 0x9bb   : > { %8663 = vmatprep.mubr.bf16.mxu1 %v8374_v30  ;;  %8704 = vmatprep.mubr.bf16.mxu0 %v8374_v30 }
 0x9bc   : > { %8664 = vmatmul.mubr.bf16.vlgmr.msra.gmra.mxu1 %v8373_v3  ;;  %8705 = vmatmul.mubr.bf16.vlgmr.msra.gmra.mxu0 %v8373_v3 }
 0x9bd   : > { %10215 = vmatprep.mubr.msk.bf16.mxu0 %vm11472_vm15, %v11471_v63  ;;  %10221 = vmatprep.mubr.msk.bf16.mxu1 %vm11472_vm15, %v11471_v63 }
 0xa7c   : > { %v8665_v17 = vpop.f32.mrf.mxu1  ;;  %v10175_v6 = vpop.f32.mrf.mxu0 }
 0xa7d   : > { %v8712_v15 = vpack.c.bf16 %v8665_v17, %v8665_v17 }
 0xa7e   : > { %v8667_v4 = vpop.f32.mrf.mxu1  ;;  %v10176_v39 = vpop.f32.mrf.mxu0 }
 0xa7f   : > { %v8713_v1 = vpack.c.bf16 %v8667_v4, %v8667_v4  ;;  %v10177_v7 = vadd.f32 %v10176_v39, %v10175_v6 }
 0xa80   : > { %v8669_v56 = vpop.f32.mrf.mxu1  ;;  %v10178_v13 = vpop.f32.mrf.mxu0 }
 0xa81   : > { %v8717_v10 = vrot.slane %v8713_v1, 4  ;;  %v8714_v16 = vpack.c.bf16 %v10177_v7, %v10177_v7 }
 0xa82   : > { %v8670_v48 = vpop.f32.mrf.mxu1  ;;  %v10179_v54 = vpop.f32.mrf.mxu0 }
 0xa83   : > { %v8718_v40 = vrot.slane %v8714_v16, 4  ;;  %8719 = vrot.lane.b32.xlu0 %v8717_v10, %s11469_s28 }
 0xa85   : > { %8721 = vrot.lane.b32.xlu1 %v8718_v40, %s11469_s28 }
 0xaf5   : > { %v8720_v50 = vpop.permute.xlu0 %8719 }
 0xaf7   : > { %v8722_v5 = vpop.permute.xlu1 %8721 }
 0xaf8   : > { %v8723_v55 = vsel %vm1285_vm11, %v8720_v50, %v8722_v5  ;;  %v8730_v14 = vsel %vm1353_vm9, %v8713_v1, %v8722_v5 }
 0xaf9   : > { %v13266_v62 = vsel %vm1353_vm9, %v8712_v15, %v8723_v55  ;;  %8780 = vrot.lane.b32.xlu1 %v8730_v14, %s11469_s28  ;;  %v8862_v0 = vrot.slane %v8730_v14, 4 }
 0xafa   : > { %8778 = vrot.lane.b32.xlu0 %v13266_v62, %s11469_s28  ;;  %v8861_v23 = vrot.slane %v13266_v62, 4 }
 0xafd   : > { %8774 = vrot.lane.b32.xlu1 %v8730_v14, %s11468_s23 }
 0xafe   : > { %8772 = vrot.lane.b32.xlu0 %v13266_v62, %s11468_s23  ;;  %s10026_s23 = sshll.u32 %s13388_s15, 5 }
 0xaff   : > { %s935_s28 = scalar_lea.vmem %s11614_s24, %s10026_s23 }
 0xb01   : > { %8768 = vrot.lane.b32.xlu1 %v8730_v14, %s11467_s22 }
 0xb02   : > { %8766 = vrot.lane.b32.xlu0 %v13266_v62, %s11467_s22  ;;  %s13382_s22 = sld [smem:[#allocation16_spill]] }
 0xb05   : > { %8762 = vrot.lane.b32.xlu1 %v8730_v14, %s11466_s20 }
 0xb06   : > { %8760 = vrot.lane.b32.xlu0 %v13266_v62, %s11466_s20  ;;  %s13381_s20 = sld [smem:[#allocation17_spill]] }
 0xb09   : > { %8756 = vrot.lane.b32.xlu1 %v8730_v14, %s11465_s16 }
 0xb0a   : > { %8754 = vrot.lane.b32.xlu0 %v13266_v62, %s11465_s16 }
 0xb0d   : > { %8750 = vrot.lane.b32.xlu1 %v8730_v14, %s11464_s2 }
 0xb0e   : > { %8748 = vrot.lane.b32.xlu0 %v13266_v62, %s11464_s2  ;;  %s13379_s2 = sld [smem:[#allocation14_spill]] }
 0xb11   : > { %8744 = vrot.lane.b32.xlu1 %v8730_v14, %s11463_s12 }
 0xb12   : > { %8742 = vrot.lane.b32.xlu0 %v13266_v62, %s11463_s12  ;;  %s13378_s12 = sld [smem:[#allocation13_spill]] }
 0xb15   : > { %8865 = vrot.lane.b32.xlu1 %v8862_v0, %s11465_s16  ;;  %v8939_v0 = vld [vmem:[%s13379_s2] sm:$0xff] }
 0xb16   : > { %8863 = vrot.lane.b32.xlu0 %v8861_v23, %s11465_s16  ;;  %s13380_s16 = sld [smem:[#allocation15_spill]] }
 0xb18   : > { %v11421_v14 = vld [vmem:[%s13378_s12] sm:$0xff]  }
 0xb19   : > { %8791 = vperm.xlu1 %10295, %v8736_v2   ;;  %v8940_v2 = vld [vmem:[%s13379_s2 + $0x8] sm:$0xff] }
 0xb1a   : > { %8786 = vperm.xlu0 %10294, %v8735_v19  }
 0xb1d   : > { %8920 = vperm.xlu1 %10295, %v8737_v21  }
 0xb1e   : > { %8849 = vperm.xlu0 %10294, %v10014_v41  }
 0xb22   : > { %8925 = vperm.xlu0 %10294, %v8738_v37  }
 0xb6b   : > { %v8781_v58 = vpop.permute.xlu1 %8780 }
 0xb6c   : > { %v8779_v38 = vpop.permute.xlu0 %8778 }
 0xb6d   : > { %v8782_v42 = vsel %vm1285_vm11, %v8779_v38, %v8781_v58  ;;  %v8990_v38 = vld [vmem:[%s13380_s16] sm:$0xf] }
 0xb6e   : > { %10200 = vmatpush3.bf16.msra.mxu0 %v8782_v42  ;;  %v11422_v42 = vld [vmem:[%s13381_s20] sm:$0xff]  }
 0xb6f   : > { %v8775_v9 = vpop.permute.xlu1 %8774  ;;  %10201 = vmatprep.subr.bf16.mxu0 %v11471_v63 }
 0xb70   : > { %v8773_v18 = vpop.permute.xlu0 %8772 }
 0xb71   : > { %v8776_v12 = vsel %vm1256_vm8, %v8773_v18, %v8775_v9  ;;  %v8992_v9 = vld [vmem:[%s13382_s22] sm:$0xff] }
 0xb72   : > { %10202 = vmatpush3.bf16.msra.mxu0 %v8776_v12 }
 0xb73   : > { %v8769_v59 = vpop.permute.xlu1 %8768  ;;  %10203 = vmatprep.subr.bf16.mxu0 %v11471_v63 }
 0xb74   : > { %v8767_v22 = vpop.permute.xlu0 %8766 }
 0xb75   : > { %v8770_v20 = vsel %vm1226_vm6, %v8767_v22, %v8769_v59 }
 0xb76   : > { %10204 = vmatpush3.bf16.msra.mxu0 %v8770_v20 }
 0xb77   : > { %v8763_v43 = vpop.permute.xlu1 %8762  ;;  %10205 = vmatprep.subr.bf16.mxu0 %v11471_v63 }
 0xb78   : > { %v8761_v36 = vpop.permute.xlu0 %8760 }
 0xb79   : > { %v8764_v26 = vsel %vm1196_vm4, %v8761_v36, %v8763_v43  ;;  %v11423_v36 = vld [vmem:[%s13381_s20 + $0x8] sm:$0xff]   ;;  %vm13383_vm4 = vcmask 7168  }
 0xb7a   : > { %10206 = vmatpush3.bf16.msra.mxu0 %v8764_v26  ;;  %vm13384_vm6 = vmmov %vm13383_vm4 }
 0xb7b   : > { %v8757_v47 = vpop.permute.xlu1 %8756  ;;  %10207 = vmatprep.subr.bf16.mxu0 %v11471_v63  ;;  %vm13385_vm8 = vmmov %vm13383_vm4 }
 0xb7c   : > { %v8755_v27 = vpop.permute.xlu0 %8754 }
 0xb7d   : > { %v8758_v28 = vsel %vm1164_vm2, %v8755_v27, %v8757_v47  ;;  %v9043_v47 = vld [vmem:[%s11609_s26 + $0x10] sm:$0xff] }
 0xb7e   : > { %10208 = vmatpush3.bf16.msra.mxu0 %v8758_v28  ;;  %v9041_v28 = vld [vmem:[%s11609_s26] sm:$0xff] }
 0xb7f   : > { %v8751_v45 = vpop.permute.xlu1 %8750  ;;  %10209 = vmatprep.subr.bf16.mxu0 %v11471_v63 }
 0xb80   : > { %v8749_v49 = vpop.permute.xlu0 %8748 }
 0xb81   : > { %v8752_v25 = vsel %vm1120_vm1, %v8749_v49, %v8751_v45  ;;  %vm8868_vm1 = vcmask 64512  }
 0xb82   : > { %10210 = vmatpush3.bf16.msra.mxu0 %v8752_v25  ;;  %v9044_v25 = vld [vmem:[%s11609_s26 + $0x18] sm:$0xff] }
 0xb83   : > { %v8745_v8 = vpop.permute.xlu1 %8744  ;;  %10211 = vmatprep.subr.bf16.mxu0 %v11471_v63 }
 0xb84   : > { %v8743_v11 = vpop.permute.xlu0 %8742 }
 0xb85   : > { %v8746_v29 = vsel %vm1067_vm0, %v8743_v11, %v8745_v8 }
 0xb86   : > { %10212 = vmatpush3.bf16.msra.mxu0 %v8746_v29  ;;  %v9042_v29 = vld [vmem:[%s11609_s26 + $0x8] sm:$0xff] }
 0xb87   : > { %v8866_v32 = vpop.permute.xlu1 %8865  ;;  %10213 = vmatprep.subr.bf16.mxu0 %v11471_v63 }
 0xb88   : > { %v8864_v51 = vpop.permute.xlu0 %8863 }
 0xb89   : > { %v8867_v31 = vsel %vm1164_vm2, %v8864_v51, %v8866_v32 }
 0xb8a   : > { %v8873_v61 = vsel %vm1353_vm9, %v8867_v31, 0  ;;  %10214 = vmatpush3.bf16.msra.mxu0 %v13266_v62 }
 0xb8b   : > { %10220 = vmatpush3.bf16.msra.mxu1 %v8873_v61  ;;  %10225 = vmatprep.subr.bf16.mxu0 %v11471_v63 }
 0xb8c   : > { %10231 = vmatprep.subr.bf16.mxu1 %v11471_v63 }
 0xb8d   : > { %10216 = vmatmul.mubr.bf16.vlgmr.msra.gmra.mxu0 %v11419_v35 }
 0xb8e   : > { %10222 = vmatmul.mubr.msk.bf16.vlgmr.msra.gmra.mxu1 %vm8868_vm1, %v11420_v52  ;;  %10227 = vmatprep.mubr.msk.bf16.mxu0 %vm11472_vm15, %v11471_v63 }
 0xb8f   : > { %10233 = vmatprep.mubr.msk.bf16.mxu1 %vm11472_vm15, %v11471_v63 }
 0xb94   : > { %v8792_v46 = vpop.permute.xlu1 %8791 }
 0xb95   : > { %v8787_v53 = vpop.permute.xlu0 %8786 }
 0xb98   : > { %v8921_v7 = vpop.permute.xlu1 %8920 }
 0xb99   : > { %v8850_v34 = vpop.permute.xlu0 %8849 }
 0xb9d   : > { %v8926_v54 = vpop.permute.xlu0 %8925 }
 0xc4d   : > { %v8834_v33 = vpop.f32.mrf.mxu0 }
 0xc4e   : > { %v8835_v60 = vadd.f32 %v8834_v33, %v8787_v53  ;;  %v8909_v57 = vpop.f32.mrf.mxu1 }
 0xc4f   : > { %v10217_v24 = vpop.f32.mrf.mxu0 }
 0xc50   : > { %v8852_v44 = vmul.f32 %v8850_v34, %v8835_v60  ;;  %vm8841_vm0 = vcmp.ge.f32.partialorder %v8835_v60, 0.0  ;;  %v10223_v30 = vpop.f32.mrf.mxu1 }
 0xc51   : > { %v8837_v3 = vpop.f32.mrf.mxu0 }
 0xc52   : > { %v8854_v17 = vsel %vm8841_vm0, %v8835_v60, %v8852_v44  ;;  %v8838_v6 = vadd.f32 %v8837_v3, %v8792_v46  ;;  %v8912_v4 = vpop.f32.mrf.mxu1 }
 0xc53   : > { %v8916_v39 = vadd.f32 %v8909_v57, %v8854_v17  ;;  %v10218_v1 = vpop.f32.mrf.mxu0 }
 0xc54   : > { %v8853_v56 = vmul.f32 %v8850_v34, %v8838_v6  ;;  %vm8842_vm2 = vcmp.ge.f32.partialorder %v8838_v6, 0.0  ;;  %v10224_v13 = vpop.f32.mrf.mxu1 }
 0xc55   : > { %v8928_v10 = vadd.f32 %v8921_v7, %v8916_v39 }
 0xc56   : > { %v8855_v16 = vsel %vm8842_vm2, %v8838_v6, %v8853_v56 }
 0xc57   : > { %v8917_v48 = vadd.f32 %v8912_v4, %v8855_v16  ;;  %8930 = vadd.xlane.f32.xlu1 %v8928_v10 }
 0xc59   : > { %v8929_v40 = vadd.f32 %v8926_v54, %v8917_v48 }
 0xc5b   : > { %8932 = vadd.xlane.f32.xlu0 %v8929_v40 }
 0xce0   : > { %v8931_v63 = vpop.xlane.xlu1 %8930 }
 0xce1   : > { %v8934_v50 = vmul.f32 0.0078125, %v8931_v63 }
 0xce4   : > { %v8933_v15 = vpop.xlane.xlu0 %8932 }
 0xce5   : > { %v8935_v5 = vmul.f32 0.0078125, %v8933_v15 }
 0xce7   : > { %v8936_v55 = vpack.c.bf16 %v8935_v5, %v8934_v50 }
 0xce9   : > { %10226 = vmatpush3.bf16.msra.mxu0 %v8936_v55 }
 0xcec   : > { %10228 = vmatmul.mubr.msk.bf16.vlgmr.msra.gmra.mxu0 %vm1434_vm14, %v11421_v14 }
 0xced   : > { %10239 = vmatprep.mubr.msk.bf16.mxu0 %vm8868_vm1, %v11422_v42 }
 0xdac   : > { %v8983_v62 = vpop.f32.mrf.mxu0 }
 0xdad   : > { %v8984_v21 = vadd.f32 %v8983_v62, %v8939_v0 }
 0xdae   : > { %v10229_v23 = vpop.f32.mrf.mxu0 }
 0xdb0   : > { %v8986_v19 = vpop.f32.mrf.mxu0 }
 0xdb1   : > { %v8987_v41 = vadd.f32 %v8986_v19, %v8940_v2 }
 0xdb2   : > { %v10230_v37 = vpop.f32.mrf.mxu0 }
 0xdb3   : > { %v8991_v58 = vpack.c.bf16 %v8987_v41, %v8984_v21 }
 0xdb5   : > { %10232 = vmatpush3.bf16.msra.mxu1 %v8991_v58 }
 0xdb8   : > { %10234 = vmatmul.mubr.msk.bf16.vlgmr.msra.gmra.mxu1 %vm1434_vm14, %v8990_v38 }
 0xe78   : > { %v9030_v18 = vpop.f32.mrf.mxu1 }
 0xe79   : > { %v9031_v12 = vadd.f32 %v9030_v18, %v8992_v9 }
 0xe7a   : > { %v10235_v59 = vpop.f32.mrf.mxu1 }
 0xe7b   : > { %v9040_v22 = vpack.c.bf16 %v9031_v12, %v9031_v12 }
 0xe7c   : > { %v9033_v20 = vpop.f32.mrf.mxu1 }
 0xe7d   : > { %v9062_v43 = vsel %vm1353_vm9, %v9040_v22, 0  ;;  %10243 = vmatprep.subr.msk.bf16.mxu0 %vm1353_vm9, %v9040_v22  ;;  %vm13386_vm9 = vmmov %vm13383_vm4 }
 0xe7e   : > { %v10236_v26 = vpop.f32.mrf.mxu1  ;;  %10238 = vmatpush3.bf16.msra.mxu0 %v9062_v43 }
 0xe81   : > { %10240 = vmatmul.mubr.msk.bf16.vlgmr.msra.gmra.mxu0 %vm8868_vm1, %v11423_v36 }
 0xf41   : > { %v10241_v27 = vpop.f32.mrf.mxu0 }
 0xf42   : > { %v9107_v45 = vadd.f32 %v10241_v27, %v9043_v47 }
 0xf43   : > { %v9098_v49 = vpop.f32.mrf.mxu0 }
 0xf44   : > { %9115 = vst.msk [vmem:[%s935_s28 + $0x10] sm:$0xff] %vm13383_vm4, %v9107_v45  ;;  %v9099_v8 = vadd.f32 %v9098_v49, %v9041_v28 }
 0xf45   : > { %v10242_v11 = vpop.f32.mrf.mxu0 }
 0xf46   : > { %9113 = vst.msk [vmem:[%s935_s28] sm:$0xff] %vm13384_vm6, %v9099_v8  ;;  %v9110_v32 = vadd.f32 %v10242_v11, %v9044_v25 }
 0xf47   : > { %v9101_v51 = vpop.f32.mrf.mxu0 }
 0xf48   : > { %9116 = vst.msk [vmem:[%s935_s28 + $0x18] sm:$0xff] %vm13385_vm8, %v9110_v32  ;;  %v9102_v31 = vadd.f32 %v9101_v51, %v9042_v29 }
 0xf4a   : > { %9114 = vst.msk [vmem:[%s935_s28 + $0x8] sm:$0xff] %vm13386_vm9, %v9102_v31 }
 0xf4b PF: > { %s79_s25 = sadd.s32 1, %s11430_s25  }
 0xf4c   : > { %p76_p4 = scmp.ge.s32.totalorder %s79_s25, 4  }
 0xf4e   :  { %78 = sbr.rel (!%p76_p4) target bundleno = 53 (0x35), region = 200 }

</bundles_post_ra>
